<compile_context>
chip_gen: v5e
topology: v5e:2x2
jax: 0.10.0
libtpu: 0.0.40
codegen_flags: <defaults>
</compile_context>

<pallas_src>
import math

import jax
import jax.numpy as jnp
from jax.experimental import pallas as pl
from jax.experimental.pallas import tpu as pltpu


# ----------------------------------------------------------------------------
# Padded-flattened ("pf") layout helpers.
# ----------------------------------------------------------------------------
def pf_geom(H, W):
    Wp = W + 2                       # padded row width
    Q = H * Wp                       # rows of the (over-)computed conv output
    A = (-(Wp + 1)) % 8              # leading pad -> interior writes 8-aligned
    P = A + (H + 2) * Wp + 2         # +2 so the last tap's read stays in bounds
    return Wp, Q, A, P


def pad_flatten(x_nhwc):
    N, H, W, C = x_nhwc.shape
    Wp, Q, A, P = pf_geom(H, W)
    xp = jnp.pad(x_nhwc, ((0, 0), (1, 1), (1, 1), (0, 0)))
    xf = xp.reshape(N, (H + 2) * Wp, C)
    return jnp.pad(xf, ((0, 0), (A, 2), (0, 0)))


def q_to_nhwc(x_q, H, W):
    N, Q, C = x_q.shape
    Wp = W + 2
    return x_q.reshape(N, H, Wp, C)[:, :, :W, :]


def pf_to_nhwc(x_pf, H, W):
    N, P, C = x_pf.shape
    Wp, Q, A, _ = pf_geom(H, W)
    IA = A + Wp + 1
    return x_pf[:, IA:IA + Q, :].reshape(N, H, Wp, C)[:, :, :W, :]


def upsample2_nearest(x):
    # F.interpolate(scale_factor=2, mode='nearest') on NHWC
    return jnp.repeat(jnp.repeat(x, 2, axis=1), 2, axis=2)


# ----------------------------------------------------------------------------
# Generic Pallas 3x3 conv (bf16 MXU, f32 accumulate) on pf-layout activations.
# Optional fused residual add and optional pf-layout output.
# ----------------------------------------------------------------------------
def conv3x3_pf(x_pf, H, W, w9, b, *, lrelu=False, residual_pf=None,
               pf_out=False, out_dtype=jnp.bfloat16):
    N, P, Cin = x_pf.shape
    Cout = w9.shape[-1]
    Wp, Q, A, P_ = pf_geom(H, W)
    assert P == P_
    IA = A + Wp + 1
    has_res = residual_pf is not None

    def kernel(*refs):
        it = iter(refs)
        x_ref = next(it)
        res_ref = next(it) if has_res else None
        w_ref = next(it)
        b_ref = next(it)
        o_ref = next(it)
        acc_ref = next(it)

        acc_ref[...] = jnp.zeros_like(acc_ref)
        for t in range(9):
            off = A + (t // 3) * Wp + (t % 3)          # static offset
            acc_ref[...] += jnp.dot(x_ref[0, off:off + Q, :], w_ref[t],
                                    preferred_element_type=jnp.float32)
        a = acc_ref[...] + b_ref[...]
        if lrelu:
            a = jnp.where(a >= 0, a, 0.2 * a)
        if has_res:
            a = a + res_ref[0, IA:IA + Q, :].astype(jnp.float32)
        if pf_out:
            # write a ready-to-consume zero-padded pf tensor
            col = jax.lax.broadcasted_iota(jnp.int32, (Q, 1), 0) % Wp
            a = jnp.where(col < W, a, 0.0)
            o_ref[0, 0:IA, :] = jnp.zeros((IA, Cout), o_ref.dtype)
            o_ref[0, IA:IA + Q, :] = a.astype(o_ref.dtype)
            o_ref[0, IA + Q:P, :] = jnp.zeros((P - IA - Q, Cout), o_ref.dtype)
        else:
            o_ref[0] = a.astype(o_ref.dtype)

    inputs = [x_pf]
    in_specs = [pl.BlockSpec((1, P, Cin), lambda n: (n, 0, 0))]
    if has_res:
        inputs.append(residual_pf)
        in_specs.append(pl.BlockSpec((1, P, Cout), lambda n: (n, 0, 0)))
    inputs += [w9.astype(jnp.bfloat16), b.reshape(1, Cout).astype(jnp.float32)]
    in_specs += [pl.BlockSpec((9, Cin, Cout), lambda n: (0, 0, 0)),
                 pl.BlockSpec((1, Cout), lambda n: (0, 0))]
    out_rows = P if pf_out else Q
    return pl.pallas_call(
        kernel,
        out_shape=jax.ShapeDtypeStruct((N, out_rows, Cout), out_dtype),
        grid=(N,),
        in_specs=in_specs,
        out_specs=pl.BlockSpec((1, out_rows, Cout), lambda n: (n, 0, 0)),
        scratch_shapes=[pltpu.VMEM((Q, Cout), jnp.float32)],
        compiler_params=pltpu.CompilerParams(
            dimension_semantics=("parallel",)),
    )(*inputs)


# ----------------------------------------------------------------------------
# Fused ResidualDenseBlock_5C: 5 convs + dense concat (in VMEM) + residual(s),
# one pallas_call.  Input and output are pf-layout (N, P, nf) bf16 tensors.
# ----------------------------------------------------------------------------
def rdb_pallas(x_pf, convs, H, W, *, residual_pf=None):
    N, P, nf = x_pf.shape
    gc = convs[0][0].shape[-1]
    Wp, Q, A, P_ = pf_geom(H, W)
    assert P == P_
    IA = A + Wp + 1
    has_res = residual_pf is not None

    # wrapper-side: split each conv's weight along the dense-concat channels
    inputs = [x_pf]
    in_specs = [pl.BlockSpec((1, P, nf), lambda n: (n, 0, 0))]
    if has_res:
        inputs.append(residual_pf)
        in_specs.append(pl.BlockSpec((1, P, nf), lambda n: (n, 0, 0)))
    for i, (w9, bias) in enumerate(convs):
        parts = [w9[:, :nf, :]] + [w9[:, nf + j * gc: nf + (j + 1) * gc, :]
                                   for j in range(i)]
        for part in parts:
            part = part.astype(jnp.bfloat16)
            inputs.append(part)
            in_specs.append(pl.BlockSpec(part.shape, lambda n: (0, 0, 0)))
        b2 = bias.reshape(1, -1).astype(jnp.float32)
        inputs.append(b2)
        in_specs.append(pl.BlockSpec(b2.shape, lambda n: (0, 0)))

    def kernel(*refs):
        it = iter(refs)
        x_ref = next(it)
        res_ref = next(it) if has_res else None
        convs_r = []
        for i in range(5):
            ws = [next(it) for _ in range(i + 1)]
            convs_r.append((ws, next(it)))
        o_ref = next(it)
        s_refs = [next(it) for _ in range(4)]
        acc_g = next(it)
        acc_n = next(it)

        col = jax.lax.broadcasted_iota(jnp.int32, (Q, 1), 0) % Wp
        valid = col < W

        sources = [lambda off: x_ref[0, off:off + Q, :]]

        def run_conv(ws, b_ref, acc_ref):
            acc_ref[...] = jnp.zeros_like(acc_ref)
            for src, w_r in zip(sources, ws):
                for t in range(9):
                    off = A + (t // 3) * Wp + (t % 3)
                    acc_ref[...] += jnp.dot(src(off), w_r[t],
                                            preferred_element_type=jnp.float32)
            return acc_ref[...] + b_ref[...]

        # conv1..conv4: LeakyReLU, re-padded into bf16 VMEM scratch
        for i in range(4):
            ws, b_ref = convs_r[i]
            a = run_conv(ws, b_ref, acc_g)
            a = jnp.where(a >= 0, a, 0.2 * a)
            a = jnp.where(valid, a, 0.0)          # keep padding cols exactly 0
            s = s_refs[i]
            s[...] = jnp.zeros_like(s)
            s[IA:IA + Q, :] = a.astype(s.dtype)
            sources.append(lambda off, s=s: s[off:off + Q, :])

        # conv5 + fused residual epilogue(s)
        ws, b_ref = convs_r[4]
        a = run_conv(ws, b_ref, acc_n)
        a = jnp.where(valid, a, 0.0)
        y = a * 0.2 + x_ref[0, IA:IA + Q, :].astype(jnp.float32)
        if has_res:   # RRDB-level residual: out*0.2 + x
            y = y * 0.2 + res_ref[0, IA:IA + Q, :].astype(jnp.float32)
        y = jnp.where(valid, y, 0.0)
        o_ref[0, 0:IA, :] = jnp.zeros((IA, nf), o_ref.dtype)
        o_ref[0, IA:IA + Q, :] = y.astype(o_ref.dtype)
        o_ref[0, IA + Q:P, :] = jnp.zeros((P - IA - Q, nf), o_ref.dtype)

    return pl.pallas_call(
        kernel,
        out_shape=jax.ShapeDtypeStruct((N, P, nf), jnp.bfloat16),
        grid=(N,),
        in_specs=in_specs,
        out_specs=pl.BlockSpec((1, P, nf), lambda n: (n, 0, 0)),
        scratch_shapes=[pltpu.VMEM((P, gc), jnp.bfloat16)] * 4
                     + [pltpu.VMEM((Q, gc), jnp.float32),
                        pltpu.VMEM((Q, nf), jnp.float32)],
        compiler_params=pltpu.CompilerParams(
            dimension_semantics=("parallel",)),
    )(*inputs)


# ----------------------------------------------------------------------------
# Parameter init (deterministic, Kaiming-normal fan_in / relu, as in the ref).
# ----------------------------------------------------------------------------
def init_conv_params(key, cin, cout, scale=1.0):
    kw, kb = jax.random.split(key)
    fan_in = cin * 9
    std = math.sqrt(2.0 / fan_in) * scale
    w = jax.random.normal(kw, (3, 3, cin, cout), jnp.float32) * std
    bound = 1.0 / math.sqrt(fan_in)
    b = jax.random.uniform(kb, (cout,), jnp.float32, -bound, bound)
    return w.reshape(9, cin, cout), b


def init_rdb_params(key, nf, gc):
    keys = jax.random.split(key, 5)
    cins = [nf, nf + gc, nf + 2 * gc, nf + 3 * gc, nf + 4 * gc]
    couts = [gc, gc, gc, gc, nf]
    return [init_conv_params(k, ci, co, scale=0.1)
            for k, ci, co in zip(keys, cins, couts)]


def init_rrdbnet_params(key, in_nc, out_nc, nf, nb, gc):
    keys = jax.random.split(key, 6 + 3 * nb)
    params = {
        "conv_first": init_conv_params(keys[0], in_nc, nf),
        "trunk_conv": init_conv_params(keys[1], nf, nf),
        "upconv1": init_conv_params(keys[2], nf, nf),
        "upconv2": init_conv_params(keys[3], nf, nf),
        "HRconv": init_conv_params(keys[4], nf, nf),
        "conv_last": init_conv_params(keys[5], nf, out_nc),
        "rrdb": [],
    }
    for i in range(nb):
        k1, k2, k3 = keys[6 + 3 * i:9 + 3 * i]
        params["rrdb"].append({
            "rdb1": init_rdb_params(k1, nf, gc),
            "rdb2": init_rdb_params(k2, nf, gc),
            "rdb3": init_rdb_params(k3, nf, gc),
        })
    return params


# ----------------------------------------------------------------------------
# Forward pass (semantics of the PyTorch RRDBNet.forward, NCHW in/out).
# ----------------------------------------------------------------------------
def rrdbnet_forward(params, x_nchw):
    # TODO(synk): the PyTorch forward has a debug print(x.shape); omitted here.
    x = jnp.transpose(x_nchw, (0, 2, 3, 1)).astype(jnp.bfloat16)  # NCHW -> NHWC
    N, H, W, _ = x.shape

    fea_pf = conv3x3_pf(pad_flatten(x), H, W, *params["conv_first"],
                        pf_out=True)                       # (N, P, nf) bf16
    trunk = fea_pf
    for blk in params["rrdb"]:
        t_in = trunk
        trunk = rdb_pallas(trunk, blk["rdb1"], H, W)
        trunk = rdb_pallas(trunk, blk["rdb2"], H, W)
        trunk = rdb_pallas(trunk, blk["rdb3"], H, W, residual_pf=t_in)
    # trunk_conv with the fea + trunk residual fused in-kernel
    fea = q_to_nhwc(conv3x3_pf(trunk, H, W, *params["trunk_conv"],
                               residual_pf=fea_pf), H, W)

    fea = upsample2_nearest(fea)
    H2, W2 = 2 * H, 2 * W
    fea = q_to_nhwc(conv3x3_pf(pad_flatten(fea), H2, W2, *params["upconv1"],
                               lrelu=True), H2, W2)
    fea = upsample2_nearest(fea)
    H4, W4 = 2 * H2, 2 * W2
    fea = q_to_nhwc(conv3x3_pf(pad_flatten(fea), H4, W4, *params["upconv2"],
                               lrelu=True), H4, W4)
    hr_pf = conv3x3_pf(pad_flatten(fea), H4, W4, *params["HRconv"],
                       lrelu=True, pf_out=True)
    out = q_to_nhwc(conv3x3_pf(hr_pf, H4, W4, *params["conv_last"],
                               out_dtype=jnp.float32), H4, W4)
    return jnp.transpose(out, (0, 3, 1, 2))               # NHWC -> NCHW


# ----------------------------------------------------------------------------
# References for the self-checks.
# ----------------------------------------------------------------------------
def conv3x3_ref(x_nhwc, w9, b, *, lrelu=False):
    w = w9.reshape(3, 3, w9.shape[1], w9.shape[2])
    y = jax.lax.conv_general_dilated(
        x_nhwc, w, window_strides=(1, 1), padding="SAME",
        dimension_numbers=("NHWC", "HWIO", "NHWC"))
    y = y + b
    if lrelu:
        y = jnp.where(y >= 0, y, 0.2 * y)
    return y


def rdb_ref(x, convs):
    """f32 reference for the fused RDB, emulating bf16 weight/act storage."""
    bf = lambda v: v.astype(jnp.bfloat16).astype(jnp.float32)
    x1 = bf(conv3x3_ref(x, bf(convs[0][0]), convs[0][1], lrelu=True))
    x2 = bf(conv3x3_ref(jnp.concatenate([x, x1], -1),
                        bf(convs[1][0]), convs[1][1], lrelu=True))
    x3 = bf(conv3x3_ref(jnp.concatenate([x, x1, x2], -1),
                        bf(convs[2][0]), convs[2][1], lrelu=True))
    x4 = bf(conv3x3_ref(jnp.concatenate([x, x1, x2, x3], -1),
                        bf(convs[3][0]), convs[3][1], lrelu=True))
    x5 = conv3x3_ref(jnp.concatenate([x, x1, x2, x3, x4], -1),
                     bf(convs[4][0]), convs[4][1])
    return x5 * 0.2 + x


if __name__ == "__main__":
    key = jax.random.PRNGKey(0)
    k_param, k_x, k_chk = jax.random.split(key, 3)

    # Small, deterministic config: in_nc=4, out_nc=3, nf=16, nb=2, gc=8
    in_nc, out_nc, nf, nb, gc = 4, 3, 16, 2, 8
    N, H, W = 2, 16, 16

    params = init_rrdbnet_params(k_param, in_nc, out_nc, nf, nb, gc)
    x = jax.random.normal(k_x, (N, in_nc, H, W), jnp.float32)  # NCHW input

    # --- self-check 1: generic conv kernel vs lax.conv (bf16 inputs, f32 acc)
    xc = jax.random.normal(k_chk, (N, H, W, nf), jnp.float32)
    xc_b = xc.astype(jnp.bfloat16)
    xc_f = xc_b.astype(jnp.float32)
    wt, bt = params["trunk_conv"]
    got = q_to_nhwc(conv3x3_pf(pad_flatten(xc_b), H, W, wt, bt, lrelu=True,
                               out_dtype=jnp.float32), H, W)
    want = conv3x3_ref(xc_f, wt.astype(jnp.bfloat16).astype(jnp.float32), bt,
                       lrelu=True)
    assert jnp.allclose(got, want, atol=2e-3, rtol=2e-3), "conv kernel mismatch"

    # --- self-check 2: fused RDB kernel vs composed reference
    convs0 = params["rrdb"][0]["rdb1"]
    got_rdb = pf_to_nhwc(rdb_pallas(pad_flatten(xc_b), convs0, H, W),
                         H, W).astype(jnp.float32)
    want_rdb = rdb_ref(xc_f, convs0)
    assert jnp.allclose(got_rdb, want_rdb, atol=5e-2, rtol=5e-2), \
        "fused RDB kernel mismatch"

    # --- full forward
    fwd = jax.jit(rrdbnet_forward)
    out = jax.block_until_ready(fwd(params, x))
    assert out.shape == (N, out_nc, 4 * H, 4 * W)
    assert bool(jnp.all(jnp.isfinite(out)))
    print("KERNEL_OK")
</pallas_src>

<mosaic_0001>
module attributes {stable_mosaic.version = 11 : i64} {
  func.func @kernel(%arg0: i32, %arg1: memref<1x331x16xbf16, #tpu.memory_space<vmem>>, %arg2: memref<9x16x16xbf16, #tpu.memory_space<vmem>>, %arg3: memref<1x16xf32, #tpu.memory_space<vmem>>, %arg4: memref<1x288x16xf32, #tpu.memory_space<vmem>>, %arg5: memref<288x16xf32, #tpu.memory_space<vmem>>) attributes {dimension_semantics = [#tpu.dimension_semantics<parallel>], iteration_bounds = array<i64: 2>, scalar_prefetch = 0 : i64, scratch_operands = 1 : i64, tpu.core_type = #tpu.core_type<tc>, window_params = [{transform_indices = @transform_0, window_bounds = array<i64: 1, 331, 16>}, {pipeline_mode = #tpu.pipeline_mode<synchronous>, transform_indices = @transform_1, window_bounds = array<i64: 9, 16, 16>}, {pipeline_mode = #tpu.pipeline_mode<synchronous>, transform_indices = @transform_2, window_bounds = array<i64: 1, 16>}, {transform_indices = @transform_3, window_bounds = array<i64: 1, 288, 16>}]} {
    %cst = arith.constant 0.000000e+00 : f32
    %0 = vector.broadcast %cst : f32 to vector<288x16xf32>
    %c0 = arith.constant 0 : index
    %c0_0 = arith.constant 0 : index
    %1 = vector.load %arg5[%c0, %c0_0] : memref<288x16xf32, #tpu.memory_space<vmem>>, vector<288x16xf32>
    tpu.vector_store %arg5[%c0, %c0_0], %0 {strides = array<i32>} : memref<288x16xf32, #tpu.memory_space<vmem>>, vector<288x16xf32>,
    %c0_1 = arith.constant 0 : index
    %c0_2 = arith.constant 0 : index
    %2 = vector.load %arg5[%c0_1, %c0_2] : memref<288x16xf32, #tpu.memory_space<vmem>>, vector<288x16xf32>
    %c0_3 = arith.constant 0 : index
    %c5 = arith.constant 5 : index
    %c0_4 = arith.constant 0 : index
    %3 = vector.load %arg1[%c0_3, %c5, %c0_4] : memref<1x331x16xbf16, #tpu.memory_space<vmem>>, vector<1x288x16xbf16>
    %4 = vector.shape_cast %3 : vector<1x288x16xbf16> to vector<288x16xbf16>
    %c0_5 = arith.constant 0 : index
    %c0_6 = arith.constant 0 : index
    %c0_7 = arith.constant 0 : index
    %5 = vector.load %arg2[%c0_5, %c0_6, %c0_7] : memref<9x16x16xbf16, #tpu.memory_space<vmem>>, vector<1x16x16xbf16>
    %6 = vector.shape_cast %5 : vector<1x16x16xbf16> to vector<16x16xbf16>
    %cst_8 = arith.constant dense<0.000000e+00> : vector<288x16xf32>
    %7 = tpu.matmul %4, %6, %cst_8 {dimension_numbers = #tpu.dot_dimension_numbers<[1], [0], [0], [1], [0, 0, 1, 1], [], []>} : vector<288x16xbf16>, vector<16x16xbf16>, vector<288x16xf32> -> vector<288x16xf32>
    %8 = arith.addf %2, %7 : vector<288x16xf32>
    %c0_9 = arith.constant 0 : index
    %c0_10 = arith.constant 0 : index
    %9 = vector.load %arg5[%c0_9, %c0_10] : memref<288x16xf32, #tpu.memory_space<vmem>>, vector<288x16xf32>
    tpu.vector_store %arg5[%c0_9, %c0_10], %8 {strides = array<i32>} : memref<288x16xf32, #tpu.memory_space<vmem>>, vector<288x16xf32>,
    %c0_11 = arith.constant 0 : index
    %c0_12 = arith.constant 0 : index
    %10 = vector.load %arg5[%c0_11, %c0_12] : memref<288x16xf32, #tpu.memory_space<vmem>>, vector<288x16xf32>
    %c0_13 = arith.constant 0 : index
    %c6 = arith.constant 6 : index
    %c0_14 = arith.constant 0 : index
    %11 = vector.load %arg1[%c0_13, %c6, %c0_14] : memref<1x331x16xbf16, #tpu.memory_space<vmem>>, vector<1x288x16xbf16>
    %12 = vector.shape_cast %11 : vector<1x288x16xbf16> to vector<288x16xbf16>
    %c1 = arith.constant 1 : index
    %c0_15 = arith.constant 0 : index
    %c0_16 = arith.constant 0 : index
    %13 = vector.load %arg2[%c1, %c0_15, %c0_16] : memref<9x16x16xbf16, #tpu.memory_space<vmem>>, vector<1x16x16xbf16>
    %14 = vector.shape_cast %13 : vector<1x16x16xbf16> to vector<16x16xbf16>
    %cst_17 = arith.constant dense<0.000000e+00> : vector<288x16xf32>
    %15 = tpu.matmul %12, %14, %cst_17 {dimension_numbers = #tpu.dot_dimension_numbers<[1], [0], [0], [1], [0, 0, 1, 1], [], []>} : vector<288x16xbf16>, vector<16x16xbf16>, vector<288x16xf32> -> vector<288x16xf32>
    %16 = arith.addf %10, %15 : vector<288x16xf32>
    %c0_18 = arith.constant 0 : index
    %c0_19 = arith.constant 0 : index
    %17 = vector.load %arg5[%c0_18, %c0_19] : memref<288x16xf32, #tpu.memory_space<vmem>>, vector<288x16xf32>
    tpu.vector_store %arg5[%c0_18, %c0_19], %16 {strides = array<i32>} : memref<288x16xf32, #tpu.memory_space<vmem>>, vector<288x16xf32>,
    %c0_20 = arith.constant 0 : index
    %c0_21 = arith.constant 0 : index
    %18 = vector.load %arg5[%c0_20, %c0_21] : memref<288x16xf32, #tpu.memory_space<vmem>>, vector<288x16xf32>
    %c0_22 = arith.constant 0 : index
    %c7 = arith.constant 7 : index
    %c0_23 = arith.constant 0 : index
    %19 = vector.load %arg1[%c0_22, %c7, %c0_23] : memref<1x331x16xbf16, #tpu.memory_space<vmem>>, vector<1x288x16xbf16>
    %20 = vector.shape_cast %19 : vector<1x288x16xbf16> to vector<288x16xbf16>
    %c2 = arith.constant 2 : index
    %c0_24 = arith.constant 0 : index
    %c0_25 = arith.constant 0 : index
    %21 = vector.load %arg2[%c2, %c0_24, %c0_25] : memref<9x16x16xbf16, #tpu.memory_space<vmem>>, vector<1x16x16xbf16>
    %22 = vector.shape_cast %21 : vector<1x16x16xbf16> to vector<16x16xbf16>
    %cst_26 = arith.constant dense<0.000000e+00> : vector<288x16xf32>
    %23 = tpu.matmul %20, %22, %cst_26 {dimension_numbers = #tpu.dot_dimension_numbers<[1], [0], [0], [1], [0, 0, 1, 1], [], []>} : vector<288x16xbf16>, vector<16x16xbf16>, vector<288x16xf32> -> vector<288x16xf32>
    %24 = arith.addf %18, %23 : vector<288x16xf32>
    %c0_27 = arith.constant 0 : index
    %c0_28 = arith.constant 0 : index
    %25 = vector.load %arg5[%c0_27, %c0_28] : memref<288x16xf32, #tpu.memory_space<vmem>>, vector<288x16xf32>
    tpu.vector_store %arg5[%c0_27, %c0_28], %24 {strides = array<i32>} : memref<288x16xf32, #tpu.memory_space<vmem>>, vector<288x16xf32>,
    %c0_29 = arith.constant 0 : index
    %c0_30 = arith.constant 0 : index
    %26 = vector.load %arg5[%c0_29, %c0_30] : memref<288x16xf32, #tpu.memory_space<vmem>>, vector<288x16xf32>
    %c0_31 = arith.constant 0 : index
    %c23 = arith.constant 23 : index
    %c0_32 = arith.constant 0 : index
    %27 = vector.load %arg1[%c0_31, %c23, %c0_32] : memref<1x331x16xbf16, #tpu.memory_space<vmem>>, vector<1x288x16xbf16>
    %28 = vector.shape_cast %27 : vector<1x288x16xbf16> to vector<288x16xbf16>
    %c3 = arith.constant 3 : index
    %c0_33 = arith.constant 0 : index
    %c0_34 = arith.constant 0 : index
    %29 = vector.load %arg2[%c3, %c0_33, %c0_34] : memref<9x16x16xbf16, #tpu.memory_space<vmem>>, vector<1x16x16xbf16>
    %30 = vector.shape_cast %29 : vector<1x16x16xbf16> to vector<16x16xbf16>
    %cst_35 = arith.constant dense<0.000000e+00> : vector<288x16xf32>
    %31 = tpu.matmul %28, %30, %cst_35 {dimension_numbers = #tpu.dot_dimension_numbers<[1], [0], [0], [1], [0, 0, 1, 1], [], []>} : vector<288x16xbf16>, vector<16x16xbf16>, vector<288x16xf32> -> vector<288x16xf32>
    %32 = arith.addf %26, %31 : vector<288x16xf32>
    %c0_36 = arith.constant 0 : index
    %c0_37 = arith.constant 0 : index
    %33 = vector.load %arg5[%c0_36, %c0_37] : memref<288x16xf32, #tpu.memory_space<vmem>>, vector<288x16xf32>
    tpu.vector_store %arg5[%c0_36, %c0_37], %32 {strides = array<i32>} : memref<288x16xf32, #tpu.memory_space<vmem>>, vector<288x16xf32>,
    %c0_38 = arith.constant 0 : index
    %c0_39 = arith.constant 0 : index
    %34 = vector.load %arg5[%c0_38, %c0_39] : memref<288x16xf32, #tpu.memory_space<vmem>>, vector<288x16xf32>
    %c0_40 = arith.constant 0 : index
    %c24 = arith.constant 24 : index
    %c0_41 = arith.constant 0 : index
    %35 = vector.load %arg1[%c0_40, %c24, %c0_41] : memref<1x331x16xbf16, #tpu.memory_space<vmem>>, vector<1x288x16xbf16>
    %36 = vector.shape_cast %35 : vector<1x288x16xbf16> to vector<288x16xbf16>
    %c4 = arith.constant 4 : index
    %c0_42 = arith.constant 0 : index
    %c0_43 = arith.constant 0 : index
    %37 = vector.load %arg2[%c4, %c0_42, %c0_43] : memref<9x16x16xbf16, #tpu.memory_space<vmem>>, vector<1x16x16xbf16>
    %38 = vector.shape_cast %37 : vector<1x16x16xbf16> to vector<16x16xbf16>
    %cst_44 = arith.constant dense<0.000000e+00> : vector<288x16xf32>
    %39 = tpu.matmul %36, %38, %cst_44 {dimension_numbers = #tpu.dot_dimension_numbers<[1], [0], [0], [1], [0, 0, 1, 1], [], []>} : vector<288x16xbf16>, vector<16x16xbf16>, vector<288x16xf32> -> vector<288x16xf32>
    %40 = arith.addf %34, %39 : vector<288x16xf32>
    %c0_45 = arith.constant 0 : index
    %c0_46 = arith.constant 0 : index
    %41 = vector.load %arg5[%c0_45, %c0_46] : memref<288x16xf32, #tpu.memory_space<vmem>>, vector<288x16xf32>
    tpu.vector_store %arg5[%c0_45, %c0_46], %40 {strides = array<i32>} : memref<288x16xf32, #tpu.memory_space<vmem>>, vector<288x16xf32>,
    %c0_47 = arith.constant 0 : index
    %c0_48 = arith.constant 0 : index
    %42 = vector.load %arg5[%c0_47, %c0_48] : memref<288x16xf32, #tpu.memory_space<vmem>>, vector<288x16xf32>
    %c0_49 = arith.constant 0 : index
    %c25 = arith.constant 25 : index
    %c0_50 = arith.constant 0 : index
    %43 = vector.load %arg1[%c0_49, %c25, %c0_50] : memref<1x331x16xbf16, #tpu.memory_space<vmem>>, vector<1x288x16xbf16>
    %44 = vector.shape_cast %43 : vector<1x288x16xbf16> to vector<288x16xbf16>
    %c5_51 = arith.constant 5 : index
    %c0_52 = arith.constant 0 : index
    %c0_53 = arith.constant 0 : index
    %45 = vector.load %arg2[%c5_51, %c0_52, %c0_53] : memref<9x16x16xbf16, #tpu.memory_space<vmem>>, vector<1x16x16xbf16>
    %46 = vector.shape_cast %45 : vector<1x16x16xbf16> to vector<16x16xbf16>
    %cst_54 = arith.constant dense<0.000000e+00> : vector<288x16xf32>
    %47 = tpu.matmul %44, %46, %cst_54 {dimension_numbers = #tpu.dot_dimension_numbers<[1], [0], [0], [1], [0, 0, 1, 1], [], []>} : vector<288x16xbf16>, vector<16x16xbf16>, vector<288x16xf32> -> vector<288x16xf32>
    %48 = arith.addf %42, %47 : vector<288x16xf32>
    %c0_55 = arith.constant 0 : index
    %c0_56 = arith.constant 0 : index
    %49 = vector.load %arg5[%c0_55, %c0_56] : memref<288x16xf32, #tpu.memory_space<vmem>>, vector<288x16xf32>
    tpu.vector_store %arg5[%c0_55, %c0_56], %48 {strides = array<i32>} : memref<288x16xf32, #tpu.memory_space<vmem>>, vector<288x16xf32>,
    %c0_57 = arith.constant 0 : index
    %c0_58 = arith.constant 0 : index
    %50 = vector.load %arg5[%c0_57, %c0_58] : memref<288x16xf32, #tpu.memory_space<vmem>>, vector<288x16xf32>
    %c0_59 = arith.constant 0 : index
    %c41 = arith.constant 41 : index
    %c0_60 = arith.constant 0 : index
    %51 = vector.load %arg1[%c0_59, %c41, %c0_60] : memref<1x331x16xbf16, #tpu.memory_space<vmem>>, vector<1x288x16xbf16>
    %52 = vector.shape_cast %51 : vector<1x288x16xbf16> to vector<288x16xbf16>
    %c6_61 = arith.constant 6 : index
    %c0_62 = arith.constant 0 : index
    %c0_63 = arith.constant 0 : index
    %53 = vector.load %arg2[%c6_61, %c0_62, %c0_63] : memref<9x16x16xbf16, #tpu.memory_space<vmem>>, vector<1x16x16xbf16>
    %54 = vector.shape_cast %53 : vector<1x16x16xbf16> to vector<16x16xbf16>
    %cst_64 = arith.constant dense<0.000000e+00> : vector<288x16xf32>
    %55 = tpu.matmul %52, %54, %cst_64 {dimension_numbers = #tpu.dot_dimension_numbers<[1], [0], [0], [1], [0, 0, 1, 1], [], []>} : vector<288x16xbf16>, vector<16x16xbf16>, vector<288x16xf32> -> vector<288x16xf32>
    %56 = arith.addf %50, %55 : vector<288x16xf32>
    %c0_65 = arith.constant 0 : index
    %c0_66 = arith.constant 0 : index
    %57 = vector.load %arg5[%c0_65, %c0_66] : memref<288x16xf32, #tpu.memory_space<vmem>>, vector<288x16xf32>
    tpu.vector_store %arg5[%c0_65, %c0_66], %56 {strides = array<i32>} : memref<288x16xf32, #tpu.memory_space<vmem>>, vector<288x16xf32>,
    %c0_67 = arith.constant 0 : index
    %c0_68 = arith.constant 0 : index
    %58 = vector.load %arg5[%c0_67, %c0_68] : memref<288x16xf32, #tpu.memory_space<vmem>>, vector<288x16xf32>
    %c0_69 = arith.constant 0 : index
    %c42 = arith.constant 42 : index
    %c0_70 = arith.constant 0 : index
    %59 = vector.load %arg1[%c0_69, %c42, %c0_70] : memref<1x331x16xbf16, #tpu.memory_space<vmem>>, vector<1x288x16xbf16>
    %60 = vector.shape_cast %59 : vector<1x288x16xbf16> to vector<288x16xbf16>
    %c7_71 = arith.constant 7 : index
    %c0_72 = arith.constant 0 : index
    %c0_73 = arith.constant 0 : index
    %61 = vector.load %arg2[%c7_71, %c0_72, %c0_73] : memref<9x16x16xbf16, #tpu.memory_space<vmem>>, vector<1x16x16xbf16>
    %62 = vector.shape_cast %61 : vector<1x16x16xbf16> to vector<16x16xbf16>
    %cst_74 = arith.constant dense<0.000000e+00> : vector<288x16xf32>
    %63 = tpu.matmul %60, %62, %cst_74 {dimension_numbers = #tpu.dot_dimension_numbers<[1], [0], [0], [1], [0, 0, 1, 1], [], []>} : vector<288x16xbf16>, vector<16x16xbf16>, vector<288x16xf32> -> vector<288x16xf32>
    %64 = arith.addf %58, %63 : vector<288x16xf32>
    %c0_75 = arith.constant 0 : index
    %c0_76 = arith.constant 0 : index
    %65 = vector.load %arg5[%c0_75, %c0_76] : memref<288x16xf32, #tpu.memory_space<vmem>>, vector<288x16xf32>
    tpu.vector_store %arg5[%c0_75, %c0_76], %64 {strides = array<i32>} : memref<288x16xf32, #tpu.memory_space<vmem>>, vector<288x16xf32>,
    %c0_77 = arith.constant 0 : index
    %c0_78 = arith.constant 0 : index
    %66 = vector.load %arg5[%c0_77, %c0_78] : memref<288x16xf32, #tpu.memory_space<vmem>>, vector<288x16xf32>
    %c0_79 = arith.constant 0 : index
    %c43 = arith.constant 43 : index
    %c0_80 = arith.constant 0 : index
    %67 = vector.load %arg1[%c0_79, %c43, %c0_80] : memref<1x331x16xbf16, #tpu.memory_space<vmem>>, vector<1x288x16xbf16>
    %68 = vector.shape_cast %67 : vector<1x288x16xbf16> to vector<288x16xbf16>
    %c8 = arith.constant 8 : index
    %c0_81 = arith.constant 0 : index
    %c0_82 = arith.constant 0 : index
    %69 = vector.load %arg2[%c8, %c0_81, %c0_82] : memref<9x16x16xbf16, #tpu.memory_space<vmem>>, vector<1x16x16xbf16>
    %70 = vector.shape_cast %69 : vector<1x16x16xbf16> to vector<16x16xbf16>
    %cst_83 = arith.constant dense<0.000000e+00> : vector<288x16xf32>
    %71 = tpu.matmul %68, %70, %cst_83 {dimension_numbers = #tpu.dot_dimension_numbers<[1], [0], [0], [1], [0, 0, 1, 1], [], []>} : vector<288x16xbf16>, vector<16x16xbf16>, vector<288x16xf32> -> vector<288x16xf32>
    %72 = arith.addf %66, %71 : vector<288x16xf32>
    %c0_84 = arith.constant 0 : index
    %c0_85 = arith.constant 0 : index
    %73 = vector.load %arg5[%c0_84, %c0_85] : memref<288x16xf32, #tpu.memory_space<vmem>>, vector<288x16xf32>
    tpu.vector_store %arg5[%c0_84, %c0_85], %72 {strides = array<i32>} : memref<288x16xf32, #tpu.memory_space<vmem>>, vector<288x16xf32>,
    %c0_86 = arith.constant 0 : index
    %c0_87 = arith.constant 0 : index
    %74 = vector.load %arg5[%c0_86, %c0_87] : memref<288x16xf32, #tpu.memory_space<vmem>>, vector<288x16xf32>
    %c0_88 = arith.constant 0 : index
    %c0_89 = arith.constant 0 : index
    %75 = vector.load %arg3[%c0_88, %c0_89] : memref<1x16xf32, #tpu.memory_space<vmem>>, vector<1x16xf32>
    %76 = vector.broadcast %75 : vector<1x16xf32> to vector<288x16xf32>
    %77 = arith.addf %74, %76 : vector<288x16xf32>
    %cst_90 = arith.constant 0.000000e+00 : f32
    %78 = vector.broadcast %cst_90 : f32 to vector<288x16xf32>
    %79 = arith.cmpf oge, %77, %78 : vector<288x16xf32>
    %cst_91 = arith.constant 2.000000e-01 : f32
    %80 = vector.broadcast %cst_91 : f32 to vector<288x16xf32>
    %81 = arith.mulf %80, %77 : vector<288x16xf32>
    %82 = arith.select %79, %77, %81 : vector<288x16xi1>, vector<288x16xf32>
    %c0_92 = arith.constant 0 : index
    %c0_93 = arith.constant 0 : index
    %c0_94 = arith.constant 0 : index
    %83 = vector.load %arg4[%c0_92, %c0_93, %c0_94] : memref<1x288x16xf32, #tpu.memory_space<vmem>>, vector<1x288x16xf32>
    %84 = vector.shape_cast %83 : vector<1x288x16xf32> to vector<288x16xf32>
    %85 = vector.shape_cast %82 : vector<288x16xf32> to vector<1x288x16xf32>
    tpu.vector_store %arg4[%c0_92, %c0_93, %c0_94], %85 {strides = array<i32>} : memref<1x288x16xf32, #tpu.memory_space<vmem>>, vector<1x288x16xf32>,
    return
  }
  func.func @transform_0(%arg0: i32) -> (i32, i32, i32) {
    %c0_i32 = arith.constant 0 : i32
    %c0_i32_0 = arith.constant 0 : i32
    %c0_i32_1 = arith.constant 0 : i32
    return %arg0, %c0_i32, %c0_i32_0 : i32, i32, i32
  }
  func.func @transform_1(%arg0: i32) -> (i32, i32, i32) {
    %c0_i32 = arith.constant 0 : i32
    %c0_i32_0 = arith.constant 0 : i32
    %c0_i32_1 = arith.constant 0 : i32
    %c0_i32_2 = arith.constant 0 : i32
    return %c0_i32, %c0_i32_0, %c0_i32_1 : i32, i32, i32
  }
  func.func @transform_2(%arg0: i32) -> (i32, i32) {
    %c0_i32 = arith.constant 0 : i32
    %c0_i32_0 = arith.constant 0 : i32
    %c0_i32_1 = arith.constant 0 : i32
    return %c0_i32, %c0_i32_0 : i32, i32
  }
  func.func @transform_3(%arg0: i32) -> (i32, i32, i32) {
    %c0_i32 = arith.constant 0 : i32
    %c0_i32_0 = arith.constant 0 : i32
    %c0_i32_1 = arith.constant 0 : i32
    return %arg0, %c0_i32, %c0_i32_0 : i32, i32, i32
  }
}

</mosaic_0001>

<bundles_post_ra>
// kernel: tpu_custom_call.1
= control target key start
LH: loop header
LB: loop body
LE: loop exit
PB: predicated region body
PF: predicated region fallthrough
CT: control target
= control target key end

     0   :  { %s6222_s12 = smov 0   ;;  %s8174_s0 = inlined_call_operand.vmem [shape: bf16[2,331,16], index: 0, kind: input, shape index: {}]   ;;  %s8175_s1 = inlined_call_operand.vmem [shape: bf16[9,16,16], index: 1, kind: input, shape index: {}]   ;;  %s8176_s2 = inlined_call_operand.vmem [shape: f32[1,16], index: 2, kind: input, shape index: {}]   ;;  %s8177_s3 = inlined_call_operand.vmem [shape: f32[2,288,16], index: 3, kind: output, shape index: {}]  }
   0x1 LB: > { %s5135_s13 = sadd.s32 4294967295, %s6199_s12   ;;  %p5139_p0 = scmp.ge.s32.totalorder %s6199_s12, 1  ;;  %s6199_s12 = sphi %s6222_s12, %s13_s12  }
   0x2   : > { %p137_p1 = scmp.lt.s32.totalorder %s6199_s12, 3 }
   0x4   : > { %p138_p2 = pnand %p5139_p0, %p137_p1 }
   0x5   : > { %p161_p3 = scmp.lt.s32.totalorder (!%p138_p2), %s5135_s13, 1 }
   0x6   : > { %141 = sbr.rel (%p138_p2) target bundleno = 843 (0x34b), region = 32 }
   0xb   : > { %v6024_v0 = vld [vmem:[%s8175_s1] sm:$0xff]  ;;  %v6043_v1 = vld [vmem:[%s8175_s1 + $0x8] sm:$0xff]  ;;  %v6062_v2 = vld [vmem:[%s8175_s1 + $0x10] sm:$0xff]  ;;  %s8179_s13 = smov (!%p161_p3, %s5135_s13), 1  ;;  %vm377_vm0 = vsmask.f32 5376 }
   0xc   : > { %v6100_v3 = vld [vmem:[%s8175_s1 + $0x20] sm:$0xff]  ;;  %6177 = vmatpush.bf16.msra.mxu1 %v6024_v0  ;;  %6178 = vmatpush.bf16.msra.mxu2 %v6024_v0  ;;  %s6180_s22 = smul.u32 168, %s8179_s13  ;;  %vm172_vm1 = vcmask 130048   ;;  %v6081_v42 = vld [vmem:[%s8175_s1 + $0x18] sm:$0xff]  ;;  %vm1386_vm2 = vsmask.f32 4352 }
   0xd   : > { %615 = vmatpush.bf16.msra.mxu0 %v6024_v0  ;;  %6179 = vmatpush.bf16.msra.mxu3 %v6024_v0  ;;  %vm948_vm3 = vcmask 1044480   ;;  %vm4020_vm4 = vcmask 1046528   ;;  %vm2923_vm5 = vsmask.f32 7424  ;;  %vm4458_vm6 = vsmask.f32 6400 }
   0xe   : > { %s6248_s25 = scalar_lea.vmem %s8174_s0, %s6180_s22  ;;  %s6181_s11 = smul.u32 288, %s8179_s13 }
   0xf   : > { %v6011_v4 = vld [vmem:[%s6248_s25 + $0x28] sm:$0xff]  ;;  %v6012_v5 = vld [vmem:[%s6248_s25 + $0x30] sm:$0xff]  ;;  %v6017_v7 = vld [vmem:[%s6248_s25 + $0x58] sm:$0xff] }
  0x10   : > { %1053 = vmatpush.bf16.msrb.mxu1 %v6043_v1  ;;  %1624 = vmatpush.bf16.msrb.mxu2 %v6062_v2  ;;  %v6016_v6 = vld [vmem:[%s6248_s25 + $0x50] sm:$0xff]  ;;  %v423_v8 = vshrl.u32 %v6011_v4, 16  ;;  %v426_v9 = vshll.u32 %v6011_v4, 16  ;;  %v432_v10 = vshrl.u32 %v6012_v5, 16  ;;  %v435_v11 = vshll.u32 %v6012_v5, 16  ;;  %v6013_v26 = vld [vmem:[%s6248_s25 + $0x38] sm:$0xff]  ;;  %s7592_s15 = scalar_lea.vmem %s8177_s3, %s6181_s11 }
  0x11   : > { %2590 = vmatpush.bf16.msrb.mxu0 %v6100_v3  ;;  %v468_v12 = vshrl.u32 %v6016_v6, 16  ;;  %v471_v13 = vshll.u32 %v6016_v6, 16  ;;  %v477_v14 = vshrl.u32 %v6017_v7, 16  ;;  %v480_v15 = vshll.u32 %v6017_v7, 16  ;;  %v5144_v16 = vld [vmem:[%s6248_s25] sm:$0xc]  ;;  %2194 = vmatpush.bf16.msrb.mxu3 %v6081_v42 }
  0x12   : > { %v425_v17 = vrot.slane %v423_v8, 2  ;;  %v428_v18 = vrot.slane %v426_v9, 3  ;;  %v434_v19 = vrot.slane %v432_v10, 2  ;;  %v437_v20 = vrot.slane %v435_v11, 3  ;;  %v6006_v21 = vld [vmem:[%s6248_s25] sm:$0xf0] }
  0x13   : > { %v470_v22 = vrot.slane %v468_v12, 2  ;;  %v473_v23 = vrot.slane %v471_v13, 3  ;;  %v479_v24 = vrot.slane %v477_v14, 2  ;;  %v482_v25 = vrot.slane %v480_v15, 3  ;;  %v6007_v27 = vld [vmem:[%s6248_s25 + $0x8] sm:$0xff]  ;;  %v6018_v32 = vld [vmem:[%s6248_s25 + $0x60] sm:$0xff] }
  0x14   : > { %v6258_v28 = vor.u32 %v428_v18, %v425_v17  ;;  %v438_v29 = vor.u32 %v437_v20, %v434_v19  ;;  %v5145_v34 = vor.u32 %v6006_v21, %v5144_v16  ;;  %v441_v36 = vshrl.u32 %v6013_v26, 16  ;;  %v6021_v46 = vld [vmem:[%s6248_s25 + $0x78] sm:$0xff]  ;;  %v6008_v52 = vld [vmem:[%s6248_s25 + $0x10] sm:$0xff]  ;;  %v6022_v53 = vld [vmem:[%s6248_s25 + $0x80] sm:$0xff] }
  0x15   : > { %v6260_v30 = vor.u32 %v473_v23, %v470_v22  ;;  %v483_v31 = vor.u32 %v482_v25, %v479_v24  ;;  %v444_v37 = vshll.u32 %v6013_v26, 16  ;;  %v387_v38 = vshrl.u32 %v6007_v27, 16  ;;  %v6015_v56 = vld [vmem:[%s6248_s25 + $0x48] sm:$0xff]  ;;  %v6014_v12 = vld [vmem:[%s6248_s25 + $0x40] sm:$0xff] }
  0x16   : > { %v439_v33 = vsel %vm377_vm0, %v6258_v28, %v438_v29  ;;  %v379_v39 = vshrl.u32 %v5145_v34, 16  ;;  %v382_v40 = vshll.u32 %v5145_v34, 16  ;;  %v390_v41 = vshll.u32 %v6007_v27, 16  ;;  %v6019_v19 = vld [vmem:[%s6248_s25 + $0x68] sm:$0xff] }
  0x17   : > { %5223 = vmatmul.msk.bf16.vlgmr.msra.gmra.mxu1 %vm172_vm1, %v439_v33  ;;  %v484_v35 = vsel %vm377_vm0, %v6260_v30, %v483_v31  ;;  %v486_v43 = vshrl.u32 %v6018_v32, 16  ;;  %v489_v44 = vshll.u32 %v6018_v32, 16  ;;  %v389_v45 = vrot.slane %v387_v38, 2  ;;  %v6023_v20 = vld [vmem:[%s6248_s25 + $0x88] sm:$0xff] }
  0x18   : > { %5228 = vmatmul.msk.bf16.vlgmr.msra.gmra.mxu2 %vm172_vm1, %v484_v35  ;;  %v381_v47 = vrot.slane %v379_v39, 2  ;;  %v384_v48 = vrot.slane %v382_v40, 3  ;;  %v392_v49 = vrot.slane %v390_v41, 3  ;;  %v443_v50 = vrot.slane %v441_v36, 2  ;;  %v6009_v36 = vld [vmem:[%s6248_s25 + $0x18] sm:$0xff] }
  0x19   : > { %v446_v51 = vrot.slane %v444_v37, 3  ;;  %v488_v57 = vrot.slane %v486_v43, 2  ;;  %v491_v58 = vrot.slane %v489_v44, 3  ;;  %v513_v59 = vshrl.u32 %v6021_v46, 16 }
  0x1a   : > { %v385_v54 = vor.u32 %v384_v48, %v381_v47  ;;  %v393_v55 = vor.u32 %v392_v49, %v389_v45  ;;  %v516_v61 = vshll.u32 %v6021_v46, 16  ;;  %v396_v63 = vshrl.u32 %v6008_v52, 16  ;;  %v281_v45 = vld [vmem:[%s6248_s25 + $0x90] sm:$0x7] }
  0x1b   : > { %v447_v62 = vor.u32 %v446_v51, %v443_v50  ;;  %v515_v0 = vrot.slane %v513_v59, 2  ;;  %v522_v1 = vshrl.u32 %v6022_v53, 16  ;;  %v399_v2 = vshll.u32 %v6008_v52, 16  ;;  %v6020_v52 = vld [vmem:[%s6248_s25 + $0x70] sm:$0xff]  ;;  %v6010_v59 = vld [vmem:[%s6248_s25 + $0x20] sm:$0xff] }
  0x1c   : > { %v394_v60 = vsel %vm377_vm0, %v385_v54, %v393_v55  ;;  %v518_v3 = vrot.slane %v516_v61, 3  ;;  %v525_v4 = vshll.u32 %v6022_v53, 16  ;;  %v459_v5 = vshrl.u32 %v6015_v56, 16 }
  0x1d   : > { %5218 = vmatmul.msk.bf16.vlgmr.msra.gmra.mxu0 %vm172_vm1, %v394_v60  ;;  %v492_v6 = vor.u32 %v491_v58, %v488_v57  ;;  %v524_v7 = vrot.slane %v522_v1, 2  ;;  %v462_v8 = vshll.u32 %v6015_v56, 16  ;;  %v448_v14 = vsel %vm377_vm0, %v438_v29, %v447_v62 }
  0x1e   : > { %v6278_v9 = vor.u32 %v518_v3, %v515_v0  ;;  %v527_v10 = vrot.slane %v525_v4, 3  ;;  %v461_v11 = vrot.slane %v459_v5, 2  ;;  %v398_v15 = vrot.slane %v396_v63, 2 }
  0x1f   : > { %v464_v13 = vrot.slane %v462_v8, 3  ;;  %v401_v16 = vrot.slane %v399_v2, 3  ;;  %v493_v18 = vsel %vm377_vm0, %v483_v31, %v492_v6  ;;  %v450_v23 = vshrl.u32 %v6014_v12, 16 }
  0x20   : > { %v528_v17 = vor.u32 %v527_v10, %v524_v7  ;;  %v453_v24 = vshll.u32 %v6014_v12, 16  ;;  %v531_v26 = vshrl.u32 %v6023_v20, 16  ;;  %v534_v27 = vshll.u32 %v6023_v20, 16  ;;  %v5432_v10 = vld [vmem:[%s6248_s25 + $0x8] sm:$0x8] }
  0x21   : > { %v465_v22 = vor.u32 %v464_v13, %v461_v11  ;;  %v402_v25 = vor.u32 %v401_v16, %v398_v15  ;;  %v495_v31 = vshrl.u32 %v6019_v19, 16  ;;  %v498_v32 = vshll.u32 %v6019_v19, 16  ;;  %v6063_v11 = vld [vmem:[%s6248_s25 + $0x8] sm:$0xf0]  ;;  %v6064_v13 = vld [vmem:[%s6248_s25 + $0x10] sm:$0xff] }
  0x22   : > { %v529_v21 = vsel %vm377_vm0, %v6278_v9, %v528_v17  ;;  %v452_v33 = vrot.slane %v450_v23, 2  ;;  %v455_v34 = vrot.slane %v453_v24, 3  ;;  %v533_v37 = vrot.slane %v531_v26, 2  ;;  %v6157_v23 = vld [vmem:[%s8175_s1 + $0x38] sm:$0xff] }
  0x23   : > { %5233 = vmatmul.msk.bf16.vlgmr.msra.gmra.mxu3 %vm172_vm1, %v529_v21  ;;  %v6292_v29 = vsel %vm377_vm0, %v465_v22, %v6260_v30  ;;  %v403_v35 = vsel %vm377_vm0, %v393_v55, %v402_v25  ;;  %v536_v38 = vrot.slane %v534_v27, 3  ;;  %v497_v39 = vrot.slane %v495_v31, 2 }
  0x24   : > { %v500_v40 = vrot.slane %v498_v32, 3  ;;  %v456_v41 = vor.u32 %v455_v34, %v452_v33  ;;  %v405_v42 = vshrl.u32 %v6009_v36, 16  ;;  %v408_v43 = vshll.u32 %v6009_v36, 16  ;;  %4125 = vmatpush.bf16.msra.mxu3 %v6157_v23  ;;  %v5336_v33 = vld [vmem:[%s6248_s25] sm:$0x8] }
  0x25   : > { %v537_v30 = vor.u32 %v536_v38, %v533_v37  ;;  %v357_v46 = vunpack.c.l.b16 %v281_v45  ;;  %v504_v57 = vshrl.u32 %v6020_v52, 16  ;;  %v507_v58 = vshll.u32 %v6020_v52, 16  ;;  %v6044_v34 = vld [vmem:[%s6248_s25] sm:$0xf0]  ;;  %v6045_v37 = vld [vmem:[%s6248_s25 + $0x8] sm:$0xff] }
  0x26   : > { %v501_v44 = vor.u32 %v500_v40, %v497_v39  ;;  %v457_v47 = vsel %vm377_vm0, %v447_v62, %v456_v41  ;;  %v407_v48 = vrot.slane %v405_v42, 2  ;;  %v410_v49 = vrot.slane %v408_v43, 3  ;;  %v6065_v39 = vld [vmem:[%s6248_s25 + $0x18] sm:$0xff]  ;;  %v5240_v40 = vld [vmem:[%s6248_s25] sm:$0x8] }
  0x27   : > { %5224 = vmatmul.msk.bf16.gmra.mxu1 %vm172_vm1, %v448_v14  ;;  %v538_v50 = vsel %vm377_vm0, %v528_v17, %v537_v30  ;;  %v376_v53 = vpack.c.b16 %v357_v46, %v357_v46  ;;  %v506_v63 = vrot.slane %v504_v57, 2  ;;  %v509_v0 = vrot.slane %v507_v58, 3  ;;  %v6119_v17 = vld [vmem:[%s8175_s1 + $0x28] sm:$0xff]  ;;  %v6176_v43 = vld [vmem:[%s8175_s1 + $0x40] sm:$0xff] }
  0x28   : > { %5229 = vmatmul.msk.bf16.gmra.mxu2 %vm172_vm1, %v493_v18  ;;  %v502_v51 = vsel %vm377_vm0, %v492_v6, %v501_v44  ;;  %v411_v54 = vor.u32 %v410_v49, %v407_v48  ;;  %v414_v1 = vshrl.u32 %v6010_v59, 16  ;;  %v417_v2 = vshll.u32 %v6010_v59, 16  ;;  %v6138_v18 = vld [vmem:[%s8175_s1 + $0x30] sm:$0xff]  ;;  %3139 = vmatpush.bf16.msra.mxu1 %v6119_v17 }
  0x29   : > { %v540_v55 = vshrl.u32 %v376_v53, 16  ;;  %v543_v56 = vshll.u32 %v376_v53, 16  ;;  %v510_v4 = vor.u32 %v509_v0, %v506_v63  ;;  %v466_v7 = vsel %vm377_vm0, %v456_v41, %v465_v22  ;;  %3687 = vmatpush.bf16.msra.mxu2 %v6138_v18  ;;  %4696 = vmatpush.bf16.msra.mxu0 %v6176_v43  ;;  %v6066_v63 = vld [vmem:[%s6248_s25 + $0x20] sm:$0xff]  ;;  %v6047_v18 = vld [vmem:[%s6248_s25 + $0x18] sm:$0xff] }
  0x2a   : > { %v412_v60 = vsel %vm377_vm0, %v402_v25, %v411_v54  ;;  %v416_v5 = vrot.slane %v414_v1, 2  ;;  %v419_v6 = vrot.slane %v417_v2, 3  ;;  %v5433_v14 = vor.u32 %v6063_v11, %v5432_v10 }
  0x2b   : > { %v542_v61 = vrot.slane %v540_v55, 2  ;;  %v545_v62 = vrot.slane %v543_v56, 3  ;;  %v511_v12 = vsel %vm377_vm0, %v501_v44, %v510_v4  ;;  %v1966_v21 = vshrl.u32 %v6064_v13, 16 }
  0x2c   : > { %v420_v15 = vor.u32 %v419_v6, %v416_v5  ;;  %v1958_v16 = vshrl.u32 %v5433_v14, 16  ;;  %v1961_v20 = vshll.u32 %v5433_v14, 16  ;;  %v1969_v22 = vshll.u32 %v6064_v13, 16  ;;  %v6082_v5 = vld [vmem:[%s6248_s25 + $0xc] sm:$0xff] }
  0x2d   : > { %5219 = vmatmul.msk.bf16.gmra.mxu0 %vm172_vm1, %v403_v35  ;;  %v546_v3 = vor.u32 %v545_v62, %v542_v61  ;;  %v1968_v27 = vrot.slane %v1966_v21, 3  ;;  %v520_v36 = vsel %vm377_vm0, %v510_v4, %v6278_v9  ;;  %v5337_v38 = vor.u32 %v6044_v34, %v5336_v33  ;;  %v6046_v62 = vld [vmem:[%s6248_s25 + $0x10] sm:$0xff] }
  0x2e   : > { %v430_v19 = vsel %vm377_vm0, %v420_v15, %v6258_v28  ;;  %v421_v24 = vsel %vm377_vm0, %v411_v54, %v420_v15  ;;  %v1960_v25 = vrot.slane %v1958_v16, 3  ;;  %v1963_v26 = vrot.slane %v1961_v20, 4  ;;  %v6027_v6 = vld [vmem:[%s6248_s25 + $0x10] sm:$0xff] }
  0x2f   : > { %v547_v8 = vsel %vm377_vm0, %v537_v30, %v546_v3  ;;  %v1971_v28 = vrot.slane %v1969_v22, 4  ;;  %v1975_v41 = vshrl.u32 %v6065_v39, 16  ;;  %v1978_v42 = vshll.u32 %v6065_v39, 16  ;;  %v6025_v30 = vld [vmem:[%s6248_s25] sm:$0xf0]  ;;  %v6068_v39 = vld [vmem:[%s6248_s25 + $0x30] sm:$0xff] }
  0x30   : > { %v1964_v31 = vor.u32 %v1963_v26, %v1960_v25  ;;  %v1388_v9 = vshrl.u32 %v5337_v38, 16  ;;  %v1391_v44 = vshll.u32 %v5337_v38, 16  ;;  %v1396_v45 = vshrl.u32 %v6045_v37, 16  ;;  %v6028_v25 = vld [vmem:[%s6248_s25 + $0x18] sm:$0xff]  ;;  %v6048_v38 = vld [vmem:[%s6248_s25 + $0x20] sm:$0xff] }
  0x31   : > { %v1972_v32 = vor.u32 %v1971_v28, %v1968_v27  ;;  %v1399_v46 = vshll.u32 %v6045_v37, 16  ;;  %v5241_v48 = vor.u32 %v6025_v30, %v5240_v40  ;;  %v1980_v49 = vrot.slane %v1978_v42, 4  ;;  %v6084_v30 = vld [vmem:[%s6248_s25 + $0x1c] sm:$0xff] }
  0x32   : > { %v1398_v52 = vrot.slane %v1396_v45, 3  ;;  %v1984_v0 = vshrl.u32 %v6066_v63, 16  ;;  %v1987_v1 = vshll.u32 %v6066_v63, 16  ;;  %v1405_v2 = vshrl.u32 %v6046_v62, 16 }
  0x33   : > { %5234 = vmatmul.msk.bf16.gmra.mxu3 %vm172_vm1, %v538_v50  ;;  %v1973_v35 = vsel %vm1386_vm2, %v1964_v31, %v1972_v32  ;;  %v1390_v50 = vrot.slane %v1388_v9, 3  ;;  %v1401_v53 = vrot.slane %v1399_v46, 4  ;;  %v949_v54 = vrot.slane %v5241_v48, 3  ;;  %v6029_v9 = vld [vmem:[%s6248_s25 + $0x20] sm:$0xff] }
  0x34   : > { %v1408_v3 = vshll.u32 %v6046_v62, 16  ;;  %v6201_v4 = vmov 0.0   ;;  %v1407_v10 = vrot.slane %v1405_v2, 3  ;;  %v1414_v22 = vshrl.u32 %v6047_v18, 16  ;;  %v6085_v2 = vld [vmem:[%s6248_s25 + $0x24] sm:$0xff] }
  0x35   : > { %v1402_v58 = vor.u32 %v1401_v53, %v1398_v52  ;;  %183 = vst.msk [vmem:[#allocation2 + $0x50] sm:$0xff] %vm172_vm1, %v6201_v4  ;;  %v1417_v23 = vshll.u32 %v6047_v18, 16  ;;  %v2002_v40 = vshrl.u32 %v6068_v39, 16  ;;  %v1423_v42 = vshrl.u32 %v6048_v38, 16 }
  0x36   : > { %173 = vst.msk [vmem:[#allocation2] sm:$0xff] %vm172_vm1, %v6201_v4  ;;  %v1410_v11 = vrot.slane %v1408_v3, 4  ;;  %v1416_v28 = vrot.slane %v1414_v22, 3  ;;  %v1426_v43 = vshll.u32 %v6048_v38, 16  ;;  %v956_v48 = vrot.slane %v6029_v9, 3 }
  0x37   : > { %5225 = vmatmul.msk.bf16.gmra.mxu1 %vm172_vm1, %v457_v47  ;;  %v6026_v47 = vld [vmem:[%s6248_s25 + $0x8] sm:$0xff]  ;;  %174 = vst.msk [vmem:[#allocation2 + $0x8] sm:$0xff] %vm172_vm1, %v6201_v4  ;;  %v1419_v31 = vrot.slane %v1417_v23, 4  ;;  %v1425_v46 = vrot.slane %v1423_v42, 3 }
  0x38   : > { %5230 = vmatmul.msk.bf16.gmra.mxu2 %vm172_vm1, %v502_v51  ;;  %v1393_v51 = vrot.slane %v1391_v44, 4  ;;  %v950_v55 = vrot.slane %v6026_v47, 3  ;;  %175 = vst.msk [vmem:[#allocation2 + $0x10] sm:$0xff] %vm172_vm1, %v6201_v4  ;;  %v1411_v14 = vor.u32 %v1410_v11, %v1407_v10  ;;  %v2004_v44 = vrot.slane %v2002_v40, 3 }
  0x39   : > { %176 = vst.msk [vmem:[#allocation2 + $0x18] sm:$0xff] %vm172_vm1, %v6201_v4  ;;  %v1420_v34 = vor.u32 %v1419_v31, %v1416_v28  ;;  %v1428_v47 = vrot.slane %v1426_v43, 4  ;;  %v6050_v31 = vld [vmem:[%s6248_s25 + $0x30] sm:$0xff] }
  0x3a   : > { %v1394_v57 = vor.u32 %v1393_v51, %v1390_v50  ;;  %v951_v59 = vsel %vm948_vm3, %v949_v54, %v950_v55  ;;  %177 = vst.msk [vmem:[#allocation2 + $0x20] sm:$0xff] %vm172_vm1, %v6201_v4  ;;  %v1412_v17 = vsel %vm1386_vm2, %v1402_v58, %v1411_v14  ;;  %v1444_v38 = vshll.u32 %v6050_v31, 16  ;;  %v6086_v43 = vld [vmem:[%s6248_s25 + $0x2c] sm:$0xff] }
  0x3b   : > { %178 = vst.msk [vmem:[#allocation2 + $0x28] sm:$0xff] %vm172_vm1, %v6201_v4  ;;  %v1421_v37 = vsel %vm1386_vm2, %v1411_v14, %v1420_v34 }
  0x3c   : > { %v1403_v61 = vsel %vm1386_vm2, %v1394_v57, %v1402_v58  ;;  %179 = vst.msk [vmem:[#allocation2 + $0x30] sm:$0xff] %vm172_vm1, %v6201_v4  ;;  %v219_v50 = vld [vmem:[#allocation2 + $0x50] sm:$0xff]  ;;  %v6069_v57 = vld [vmem:[%s6248_s25 + $0x38] sm:$0xff] }
  0x3d   : > { %5220 = vmatmul.msk.bf16.gmra.mxu0 %vm172_vm1, %v412_v60  ;;  %180 = vst.msk [vmem:[#allocation2 + $0x38] sm:$0xff] %vm172_vm1, %v6201_v4  ;;  %v2011_v58 = vshrl.u32 %v6069_v57, 16 }
  0x3e   : > { %181 = vst.msk [vmem:[#allocation2 + $0x40] sm:$0xff] %vm172_vm1, %v6201_v4 }
  0x3f   : > { %182 = vst.msk [vmem:[#allocation2 + $0x48] sm:$0xff] %vm172_vm1, %v6201_v4  ;;  %v211_v40 = vld [vmem:[#allocation2 + $0x10] sm:$0xff] }
  0x40   : > { %184 = vst.msk [vmem:[#allocation2 + $0x58] sm:$0xff] %vm172_vm1, %v6201_v4 }
  0x41   : > { %185 = vst.msk [vmem:[#allocation2 + $0x60] sm:$0xff] %vm172_vm1, %v6201_v4 }
  0x42   : > { %186 = vst.msk [vmem:[#allocation2 + $0x68] sm:$0xff] %vm172_vm1, %v6201_v4 }
  0x43   : > { %5235 = vmatmul.msk.bf16.gmra.mxu3 %vm172_vm1, %v547_v8  ;;  %v1989_v8 = vrot.slane %v1987_v1, 4  ;;  %187 = vst.msk [vmem:[#allocation2 + $0x70] sm:$0xff] %vm172_vm1, %v6201_v4 }
  0x44   : > { %188 = vst.msk [vmem:[#allocation2 + $0x78] sm:$0xff] %vm172_vm1, %v6201_v4 }
  0x45   : > { %189 = vst.msk [vmem:[#allocation2 + $0x80] sm:$0xff] %vm172_vm1, %v6201_v4 }
  0x46   : > { %190 = vst.msk [vmem:[#allocation2 + $0x88] sm:$0xff] %vm172_vm1, %v6201_v4 }
  0x47   : > { %5226 = vmatmul.msk.bf16.gmra.mxu1 %vm172_vm1, %v466_v7  ;;  %v1986_v7 = vrot.slane %v1984_v0, 3  ;;  %191 = vst.msk [vmem:[#allocation2 + $0x90] sm:$0xff] %vm172_vm1, %v6201_v4  ;;  %v220_v63 = vld [vmem:[#allocation2 + $0x58] sm:$0xff]  ;;  %v209_v0 = vld [vmem:[#allocation2] sm:$0xff] }
  0x48   : > { %5231 = vmatmul.msk.bf16.gmra.mxu2 %vm172_vm1, %v511_v12  ;;  %v952_v12 = vrot.slane %v6027_v6, 3  ;;  %192 = vst.msk [vmem:[#allocation2 + $0x98] sm:$0xff] %vm172_vm1, %v6201_v4  ;;  %v221_v18 = vld [vmem:[#allocation2 + $0x60] sm:$0xff] }
  0x49   : > { %v1990_v13 = vor.u32 %v1989_v8, %v1986_v7  ;;  %193 = vst.msk [vmem:[#allocation2 + $0xa0] sm:$0xff] %vm172_vm1, %v6201_v4  ;;  %v2013_v7 = vrot.slane %v2011_v58, 3  ;;  %v212_v58 = vld [vmem:[#allocation2 + $0x18] sm:$0xff] }
  0x4a   : > { %v953_v15 = vsel %vm948_vm3, %v950_v55, %v952_v12  ;;  %194 = vst.msk [vmem:[#allocation2 + $0xa8] sm:$0xff] %vm172_vm1, %v6201_v4 }
  0x4b   : > { %195 = vst.msk [vmem:[#allocation2 + $0xb0] sm:$0xff] %vm172_vm1, %v6201_v4 }
  0x4c   : > { %196 = vst.msk [vmem:[#allocation2 + $0xb8] sm:$0xff] %vm172_vm1, %v6201_v4 }
  0x4d   : > { %5221 = vmatmul.msk.bf16.gmra.mxu0 %vm172_vm1, %v421_v24  ;;  %v6083_v24 = vld [vmem:[%s6248_s25 + $0x14] sm:$0xff]  ;;  %197 = vst.msk [vmem:[#allocation2 + $0xc0] sm:$0xff] %vm172_vm1, %v6201_v4 }
  0x4e   : > { %198 = vst.msk [vmem:[#allocation2 + $0xc8] sm:$0xff] %vm172_vm1, %v6201_v4 }
  0x4f   : > { %199 = vst.msk [vmem:[#allocation2 + $0xd0] sm:$0xff] %vm172_vm1, %v6201_v4 }
  0x50   : > { %200 = vst.msk [vmem:[#allocation2 + $0xd8] sm:$0xff] %vm172_vm1, %v6201_v4 }
  0x51   : > { %201 = vst.msk [vmem:[#allocation2 + $0xe0] sm:$0xff] %vm172_vm1, %v6201_v4 }
  0x52   : > { %202 = vst.msk [vmem:[#allocation2 + $0xe8] sm:$0xff] %vm172_vm1, %v6201_v4 }
  0x53   : > { %5506 = vmatmul.msk.bf16.vlgmr.msrb.gmra.mxu3 %vm172_vm1, %v1973_v35  ;;  %203 = vst.msk [vmem:[#allocation2 + $0xf0] sm:$0xff] %vm172_vm1, %v6201_v4 }
  0x54   : > { %204 = vst.msk [vmem:[#allocation2 + $0xf8] sm:$0xff] %vm172_vm1, %v6201_v4 }
  0x55   : > { %205 = vst.msk [vmem:[#allocation2 + $0x100] sm:$0xff] %vm172_vm1, %v6201_v4 }
  0x56   : > { %206 = vst.msk [vmem:[#allocation2 + $0x108] sm:$0xff] %vm172_vm1, %v6201_v4 }
  0x57   : > { %5227 = vmatmul.msk.bf16.gmra.mxu1 %vm172_vm1, %v6292_v29  ;;  %v1977_v29 = vrot.slane %v1975_v41, 3  ;;  %v2005_v41 = vshll.u32 %v6068_v39, 16  ;;  %207 = vst.msk [vmem:[#allocation2 + $0x110] sm:$0xff] %vm172_vm1, %v6201_v4  ;;  %v222_v39 = vld [vmem:[#allocation2 + $0x68] sm:$0xff] }
  0x58   : > { %5232 = vmatmul.msk.bf16.gmra.mxu2 %vm172_vm1, %v520_v36  ;;  %208 = vst.msk [vmem:[#allocation2 + $0x118] sm:$0xff] %vm172_vm1, %v6201_v4 }
  0x59   : > { %v1981_v56 = vor.u32 %v1980_v49, %v1977_v29  ;;  %v2007_v45 = vrot.slane %v2005_v41, 4  ;;  %v1429_v49 = vor.u32 %v1428_v47, %v1425_v46 }
  0x5b   : > { %v1982_v60 = vsel %vm1386_vm2, %v1972_v32, %v1981_v56  ;;  %v1991_v16 = vsel %vm1386_vm2, %v1981_v56, %v1990_v13  ;;  %v954_v32 = vrot.slane %v6028_v25, 3  ;;  %v2008_v29 = vor.u32 %v2007_v45, %v2004_v44  ;;  %v6049_v56 = vld [vmem:[%s6248_s25 + $0x28] sm:$0xff]  ;;  %v6492_v45 = vld [vmem:[%s6248_s25 + $0x30] sm:$0xff] }
  0x5c   : > { %v1430_v55 = vsel %vm1386_vm2, %v1420_v34, %v1429_v49  ;;  %v1435_v62 = vshll.u32 %v6049_v56, 16 }
  0x5d   : > { %5222 = vmatmul.msk.bf16.gmra.mxu0 %vm172_vm1, %v430_v19  ;;  %v6067_v19 = vld [vmem:[%s6248_s25 + $0x28] sm:$0xff]  ;;  %v955_v35 = vsel %vm948_vm3, %v952_v12, %v954_v32  ;;  %v957_v52 = vsel %vm948_vm3, %v954_v32, %v956_v48  ;;  %v6070_v32 = vld [vmem:[%s6248_s25 + $0x40] sm:$0xff] }
  0x5e   : > { %v1993_v20 = vshrl.u32 %v6067_v19, 16  ;;  %v1996_v21 = vshll.u32 %v6067_v19, 16  ;;  %v1437_v12 = vrot.slane %v1435_v62, 4  ;;  %v210_v19 = vld [vmem:[#allocation2 + $0x8] sm:$0xff]  ;;  %v2020_v34 = vshrl.u32 %v6070_v32, 16 }
  0x60   : > { %v1995_v26 = vrot.slane %v1993_v20, 3  ;;  %v1998_v27 = vrot.slane %v1996_v21, 4  ;;  %v2022_v47 = vrot.slane %v2020_v34, 3  ;;  %v242_v34 = vld [vmem:[#allocation2 + $0x108] sm:$0xff] }
  0x62   : > { %v1999_v33 = vor.u32 %v1998_v27, %v1995_v26 }
  0x63   : > { %5507 = vmatmul.msk.bf16.gmra.mxu3 %vm172_vm1, %v1982_v60  ;;  %v229_v60 = vld [vmem:[#allocation2 + $0xa0] sm:$0xff] }
  0x64   : > { %v2000_v36 = vsel %vm1386_vm2, %v1990_v13, %v1999_v33  ;;  %v2009_v53 = vsel %vm1386_vm2, %v1999_v33, %v2008_v29  ;;  %v239_v33 = vld [vmem:[#allocation2 + $0xf0] sm:$0xff] }
  0x67   : > { %5314 = vmatmul.msk.bf16.vlgmr.msrb.gmra.mxu1 %vm172_vm1, %v951_v59  ;;  %v2014_v59 = vshll.u32 %v6069_v57, 16  ;;  %v223_v57 = vld [vmem:[#allocation2 + $0x70] sm:$0xff] }
  0x68   : > { %5410 = vmatmul.msk.bf16.vlgmr.msrb.gmra.mxu2 %vm172_vm1, %v1403_v61  ;;  %v1432_v61 = vshrl.u32 %v6049_v56, 16 }
  0x69   : > { %v2016_v8 = vrot.slane %v2014_v59, 4 }
  0x6a   : > { %v1434_v11 = vrot.slane %v1432_v61, 3 }
  0x6d   : > { %5602 = vmatmul.msk.bf16.vlgmr.msrb.gmra.mxu0 %vm172_vm1, %v6082_v5  ;;  %v6464_v5 = vld [vmem:[%s6248_s25 + $0x28] sm:$0xff] }
  0x6e   : > { %v958_v14 = vrot.slane %v6464_v5, 3  ;;  %v241_v5 = vld [vmem:[#allocation2 + $0x100] sm:$0xff] }
  0x70   : > { %v959_v23 = vsel %vm948_vm3, %v956_v48, %v958_v14 }
  0x73   : > { %5508 = vmatmul.msk.bf16.gmra.mxu3 %vm172_vm1, %v1991_v16  ;;  %v230_v16 = vld [vmem:[#allocation2 + $0xa8] sm:$0xff] }
  0x77   : > { %5315 = vmatmul.msk.bf16.gmra.mxu1 %vm172_vm1, %v953_v15  ;;  %v6471_v15 = vor.u32 %v2016_v8, %v2013_v7  ;;  %v6051_v7 = vld [vmem:[%s6248_s25 + $0x38] sm:$0xff]  ;;  %v6071_v8 = vld [vmem:[%s6248_s25 + $0x48] sm:$0xff] }
  0x78   : > { %5411 = vmatmul.msk.bf16.gmra.mxu2 %vm172_vm1, %v1412_v17  ;;  %v6473_v17 = vor.u32 %v1437_v12, %v1434_v11  ;;  %v2032_v11 = vshll.u32 %v6071_v8, 16  ;;  %v233_v12 = vld [vmem:[#allocation2 + $0xc0] sm:$0xff] }
  0x79   : > { %v2018_v25 = vsel %vm1386_vm2, %v2008_v29, %v6471_v15 }
  0x7a   : > { %v1439_v27 = vsel %vm1386_vm2, %v1429_v49, %v6473_v17 }
  0x7d   : > { %5603 = vmatmul.msk.bf16.gmra.mxu0 %vm172_vm1, %v6083_v24 }
  0x83   : > { %5509 = vmatmul.msk.bf16.gmra.mxu3 %vm172_vm1, %v2000_v36  ;;  %v231_v36 = vld [vmem:[#allocation2 + $0xb0] sm:$0xff] }
  0x87   : > { %5316 = vmatmul.msk.bf16.gmra.mxu1 %vm172_vm1, %v955_v35  ;;  %v2023_v35 = vshll.u32 %v6070_v32, 16 }
  0x88   : > { %5412 = vmatmul.msk.bf16.gmra.mxu2 %vm172_vm1, %v1421_v37  ;;  %v1441_v37 = vshrl.u32 %v6050_v31, 16 }
  0x89   : > { %v2025_v48 = vrot.slane %v2023_v35, 4 }
  0x8a   : > { %v1443_v49 = vrot.slane %v1441_v37, 3 }
  0x8d   : > { %5604 = vmatmul.msk.bf16.gmra.mxu0 %vm172_vm1, %v6084_v30 }
  0x93   : > { %5510 = vmatmul.msk.bf16.gmra.mxu3 %vm172_vm1, %v2009_v53  ;;  %v240_v53 = vld [vmem:[#allocation2 + $0xf8] sm:$0xff] }
  0x94   : > { %v642_v51 = vpop.f32.mrf.mxu1 }
  0x95   : > { %v717_v54 = vadd.f32 %v642_v51, %v219_v50  ;;  %v1446_v50 = vrot.slane %v1444_v38, 4  ;;  %v225_v38 = vld [vmem:[#allocation2 + $0x80] sm:$0xff] }
  0x97   : > { %753 = vst.msk [vmem:[#allocation2 + $0x50] sm:$0xff] %vm172_vm1, %v717_v54  ;;  %5317 = vmatmul.msk.bf16.gmra.mxu1 %vm172_vm1, %v957_v52  ;;  %v960_v52 = vrot.slane %v6492_v45, 3  ;;  %v6500_v54 = vor.u32 %v2025_v48, %v2022_v47  ;;  %v6502_v56 = vor.u32 %v1446_v50, %v1443_v49  ;;  %v6052_v49 = vld [vmem:[%s6248_s25 + $0x40] sm:$0xff]  ;;  %v6072_v50 = vld [vmem:[%s6248_s25 + $0x50] sm:$0xff] }
  0x98   : > { %5413 = vmatmul.msk.bf16.gmra.mxu2 %vm172_vm1, %v1430_v55  ;;  %v232_v55 = vld [vmem:[#allocation2 + $0xb8] sm:$0xff]  ;;  %v243_v45 = vld [vmem:[#allocation2 + $0x110] sm:$0xff] }
  0x9a   : > { %v617_v6 = vpop.f32.mrf.mxu0 }
  0x9b   : > { %v667_v1 = vpop.f32.mrf.mxu2  ;;  %v707_v13 = vadd.f32 %v617_v6, %v209_v0  ;;  %v961_v0 = vsel %vm948_vm3, %v958_v14, %v960_v52  ;;  %v1453_v14 = vshll.u32 %v6051_v7, 16 }
  0x9c   : > { %v727_v3 = vadd.f32 %v667_v1, %v229_v60  ;;  %v644_v4 = vpop.f32.mrf.mxu1 }
  0x9d   : > { %v718_v10 = vadd.f32 %v644_v4, %v220_v63  ;;  %5605 = vmatmul.msk.bf16.gmra.mxu0 %vm172_vm1, %v6085_v2  ;;  %743 = vst.msk [vmem:[#allocation2] sm:$0xff] %vm172_vm1, %v707_v13  ;;  %v2027_v2 = vsel %vm1386_vm2, %v6471_v15, %v6500_v54  ;;  %v1448_v4 = vsel %vm1386_vm2, %v6473_v17, %v6502_v56  ;;  %v1450_v13 = vshrl.u32 %v6051_v7, 16  ;;  %v224_v15 = vld [vmem:[#allocation2 + $0x78] sm:$0xff] }
  0x9e   : > { %763 = vst.msk [vmem:[#allocation2 + $0xa0] sm:$0xff] %vm172_vm1, %v727_v3  ;;  %v1455_v31 = vrot.slane %v1453_v14, 4  ;;  %v227_v14 = vld [vmem:[#allocation2 + $0x90] sm:$0xff] }
  0x9f   : > { %754 = vst.msk [vmem:[#allocation2 + $0x58] sm:$0xff] %vm172_vm1, %v718_v10  ;;  %v2029_v10 = vshrl.u32 %v6071_v8, 16 }
  0xa2   : > { %v619_v24 = vpop.f32.mrf.mxu0 }
  0xa3   : > { %v669_v20 = vpop.f32.mrf.mxu2  ;;  %v708_v28 = vadd.f32 %v619_v24, %v210_v19  ;;  %5511 = vmatmul.msk.bf16.gmra.mxu3 %vm172_vm1, %v2018_v25  ;;  %v6087_v19 = vld [vmem:[%s6248_s25 + $0x34] sm:$0xff]  ;;  %v2031_v25 = vrot.slane %v2029_v10, 3 }
  0xa4   : > { %v728_v21 = vadd.f32 %v669_v20, %v230_v16  ;;  %v647_v22 = vpop.f32.mrf.mxu1  ;;  %v213_v16 = vld [vmem:[#allocation2 + $0x20] sm:$0xff]  ;;  %v244_v10 = vld [vmem:[#allocation2 + $0x118] sm:$0xff] }
  0xa5   : > { %v719_v26 = vadd.f32 %v647_v22, %v221_v18  ;;  %744 = vst.msk [vmem:[#allocation2 + $0x8] sm:$0xff] %vm172_vm1, %v708_v28  ;;  %v1452_v28 = vrot.slane %v1450_v13, 3 }
  0xa6   : > { %764 = vst.msk [vmem:[#allocation2 + $0xa8] sm:$0xff] %vm172_vm1, %v728_v21  ;;  %v692_v41 = vpop.f32.mrf.mxu3 }
  0xa7   : > { %755 = vst.msk [vmem:[#allocation2 + $0x60] sm:$0xff] %vm172_vm1, %v719_v26  ;;  %5318 = vmatmul.msk.bf16.gmra.mxu1 %vm172_vm1, %v959_v23  ;;  %v737_v30 = vadd.f32 %v692_v41, %v239_v33  ;;  %v6526_v23 = vld [vmem:[%s6248_s25 + $0x38] sm:$0xff]  ;;  %v2034_v26 = vrot.slane %v2032_v11, 4  ;;  %v6536_v37 = vor.u32 %v1455_v31, %v1452_v28  ;;  %v6053_v28 = vld [vmem:[%s6248_s25 + $0x48] sm:$0xff] }
  0xa8   : > { %5414 = vmatmul.msk.bf16.gmra.mxu2 %vm172_vm1, %v1439_v27  ;;  %v962_v33 = vrot.slane %v6526_v23, 3  ;;  %v6073_v31 = vld [vmem:[%s6248_s25 + $0x58] sm:$0xff] }
  0xa9   : > { %773 = vst.msk [vmem:[#allocation2 + $0xf0] sm:$0xff] %vm172_vm1, %v737_v30  ;;  %v6534_v35 = vor.u32 %v2034_v26, %v2031_v25  ;;  %v1457_v48 = vsel %vm1386_vm2, %v6502_v56, %v6536_v37  ;;  %v226_v56 = vld [vmem:[#allocation2 + $0x88] sm:$0xff]  ;;  %v2047_v23 = vshrl.u32 %v6073_v31, 16 }
  0xaa   : > { %v622_v46 = vpop.f32.mrf.mxu0 }
  0xab   : > { %v672_v42 = vpop.f32.mrf.mxu2  ;;  %v709_v51 = vadd.f32 %v622_v46, %v211_v40  ;;  %v2036_v46 = vsel %vm1386_vm2, %v6500_v54, %v6534_v35  ;;  %v1459_v54 = vshrl.u32 %v6052_v49, 16 }
  0xac   : > { %v729_v9 = vadd.f32 %v672_v42, %v231_v36  ;;  %v649_v44 = vpop.f32.mrf.mxu1  ;;  %v234_v36 = vld [vmem:[#allocation2 + $0xc8] sm:$0xff] }
  0xad   : > { %v720_v29 = vadd.f32 %v649_v44, %v222_v39  ;;  %5606 = vmatmul.msk.bf16.gmra.mxu0 %vm172_vm1, %v6086_v43  ;;  %745 = vst.msk [vmem:[#allocation2 + $0x10] sm:$0xff] %vm172_vm1, %v709_v51  ;;  %v214_v39 = vld [vmem:[#allocation2 + $0x28] sm:$0xff]  ;;  %v2038_v51 = vshrl.u32 %v6072_v50, 16 }
  0xae   : > { %765 = vst.msk [vmem:[#allocation2 + $0xb0] sm:$0xff] %vm172_vm1, %v729_v9  ;;  %v694_v59 = vpop.f32.mrf.mxu3  ;;  %v963_v9 = vsel %vm948_vm3, %v960_v52, %v962_v33  ;;  %v2041_v52 = vshll.u32 %v6072_v50, 16 }
  0xaf   : > { %756 = vst.msk [vmem:[#allocation2 + $0x68] sm:$0xff] %vm172_vm1, %v720_v29  ;;  %v738_v61 = vadd.f32 %v694_v59, %v240_v53  ;;  %v235_v53 = vld [vmem:[#allocation2 + $0xd0] sm:$0xff] }
  0xb1   : > { %774 = vst.msk [vmem:[#allocation2 + $0xf8] sm:$0xff] %vm172_vm1, %v738_v61 }
  0xb2   : > { %v624_v1 = vpop.f32.mrf.mxu0 }
  0xb3   : > { %v674_v60 = vpop.f32.mrf.mxu2  ;;  %v710_v6 = vadd.f32 %v624_v1, %v212_v58  ;;  %5512 = vmatmul.msk.bf16.gmra.mxu3 %vm172_vm1, %v2027_v2  ;;  %v2040_v2 = vrot.slane %v2038_v51, 3 }
  0xb4   : > { %v730_v62 = vadd.f32 %v674_v60, %v232_v55  ;;  %v652_v63 = vpop.f32.mrf.mxu1  ;;  %v1462_v55 = vshll.u32 %v6052_v49, 16  ;;  %v6088_v60 = vld [vmem:[%s6248_s25 + $0x3c] sm:$0xff] }
  0xb5   : > { %v721_v3 = vadd.f32 %v652_v63, %v223_v57  ;;  %746 = vst.msk [vmem:[#allocation2 + $0x18] sm:$0xff] %vm172_vm1, %v710_v6  ;;  %v215_v57 = vld [vmem:[#allocation2 + $0x30] sm:$0xff]  ;;  %v1461_v6 = vrot.slane %v1459_v54, 3 }
  0xb6   : > { %766 = vst.msk [vmem:[#allocation2 + $0xb8] sm:$0xff] %vm172_vm1, %v730_v62  ;;  %v697_v17 = vpop.f32.mrf.mxu3  ;;  %v1464_v7 = vrot.slane %v1462_v55, 4 }
  0xb7   : > { %757 = vst.msk [vmem:[#allocation2 + $0x70] sm:$0xff] %vm172_vm1, %v721_v3  ;;  %5319 = vmatmul.msk.bf16.gmra.mxu1 %vm172_vm1, %v961_v0  ;;  %v739_v20 = vadd.f32 %v697_v17, %v241_v5  ;;  %v6560_v0 = vld [vmem:[%s6248_s25 + $0x40] sm:$0xff]  ;;  %v2043_v3 = vrot.slane %v2041_v52, 4  ;;  %v218_v52 = vld [vmem:[#allocation2 + $0x48] sm:$0xff] }
  0xb8   : > { %5415 = vmatmul.msk.bf16.gmra.mxu2 %vm172_vm1, %v1448_v4  ;;  %v964_v5 = vrot.slane %v6560_v0, 3  ;;  %v1465_v13 = vor.u32 %v1464_v7, %v1461_v6 }
  0xb9   : > { %775 = vst.msk [vmem:[#allocation2 + $0x100] sm:$0xff] %vm172_vm1, %v739_v20  ;;  %v2044_v11 = vor.u32 %v2043_v3, %v2040_v2  ;;  %v6074_v2 = vld [vmem:[%s6248_s25 + $0x60] sm:$0xff] }
  0xba   : > { %v627_v24 = vpop.f32.mrf.mxu0  ;;  %v1466_v26 = vsel %vm1386_vm2, %v6536_v37, %v1465_v13  ;;  %v217_v37 = vld [vmem:[#allocation2 + $0x40] sm:$0xff]  ;;  %v2056_v0 = vshrl.u32 %v6074_v2, 16  ;;  %v2059_v3 = vshll.u32 %v6074_v2, 16 }
  0xbb   : > { %v677_v18 = vpop.f32.mrf.mxu2  ;;  %v711_v32 = vadd.f32 %v627_v24, %v213_v16  ;;  %v2045_v24 = vsel %vm1386_vm2, %v6534_v35, %v2044_v11  ;;  %v1471_v35 = vshll.u32 %v6053_v28, 16 }
  0xbc   : > { %v731_v21 = vadd.f32 %v677_v18, %v233_v12  ;;  %v654_v22 = vpop.f32.mrf.mxu1  ;;  %v236_v12 = vld [vmem:[#allocation2 + $0xd8] sm:$0xff] }
  0xbd   : > { %v722_v27 = vadd.f32 %v654_v22, %v224_v15  ;;  %5607 = vmatmul.msk.bf16.gmra.mxu0 %vm172_vm1, %v6087_v19  ;;  %747 = vst.msk [vmem:[#allocation2 + $0x20] sm:$0xff] %vm172_vm1, %v711_v32  ;;  %v216_v15 = vld [vmem:[#allocation2 + $0x38] sm:$0xff]  ;;  %v2050_v32 = vshll.u32 %v6073_v31, 16 }
  0xbe   : > { %767 = vst.msk [vmem:[#allocation2 + $0xc0] sm:$0xff] %vm172_vm1, %v731_v21  ;;  %v699_v40 = vpop.f32.mrf.mxu3  ;;  %v965_v21 = vsel %vm948_vm3, %v962_v33, %v964_v5  ;;  %v237_v33 = vld [vmem:[#allocation2 + $0xe0] sm:$0xff] }
  0xbf   : > { %758 = vst.msk [vmem:[#allocation2 + $0x78] sm:$0xff] %vm172_vm1, %v722_v27  ;;  %v740_v42 = vadd.f32 %v699_v40, %v242_v34  ;;  %v1468_v34 = vshrl.u32 %v6053_v28, 16  ;;  %v6089_v40 = vld [vmem:[%s6248_s25 + $0x44] sm:$0xff] }
  0xc1   : > { %776 = vst.msk [vmem:[#allocation2 + $0x108] sm:$0xff] %vm172_vm1, %v740_v42 }
  0xc2   : > { %v629_v44 = vpop.f32.mrf.mxu0 }
  0xc3   : > { %v679_v41 = vpop.f32.mrf.mxu2  ;;  %v712_v29 = vadd.f32 %v629_v44, %v214_v39  ;;  %5513 = vmatmul.msk.bf16.gmra.mxu3 %vm172_vm1, %v2036_v46  ;;  %v2052_v44 = vrot.slane %v2050_v32, 4 }
  0xc4   : > { %v732_v43 = vadd.f32 %v679_v41, %v234_v36  ;;  %v657_v30 = vpop.f32.mrf.mxu1  ;;  %v228_v36 = vld [vmem:[#allocation2 + $0x98] sm:$0xff] }
  0xc5   : > { %v723_v47 = vadd.f32 %v657_v30, %v225_v38  ;;  %748 = vst.msk [vmem:[#allocation2 + $0x28] sm:$0xff] %vm172_vm1, %v712_v29 }
  0xc6   : > { %768 = vst.msk [vmem:[#allocation2 + $0xc8] sm:$0xff] %vm172_vm1, %v732_v43  ;;  %v702_v58 = vpop.f32.mrf.mxu3  ;;  %v6590_v43 = vld [vmem:[%s6248_s25 + $0x48] sm:$0xff] }
  0xc7   : > { %759 = vst.msk [vmem:[#allocation2 + $0x80] sm:$0xff] %vm172_vm1, %v723_v47  ;;  %5320 = vmatmul.msk.bf16.gmra.mxu1 %vm172_vm1, %v963_v9  ;;  %v741_v61 = vadd.f32 %v702_v58, %v243_v45  ;;  %v2049_v9 = vrot.slane %v2047_v23, 3  ;;  %v1470_v47 = vrot.slane %v1468_v34, 3  ;;  %v966_v49 = vrot.slane %v6590_v43, 3  ;;  %v238_v45 = vld [vmem:[#allocation2 + $0xe8] sm:$0xff] }
  0xc8   : > { %5416 = vmatmul.msk.bf16.gmra.mxu2 %vm172_vm1, %v1457_v48  ;;  %v1473_v48 = vrot.slane %v1471_v35, 4  ;;  %v6055_v35 = vld [vmem:[%s6248_s25 + $0x58] sm:$0xff] }
  0xc9   : > { %777 = vst.msk [vmem:[#allocation2 + $0x110] sm:$0xff] %vm172_vm1, %v741_v61  ;;  %v2053_v50 = vor.u32 %v2052_v44, %v2049_v9  ;;  %v967_v58 = vsel %vm948_vm3, %v964_v5, %v966_v49  ;;  %v6090_v5 = vld [vmem:[%s6248_s25 + $0x4c] sm:$0xff]  ;;  %v1489_v9 = vshll.u32 %v6055_v35, 16 }
  0xca   : > { %v632_v1 = vpop.f32.mrf.mxu0  ;;  %v1474_v51 = vor.u32 %v1473_v48, %v1470_v47  ;;  %v6091_v47 = vld [vmem:[%s6248_s25 + $0x54] sm:$0xff] }
  0xcb   : > { %v682_v59 = vpop.f32.mrf.mxu2  ;;  %v713_v8 = vadd.f32 %v632_v1, %v215_v57  ;;  %v6054_v1 = vld [vmem:[%s6248_s25 + $0x50] sm:$0xff]  ;;  %v782_v48 = vld [vmem:[#allocation2 + $0x18] sm:$0xff] }
  0xcc   : > { %v733_v62 = vadd.f32 %v682_v59, %v235_v53  ;;  %v659_v63 = vpop.f32.mrf.mxu1  ;;  %v1480_v6 = vshll.u32 %v6054_v1, 16 }
  0xcd   : > { %v724_v4 = vadd.f32 %v659_v63, %v226_v56  ;;  %5608 = vmatmul.msk.bf16.gmra.mxu0 %vm172_vm1, %v6088_v60  ;;  %749 = vst.msk [vmem:[#allocation2 + $0x30] sm:$0xff] %vm172_vm1, %v713_v8  ;;  %v779_v56 = vld [vmem:[#allocation2] sm:$0xff]  ;;  %v2054_v60 = vsel %vm1386_vm2, %v2044_v11, %v2053_v50 }
  0xce   : > { %769 = vst.msk [vmem:[#allocation2 + $0xd0] sm:$0xff] %vm172_vm1, %v733_v62  ;;  %v704_v16 = vpop.f32.mrf.mxu3  ;;  %v1475_v62 = vsel %vm1386_vm2, %v1465_v13, %v1474_v51 }
  0xcf   : > { %760 = vst.msk [vmem:[#allocation2 + $0x88] sm:$0xff] %vm172_vm1, %v724_v4  ;;  %v742_v18 = vadd.f32 %v704_v16, %v244_v10  ;;  %v1477_v4 = vshrl.u32 %v6054_v1, 16  ;;  %v780_v10 = vld [vmem:[#allocation2 + $0x8] sm:$0xff] }
  0xd1   : > { %778 = vst.msk [vmem:[#allocation2 + $0x118] sm:$0xff] %vm172_vm1, %v742_v18  ;;  %v1482_v18 = vrot.slane %v1480_v6, 4 }
  0xd2   : > { %v634_v22 = vpop.f32.mrf.mxu0 }
  0xd3   : > { %v684_v17 = vpop.f32.mrf.mxu2  ;;  %v714_v27 = vadd.f32 %v634_v22, %v216_v15  ;;  %5514 = vmatmul.msk.bf16.gmra.mxu3 %vm172_vm1, %v2045_v24  ;;  %v2061_v15 = vrot.slane %v2059_v3, 4 }
  0xd4   : > { %v734_v19 = vadd.f32 %v684_v17, %v236_v12  ;;  %v662_v20 = vpop.f32.mrf.mxu1  ;;  %v6616_v12 = vld [vmem:[%s6248_s25 + $0x50] sm:$0xff]  ;;  %v1479_v17 = vrot.slane %v1477_v4, 3 }
  0xd5   : > { %v725_v25 = vadd.f32 %v662_v20, %v227_v14  ;;  %750 = vst.msk [vmem:[#allocation2 + $0x38] sm:$0xff] %vm172_vm1, %v714_v27  ;;  %v2058_v14 = vrot.slane %v2056_v0, 3  ;;  %v781_v27 = vld [vmem:[#allocation2 + $0x10] sm:$0xff]  ;;  %v783_v0 = vld [vmem:[#allocation2 + $0x20] sm:$0xff] }
  0xd6   : > { %770 = vst.msk [vmem:[#allocation2 + $0xd8] sm:$0xff] %vm172_vm1, %v734_v19  ;;  %v6586_v38 = vpop.f32.mrf.mxu3  ;;  %v1483_v24 = vor.u32 %v1482_v18, %v1479_v17 }
  0xd7   : > { %761 = vst.msk [vmem:[#allocation2 + $0x90] sm:$0xff] %vm172_vm1, %v725_v25  ;;  %5321 = vmatmul.msk.bf16.gmra.mxu1 %vm172_vm1, %v965_v21  ;;  %v968_v21 = vrot.slane %v6616_v12, 3  ;;  %v2062_v22 = vor.u32 %v2061_v15, %v2058_v14 }
  0xd8   : > { %5417 = vmatmul.msk.bf16.gmra.mxu2 %vm172_vm1, %v1466_v26  ;;  %v1484_v34 = vsel %vm1386_vm2, %v1474_v51, %v1483_v24 }
  0xd9   : > { %v969_v31 = vsel %vm948_vm3, %v966_v49, %v968_v21  ;;  %v2063_v32 = vsel %vm1386_vm2, %v2053_v50, %v2062_v22  ;;  %v6644_v49 = vld [vmem:[%s6248_s25 + $0x58] sm:$0xff] }
  0xda   : > { %v637_v30 = vpop.f32.mrf.mxu0 }
  0xdb   : > { %v687_v39 = vpop.f32.mrf.mxu2  ;;  %v715_v29 = vadd.f32 %v637_v30, %v217_v37  ;;  %v1486_v30 = vshrl.u32 %v6055_v35, 16 }
  0xdc   : > { %v735_v41 = vadd.f32 %v687_v39, %v237_v33  ;;  %v664_v42 = vpop.f32.mrf.mxu1 }
  0xdd   : > { %v726_v46 = vadd.f32 %v664_v42, %v228_v36  ;;  %5609 = vmatmul.msk.bf16.gmra.mxu0 %vm172_vm1, %v6089_v40  ;;  %751 = vst.msk [vmem:[#allocation2 + $0x40] sm:$0xff] %vm172_vm1, %v715_v29  ;;  %v6075_v36 = vld [vmem:[%s6248_s25 + $0x68] sm:$0xff] }
  0xde   : > { %771 = vst.msk [vmem:[#allocation2 + $0xe0] sm:$0xff] %vm172_vm1, %v735_v41  ;;  %v6597_v53 = vpop.f32.mrf.mxu3  ;;  %v2065_v41 = vshrl.u32 %v6075_v36, 16  ;;  %v2068_v42 = vshll.u32 %v6075_v36, 16 }
  0xdf   : > { %762 = vst.msk [vmem:[#allocation2 + $0x98] sm:$0xff] %vm172_vm1, %v726_v46 }
  0xe0   : > { %v2070_v51 = vrot.slane %v2068_v42, 4 }
  0xe2   : > { %v639_v59 = vpop.f32.mrf.mxu0 }
  0xe3   : > { %v689_v54 = vpop.f32.mrf.mxu2  ;;  %v716_v63 = vadd.f32 %v639_v59, %v218_v52  ;;  %5515 = vmatmul.msk.bf16.gmra.mxu3 %vm172_vm1, %v2054_v60 }
  0xe4   : > { %v736_v55 = vadd.f32 %v689_v54, %v238_v45  ;;  %v1055_v57 = vpop.f32.mrf.mxu1  ;;  %v2067_v45 = vrot.slane %v2065_v41, 3  ;;  %v1491_v54 = vrot.slane %v1489_v9, 4 }
  0xe5   : > { %v1145_v61 = vadd.f32 %v1055_v57, %v779_v56  ;;  %752 = vst.msk [vmem:[#allocation2 + $0x48] sm:$0xff] %vm172_vm1, %v716_v63 }
  0xe6   : > { %772 = vst.msk [vmem:[#allocation2 + $0xe8] sm:$0xff] %vm172_vm1, %v736_v55  ;;  %v6612_v7 = vpop.f32.mrf.mxu3  ;;  %v6651_v59 = vor.u32 %v2070_v51, %v2067_v45 }
  0xe7   : > { %1181 = vst.msk [vmem:[#allocation2] sm:$0xff] %vm172_vm1, %v1145_v61  ;;  %5322 = vmatmul.msk.bf16.gmra.mxu1 %vm172_vm1, %v967_v58  ;;  %v970_v58 = vrot.slane %v6644_v49, 3 }
  0xe8   : > { %5418 = vmatmul.msk.bf16.gmra.mxu2 %vm172_vm1, %v1475_v62  ;;  %v2072_v6 = vsel %vm1386_vm2, %v2062_v22, %v6651_v59 }
  0xea   : > { %v6618_v13 = vpop.f32.mrf.mxu0 }
  0xeb   : > { %v1626_v8 = vpop.f32.mrf.mxu2 }
  0xec   : > { %v1057_v11 = vpop.f32.mrf.mxu1 }
  0xed   : > { %v1146_v16 = vadd.f32 %v1057_v11, %v780_v10  ;;  %5610 = vmatmul.msk.bf16.gmra.mxu0 %vm172_vm1, %v6090_v5  ;;  %v6056_v10 = vld [vmem:[%s6248_s25 + $0x60] sm:$0xff]  ;;  %v6076_v11 = vld [vmem:[%s6248_s25 + $0x70] sm:$0xff] }
  0xee   : > { %v1217_v19 = vld [vmem:[#allocation2] sm:$0xff]  ;;  %v6624_v25 = vpop.f32.mrf.mxu3  ;;  %v2074_v15 = vshrl.u32 %v6076_v11, 16  ;;  %v1495_v18 = vshrl.u32 %v6056_v10, 16 }
  0xef   : > { %v1716_v20 = vadd.f32 %v1626_v8, %v1217_v19  ;;  %1182 = vst.msk [vmem:[#allocation2 + $0x8] sm:$0xff] %vm172_vm1, %v1146_v16  ;;  %v2077_v16 = vshll.u32 %v6076_v11, 16  ;;  %v1498_v19 = vshll.u32 %v6056_v10, 16 }
  0xf0   : > { %v1497_v35 = vrot.slane %v1495_v18, 3 }
  0xf1   : > { %1752 = vst.msk [vmem:[#allocation2] sm:$0xff] %vm172_vm1, %v1716_v20  ;;  %v1500_v36 = vrot.slane %v1498_v19, 4 }
  0xf2   : > { %v6627_v23 = vpop.f32.mrf.mxu0 }
  0xf3   : > { %v1628_v26 = vpop.f32.mrf.mxu2  ;;  %5516 = vmatmul.msk.bf16.gmra.mxu3 %vm172_vm1, %v2063_v32 }
  0xf4   : > { %v1060_v28 = vpop.f32.mrf.mxu1 }
  0xf5   : > { %v1147_v33 = vadd.f32 %v1060_v28, %v781_v27  ;;  %v784_v27 = vld [vmem:[#allocation2 + $0x28] sm:$0xff] }
  0xf6   : > { %v1218_v37 = vld [vmem:[#allocation2 + $0x8] sm:$0xff]  ;;  %v6639_v44 = vpop.f32.mrf.mxu3 }
  0xf7   : > { %v1717_v39 = vadd.f32 %v1628_v26, %v1218_v37  ;;  %1183 = vst.msk [vmem:[#allocation2 + $0x10] sm:$0xff] %vm172_vm1, %v1147_v33  ;;  %5323 = vmatmul.msk.bf16.gmra.mxu1 %vm172_vm1, %v969_v31  ;;  %v6092_v26 = vld [vmem:[%s6248_s25 + $0x5c] sm:$0xff]  ;;  %v2079_v33 = vrot.slane %v2077_v16, 4 }
  0xf8   : > { %v1788_v40 = vld [vmem:[#allocation2] sm:$0xff]  ;;  %5419 = vmatmul.msk.bf16.gmra.mxu2 %vm172_vm1, %v1484_v34 }
  0xf9   : > { %v2286_v43 = vadd.f32 %v6586_v38, %v1788_v40  ;;  %1753 = vst.msk [vmem:[#allocation2 + $0x8] sm:$0xff] %vm172_vm1, %v1717_v39  ;;  %v1488_v38 = vrot.slane %v1486_v30, 3  ;;  %v6685_v31 = vld [vmem:[%s6248_s25 + $0x60] sm:$0xff] }
  0xfa   : > { %v6646_v50 = vpop.f32.mrf.mxu0  ;;  %v972_v40 = vrot.slane %v6685_v31, 3 }
  0xfb   : > { %2322 = vst.msk [vmem:[#allocation2] sm:$0xff] %vm172_vm1, %v2286_v43  ;;  %v1631_v46 = vpop.f32.mrf.mxu2  ;;  %v6655_v61 = vor.u32 %v1491_v54, %v1488_v38  ;;  %v6697_v43 = vor.u32 %v1500_v36, %v1497_v35  ;;  %v6057_v38 = vld [vmem:[%s6248_s25 + $0x68] sm:$0xff]  ;;  %v6077_v54 = vld [vmem:[%s6248_s25 + $0x78] sm:$0xff]  ;;  %v6058_v35 = vld [vmem:[%s6248_s25 + $0x70] sm:$0xff] }
  0xfc   : > { %v1062_v29 = vpop.f32.mrf.mxu1  ;;  %v6078_v36 = vld [vmem:[%s6248_s25 + $0x80] sm:$0xff] }
  0xfd   : > { %v1148_v52 = vadd.f32 %v1062_v29, %v782_v48  ;;  %5611 = vmatmul.msk.bf16.gmra.mxu0 %vm172_vm1, %v6091_v47  ;;  %v1493_v5 = vsel %vm1386_vm2, %v1483_v24, %v6655_v61  ;;  %v785_v48 = vld [vmem:[#allocation2 + $0x30] sm:$0xff] }
  0xfe   : > { %v1219_v55 = vld [vmem:[#allocation2 + $0x10] sm:$0xff]  ;;  %v6657_v63 = vpop.f32.mrf.mxu3 }
  0xff   : > { %v1718_v56 = vadd.f32 %v1631_v46, %v1219_v55  ;;  %1184 = vst.msk [vmem:[#allocation2 + $0x18] sm:$0xff] %vm172_vm1, %v1148_v52 }
 0x100   : > { %v1789_v57 = vld [vmem:[#allocation2 + $0x8] sm:$0xff] }
 0x101   : > { %v2287_v60 = vadd.f32 %v6597_v53, %v1789_v57  ;;  %1754 = vst.msk [vmem:[#allocation2 + $0x10] sm:$0xff] %vm172_vm1, %v1718_v56  ;;  %v971_v53 = vsel %vm948_vm3, %v968_v21, %v970_v58  ;;  %v2083_v57 = vshrl.u32 %v6077_v54, 16 }
 0x102   : > { %v2358_v62 = vld [vmem:[#allocation2] sm:$0xff]  ;;  %v6664_v4 = vpop.f32.mrf.mxu0 }
 0x103   : > { %2323 = vst.msk [vmem:[#allocation2 + $0x8] sm:$0xff] %vm172_vm1, %v2287_v60  ;;  %v2682_v1 = vadd.f32 %v6618_v13, %v2358_v62  ;;  %v1633_v2 = vpop.f32.mrf.mxu2  ;;  %5517 = vmatmul.msk.bf16.gmra.mxu3 %vm172_vm1, %v2072_v6  ;;  %v1504_v60 = vshrl.u32 %v6057_v38, 16 }
 0x104   : > { %v1065_v3 = vpop.f32.mrf.mxu1 }
 0x105   : > { %2718 = vst.msk [vmem:[#allocation2] sm:$0xff] %vm172_vm1, %v2682_v1  ;;  %v1149_v8 = vadd.f32 %v1065_v3, %v783_v0  ;;  %v6093_v3 = vld [vmem:[%s6248_s25 + $0x64] sm:$0xff] }
 0x106   : > { %v1220_v12 = vld [vmem:[#allocation2 + $0x18] sm:$0xff]  ;;  %v6679_v21 = vpop.f32.mrf.mxu3 }
 0x107   : > { %v1719_v13 = vadd.f32 %v1633_v2, %v1220_v12  ;;  %1185 = vst.msk [vmem:[#allocation2 + $0x20] sm:$0xff] %vm172_vm1, %v1149_v8  ;;  %5324 = vmatmul.msk.bf16.gmra.mxu1 %vm172_vm1, %v971_v53  ;;  %v786_v53 = vld [vmem:[#allocation2 + $0x38] sm:$0xff]  ;;  %v6731_v8 = vld [vmem:[%s6248_s25 + $0x68] sm:$0xff]  ;;  %v1506_v12 = vrot.slane %v1504_v60, 3 }
 0x108   : > { %v1790_v14 = vld [vmem:[#allocation2 + $0x10] sm:$0xff]  ;;  %5420 = vmatmul.msk.bf16.gmra.mxu2 %vm172_vm1, %v1493_v5  ;;  %v974_v16 = vrot.slane %v6731_v8, 3 }
 0x109   : > { %v2288_v17 = vadd.f32 %v6612_v7, %v1790_v14  ;;  %1755 = vst.msk [vmem:[#allocation2 + $0x18] sm:$0xff] %vm172_vm1, %v1719_v13  ;;  %v2076_v7 = vrot.slane %v2074_v15, 3 }
 0x10a   : > { %v2359_v20 = vld [vmem:[#allocation2 + $0x8] sm:$0xff]  ;;  %v6687_v32 = vpop.f32.mrf.mxu0 }
 0x10b   : > { %2324 = vst.msk [vmem:[#allocation2 + $0x10] sm:$0xff] %vm172_vm1, %v2288_v17  ;;  %v2683_v22 = vadd.f32 %v6627_v23, %v2359_v20  ;;  %v1636_v24 = vpop.f32.mrf.mxu2  ;;  %v6693_v41 = vor.u32 %v2079_v33, %v2076_v7 }
 0x10c   : > { %v1067_v28 = vpop.f32.mrf.mxu1 }
 0x10d   : > { %2719 = vst.msk [vmem:[#allocation2 + $0x8] sm:$0xff] %vm172_vm1, %v2683_v22  ;;  %v1150_v34 = vadd.f32 %v1067_v28, %v784_v27  ;;  %5612 = vmatmul.msk.bf16.gmra.mxu0 %vm172_vm1, %v6092_v26  ;;  %v2081_v51 = vsel %vm1386_vm2, %v6651_v59, %v6693_v41  ;;  %v787_v27 = vld [vmem:[#allocation2 + $0x40] sm:$0xff] }
 0x10e   : > { %v1221_v37 = vld [vmem:[#allocation2 + $0x20] sm:$0xff]  ;;  %v6699_v9 = vpop.f32.mrf.mxu3 }
 0x10f   : > { %v1720_v39 = vadd.f32 %v1636_v24, %v1221_v37  ;;  %1186 = vst.msk [vmem:[#allocation2 + $0x28] sm:$0xff] %vm172_vm1, %v1150_v34 }
 0x110   : > { %v1791_v23 = vld [vmem:[#allocation2 + $0x18] sm:$0xff] }
 0x111   : > { %v2289_v42 = vadd.f32 %v6624_v25, %v1791_v23  ;;  %1756 = vst.msk [vmem:[#allocation2 + $0x20] sm:$0xff] %vm172_vm1, %v1720_v39  ;;  %v973_v25 = vsel %vm948_vm3, %v970_v58, %v972_v40  ;;  %v2086_v58 = vshll.u32 %v6077_v54, 16  ;;  %v2092_v23 = vshrl.u32 %v6078_v36, 16 }
 0x112   : > { %v2360_v30 = vld [vmem:[#allocation2 + $0x10] sm:$0xff]  ;;  %v6708_v45 = vpop.f32.mrf.mxu0 }
 0x113   : > { %2325 = vst.msk [vmem:[#allocation2 + $0x18] sm:$0xff] %vm172_vm1, %v2289_v42  ;;  %v2684_v46 = vadd.f32 %v6646_v50, %v2360_v30  ;;  %v1638_v47 = vpop.f32.mrf.mxu2  ;;  %v1502_v50 = vsel %vm1386_vm2, %v6655_v61, %v6697_v43  ;;  %5518 = vmatmul.msk.bf16.gmra.mxu3 %vm172_vm1, %v2081_v51  ;;  %v1507_v61 = vshll.u32 %v6057_v38, 16  ;;  %v2088_v10 = vrot.slane %v2086_v58, 4 }
 0x114   : > { %v1070_v29 = vpop.f32.mrf.mxu1  ;;  %v1513_v42 = vshrl.u32 %v6058_v35, 16 }
 0x115   : > { %2720 = vst.msk [vmem:[#allocation2 + $0x10] sm:$0xff] %vm172_vm1, %v2684_v46  ;;  %v1151_v52 = vadd.f32 %v1070_v29, %v785_v48  ;;  %v1509_v13 = vrot.slane %v1507_v61, 4  ;;  %v6094_v29 = vld [vmem:[%s6248_s25 + $0x6c] sm:$0xff] }
 0x116   : > { %v1222_v55 = vld [vmem:[#allocation2 + $0x28] sm:$0xff]  ;;  %v6725_v1 = vpop.f32.mrf.mxu3 }
 0x117   : > { %v1721_v56 = vadd.f32 %v1638_v47, %v1222_v55  ;;  %1187 = vst.msk [vmem:[#allocation2 + $0x30] sm:$0xff] %vm172_vm1, %v1151_v52  ;;  %5325 = vmatmul.msk.bf16.gmra.mxu1 %vm172_vm1, %v973_v25  ;;  %v6743_v19 = vor.u32 %v1509_v13, %v1506_v12  ;;  %v788_v25 = vld [vmem:[#allocation2 + $0x48] sm:$0xff]  ;;  %v6777_v52 = vld [vmem:[%s6248_s25 + $0x70] sm:$0xff]  ;;  %v1515_v55 = vrot.slane %v1513_v42, 3  ;;  %v6059_v12 = vld [vmem:[%s6248_s25 + $0x78] sm:$0xff] }
 0x118   : > { %v1792_v49 = vld [vmem:[#allocation2 + $0x20] sm:$0xff]  ;;  %5421 = vmatmul.msk.bf16.gmra.mxu2 %vm172_vm1, %v1502_v50  ;;  %v976_v58 = vrot.slane %v6777_v52, 3  ;;  %v6079_v13 = vld [vmem:[%s6248_s25 + $0x88] sm:$0xff] }
 0x119   : > { %v2290_v59 = vadd.f32 %v6639_v44, %v1792_v49  ;;  %1757 = vst.msk [vmem:[#allocation2 + $0x28] sm:$0xff] %vm172_vm1, %v1721_v56  ;;  %v2085_v44 = vrot.slane %v2083_v57, 3 }
 0x11a   : > { %v2361_v62 = vld [vmem:[#allocation2 + $0x18] sm:$0xff]  ;;  %v6733_v5 = vpop.f32.mrf.mxu0 }
 0x11b   : > { %2326 = vst.msk [vmem:[#allocation2 + $0x20] sm:$0xff] %vm172_vm1, %v2290_v59  ;;  %v2685_v2 = vadd.f32 %v6664_v4, %v2361_v62  ;;  %v1641_v0 = vpop.f32.mrf.mxu2  ;;  %v6739_v17 = vor.u32 %v2088_v10, %v2085_v44 }
 0x11c   : > { %v1072_v6 = vpop.f32.mrf.mxu1 }
 0x11d   : > { %2721 = vst.msk [vmem:[#allocation2 + $0x18] sm:$0xff] %vm172_vm1, %v2685_v2  ;;  %v1152_v11 = vadd.f32 %v1072_v6, %v786_v53  ;;  %5613 = vmatmul.msk.bf16.gmra.mxu0 %vm172_vm1, %v6093_v3  ;;  %v2090_v33 = vsel %vm1386_vm2, %v6693_v41, %v6739_v17  ;;  %v789_v53 = vld [vmem:[#allocation2 + $0x50] sm:$0xff] }
 0x11e   : > { %v1223_v14 = vld [vmem:[#allocation2 + $0x30] sm:$0xff]  ;;  %v6745_v22 = vpop.f32.mrf.mxu3 }
 0x11f   : > { %v1722_v15 = vadd.f32 %v1641_v0, %v1223_v14  ;;  %1188 = vst.msk [vmem:[#allocation2 + $0x38] sm:$0xff] %vm172_vm1, %v1152_v11 }
 0x120   : > { %v1793_v4 = vld [vmem:[#allocation2 + $0x28] sm:$0xff] }
 0x121   : > { %v2291_v18 = vadd.f32 %v6657_v63, %v1793_v4  ;;  %1758 = vst.msk [vmem:[#allocation2 + $0x30] sm:$0xff] %vm172_vm1, %v1722_v15  ;;  %v975_v63 = vsel %vm948_vm3, %v972_v40, %v974_v16  ;;  %v2095_v40 = vshll.u32 %v6078_v36, 16  ;;  %v2101_v4 = vshrl.u32 %v6079_v13, 16 }
 0x122   : > { %v2362_v20 = vld [vmem:[#allocation2 + $0x20] sm:$0xff]  ;;  %v6754_v7 = vpop.f32.mrf.mxu0 }
 0x123   : > { %2327 = vst.msk [vmem:[#allocation2 + $0x28] sm:$0xff] %vm172_vm1, %v2291_v18  ;;  %v2686_v24 = vadd.f32 %v6687_v32, %v2362_v20  ;;  %v1643_v26 = vpop.f32.mrf.mxu2  ;;  %v1511_v32 = vsel %vm1386_vm2, %v6697_v43, %v6743_v19  ;;  %5519 = vmatmul.msk.bf16.gmra.mxu3 %vm172_vm1, %v2090_v33  ;;  %v1516_v43 = vshll.u32 %v6058_v35, 16  ;;  %v2097_v38 = vrot.slane %v2095_v40, 4 }
 0x124   : > { %v1075_v28 = vpop.f32.mrf.mxu1  ;;  %v1522_v18 = vshrl.u32 %v6059_v12, 16 }
 0x125   : > { %2722 = vst.msk [vmem:[#allocation2 + $0x20] sm:$0xff] %vm172_vm1, %v2686_v24  ;;  %v1153_v34 = vadd.f32 %v1075_v28, %v787_v27  ;;  %v1518_v56 = vrot.slane %v1516_v43, 4  ;;  %v6095_v28 = vld [vmem:[%s6248_s25 + $0x74] sm:$0xff] }
 0x126   : > { %v1224_v37 = vld [vmem:[#allocation2 + $0x38] sm:$0xff]  ;;  %v6771_v46 = vpop.f32.mrf.mxu3 }
 0x127   : > { %v1723_v39 = vadd.f32 %v1643_v26, %v1224_v37  ;;  %1189 = vst.msk [vmem:[#allocation2 + $0x40] sm:$0xff] %vm172_vm1, %v1153_v34  ;;  %5326 = vmatmul.msk.bf16.gmra.mxu1 %vm172_vm1, %v975_v63  ;;  %v6789_v61 = vor.u32 %v1518_v56, %v1515_v55  ;;  %v790_v63 = vld [vmem:[#allocation2 + $0x58] sm:$0xff]  ;;  %v1524_v37 = vrot.slane %v1522_v18, 3  ;;  %v6060_v55 = vld [vmem:[%s6248_s25 + $0x80] sm:$0xff]  ;;  %v6080_v56 = vld [vmem:[%s6248_s25 + $0x90] sm:$0xff] }
 0x128   : > { %v1794_v31 = vld [vmem:[#allocation2 + $0x30] sm:$0xff]  ;;  %5422 = vmatmul.msk.bf16.gmra.mxu2 %vm172_vm1, %v1511_v32  ;;  %v6823_v34 = vld [vmem:[%s6248_s25 + $0x78] sm:$0xff] }
 0x129   : > { %v2292_v41 = vadd.f32 %v6679_v21, %v1794_v31  ;;  %1759 = vst.msk [vmem:[#allocation2 + $0x38] sm:$0xff] %vm172_vm1, %v1723_v39  ;;  %v2094_v21 = vrot.slane %v2092_v23, 3  ;;  %v978_v40 = vrot.slane %v6823_v34, 3 }
 0x12a   : > { %v2363_v30 = vld [vmem:[#allocation2 + $0x28] sm:$0xff]  ;;  %v6779_v50 = vpop.f32.mrf.mxu0 }
 0x12b   : > { %2328 = vst.msk [vmem:[#allocation2 + $0x30] sm:$0xff] %vm172_vm1, %v2292_v41  ;;  %v2687_v47 = vadd.f32 %v6708_v45, %v2363_v30  ;;  %v1646_v48 = vpop.f32.mrf.mxu2  ;;  %v6785_v59 = vor.u32 %v2097_v38, %v2094_v21 }
 0x12c   : > { %v1077_v51 = vpop.f32.mrf.mxu1 }
 0x12d   : > { %2723 = vst.msk [vmem:[#allocation2 + $0x28] sm:$0xff] %vm172_vm1, %v2687_v47  ;;  %v1154_v54 = vadd.f32 %v1077_v51, %v788_v25  ;;  %5614 = vmatmul.msk.bf16.gmra.mxu0 %vm172_vm1, %v6094_v29  ;;  %v2099_v10 = vsel %vm1386_vm2, %v6739_v17, %v6785_v59  ;;  %v791_v25 = vld [vmem:[#allocation2 + $0x60] sm:$0xff] }
 0x12e   : > { %v1225_v49 = vld [vmem:[#allocation2 + $0x40] sm:$0xff]  ;;  %v6791_v2 = vpop.f32.mrf.mxu3 }
 0x12f   : > { %v1724_v57 = vadd.f32 %v1646_v48, %v1225_v49  ;;  %1190 = vst.msk [vmem:[#allocation2 + $0x48] sm:$0xff] %vm172_vm1, %v1154_v54 }
 0x130   : > { %v1795_v45 = vld [vmem:[#allocation2 + $0x38] sm:$0xff] }
 0x131   : > { %v2293_v60 = vadd.f32 %v6699_v9, %v1795_v45  ;;  %1760 = vst.msk [vmem:[#allocation2 + $0x40] sm:$0xff] %vm172_vm1, %v1724_v57  ;;  %v977_v9 = vsel %vm948_vm3, %v974_v16, %v976_v58  ;;  %v2104_v16 = vshll.u32 %v6079_v13, 16  ;;  %v2110_v45 = vshrl.u32 %v6080_v56, 16 }
 0x132   : > { %v2364_v62 = vld [vmem:[#allocation2 + $0x30] sm:$0xff]  ;;  %v6800_v44 = vpop.f32.mrf.mxu0 }
 0x133   : > { %2329 = vst.msk [vmem:[#allocation2 + $0x38] sm:$0xff] %vm172_vm1, %v2293_v60  ;;  %v2688_v0 = vadd.f32 %v6733_v5, %v2364_v62  ;;  %v1648_v3 = vpop.f32.mrf.mxu2  ;;  %v1520_v5 = vsel %vm1386_vm2, %v6743_v19, %v6789_v61  ;;  %5520 = vmatmul.msk.bf16.gmra.mxu3 %vm172_vm1, %v2099_v10  ;;  %v1525_v19 = vshll.u32 %v6059_v12, 16  ;;  %v2106_v35 = vrot.slane %v2104_v16, 4 }
 0x134   : > { %v1080_v6 = vpop.f32.mrf.mxu1  ;;  %v1531_v60 = vshrl.u32 %v6060_v55, 16 }
 0x135   : > { %2724 = vst.msk [vmem:[#allocation2 + $0x30] sm:$0xff] %vm172_vm1, %v2688_v0  ;;  %v1155_v11 = vadd.f32 %v1080_v6, %v789_v53  ;;  %v1527_v39 = vrot.slane %v1525_v19, 4  ;;  %v6096_v6 = vld [vmem:[%s6248_s25 + $0x7c] sm:$0xff] }
 0x136   : > { %v1226_v14 = vld [vmem:[#allocation2 + $0x48] sm:$0xff]  ;;  %v6817_v24 = vpop.f32.mrf.mxu3 }
 0x137   : > { %v1725_v15 = vadd.f32 %v1648_v3, %v1226_v14  ;;  %1191 = vst.msk [vmem:[#allocation2 + $0x50] sm:$0xff] %vm172_vm1, %v1155_v11  ;;  %5327 = vmatmul.msk.bf16.gmra.mxu1 %vm172_vm1, %v977_v9  ;;  %v6835_v43 = vor.u32 %v1527_v39, %v1524_v37  ;;  %v792_v9 = vld [vmem:[#allocation2 + $0x68] sm:$0xff]  ;;  %v6869_v11 = vld [vmem:[%s6248_s25 + $0x80] sm:$0xff]  ;;  %v1533_v14 = vrot.slane %v1531_v60, 3 }
 0x138   : > { %v1796_v8 = vld [vmem:[#allocation2 + $0x40] sm:$0xff]  ;;  %5423 = vmatmul.msk.bf16.gmra.mxu2 %vm172_vm1, %v1520_v5  ;;  %v980_v16 = vrot.slane %v6869_v11, 3 }
 0x139   : > { %v2294_v17 = vadd.f32 %v6725_v1, %v1796_v8  ;;  %1761 = vst.msk [vmem:[#allocation2 + $0x48] sm:$0xff] %vm172_vm1, %v1725_v15  ;;  %v2103_v1 = vrot.slane %v2101_v4, 3 }
 0x13a   : > { %v2365_v20 = vld [vmem:[#allocation2 + $0x38] sm:$0xff]  ;;  %v6825_v32 = vpop.f32.mrf.mxu0 }
 0x13b   : > { %2330 = vst.msk [vmem:[#allocation2 + $0x40] sm:$0xff] %vm172_vm1, %v2294_v17  ;;  %v2689_v26 = vadd.f32 %v6754_v7, %v2365_v20  ;;  %v1651_v27 = vpop.f32.mrf.mxu2  ;;  %v6831_v41 = vor.u32 %v2106_v35, %v2103_v1 }
 0x13c   : > { %v1082_v33 = vpop.f32.mrf.mxu1 }
 0x13d   : > { %2725 = vst.msk [vmem:[#allocation2 + $0x38] sm:$0xff] %vm172_vm1, %v2689_v26  ;;  %v1156_v36 = vadd.f32 %v1082_v33, %v790_v63  ;;  %5615 = vmatmul.msk.bf16.gmra.mxu0 %vm172_vm1, %v6095_v28  ;;  %v2108_v38 = vsel %vm1386_vm2, %v6785_v59, %v6831_v41  ;;  %v793_v33 = vld [vmem:[#allocation2 + $0x70] sm:$0xff] }
 0x13e   : > { %v1227_v31 = vld [vmem:[#allocation2 + $0x50] sm:$0xff]  ;;  %v6837_v47 = vpop.f32.mrf.mxu3 }
 0x13f   : > { %v1726_v23 = vadd.f32 %v1651_v27, %v1227_v31  ;;  %1192 = vst.msk [vmem:[#allocation2 + $0x58] sm:$0xff] %vm172_vm1, %v1156_v36  ;;  %v1860_v27 = vld [vmem:[%s6248_s25 + $0x98] sm:$0xf]  ;;  %v6061_v31 = vld [vmem:[%s6248_s25 + $0x88] sm:$0xff] }
 0x140   : > { %v1797_v7 = vld [vmem:[#allocation2 + $0x48] sm:$0xff]  ;;  %v1937_v37 = vunpack.c.l.b16 %v1860_v27 }
 0x141   : > { %v2295_v42 = vadd.f32 %v6745_v22, %v1797_v7  ;;  %1762 = vst.msk [vmem:[#allocation2 + $0x50] sm:$0xff] %vm172_vm1, %v1726_v23  ;;  %v979_v22 = vsel %vm948_vm3, %v976_v58, %v978_v40  ;;  %v2113_v58 = vshll.u32 %v6080_v56, 16 }
 0x142   : > { %v2366_v30 = vld [vmem:[#allocation2 + $0x40] sm:$0xff]  ;;  %v6846_v21 = vpop.f32.mrf.mxu0  ;;  %v1956_v7 = vpack.c.b16 %v1937_v37, %v1937_v37 }
 0x143   : > { %2331 = vst.msk [vmem:[#allocation2 + $0x48] sm:$0xff] %vm172_vm1, %v2295_v42  ;;  %v2690_v48 = vadd.f32 %v6779_v50, %v2366_v30  ;;  %v1653_v29 = vpop.f32.mrf.mxu2  ;;  %v1529_v50 = vsel %vm1386_vm2, %v6789_v61, %v6835_v43  ;;  %5521 = vmatmul.msk.bf16.gmra.mxu3 %vm172_vm1, %v2108_v38  ;;  %v1534_v61 = vshll.u32 %v6060_v55, 16  ;;  %v2115_v12 = vrot.slane %v2113_v58, 4  ;;  %v6097_v38 = vld [vmem:[%s6248_s25 + $0x84] sm:$0xff]  ;;  %v1289_v58 = vld [vmem:[%s6248_s25 + $0x90] sm:$0xf] }
 0x144   : > { %v1085_v51 = vpop.f32.mrf.mxu1  ;;  %v2122_v42 = vshll.u32 %v1956_v7, 16  ;;  %v6915_v55 = vld [vmem:[%s6248_s25 + $0x88] sm:$0xff] }
 0x145   : > { %2726 = vst.msk [vmem:[#allocation2 + $0x40] sm:$0xff] %vm172_vm1, %v2690_v48  ;;  %v1157_v54 = vadd.f32 %v1085_v51, %v791_v25  ;;  %v1536_v15 = vrot.slane %v1534_v61, 4  ;;  %v1543_v48 = vshll.u32 %v6061_v31, 16  ;;  %v982_v61 = vrot.slane %v6915_v55, 3 }
 0x146   : > { %v1228_v49 = vld [vmem:[#allocation2 + $0x58] sm:$0xff]  ;;  %v6863_v0 = vpop.f32.mrf.mxu3 }
 0x147   : > { %v1727_v57 = vadd.f32 %v1653_v29, %v1228_v49  ;;  %1193 = vst.msk [vmem:[#allocation2 + $0x60] sm:$0xff] %vm172_vm1, %v1157_v54  ;;  %5328 = vmatmul.msk.bf16.gmra.mxu1 %vm172_vm1, %v979_v22  ;;  %v6881_v19 = vor.u32 %v1536_v15, %v1533_v14  ;;  %v794_v54 = vld [vmem:[#allocation2 + $0x78] sm:$0xff]  ;;  %v2124_v49 = vrot.slane %v2122_v42, 4 }
 0x148   : > { %v1798_v52 = vld [vmem:[#allocation2 + $0x50] sm:$0xff]  ;;  %5424 = vmatmul.msk.bf16.gmra.mxu2 %vm172_vm1, %v1529_v50 }
 0x149   : > { %v2296_v59 = vadd.f32 %v6771_v46, %v1798_v52  ;;  %1763 = vst.msk [vmem:[#allocation2 + $0x58] sm:$0xff] %vm172_vm1, %v1727_v57  ;;  %v2112_v46 = vrot.slane %v2110_v45, 3  ;;  %v1545_v45 = vrot.slane %v1543_v48, 4 }
 0x14a   : > { %v2367_v62 = vld [vmem:[#allocation2 + $0x48] sm:$0xff]  ;;  %v6871_v5 = vpop.f32.mrf.mxu0 }
 0x14b   : > { %2332 = vst.msk [vmem:[#allocation2 + $0x50] sm:$0xff] %vm172_vm1, %v2296_v59  ;;  %v2691_v3 = vadd.f32 %v6800_v44, %v2367_v62  ;;  %v1656_v53 = vpop.f32.mrf.mxu2  ;;  %v6877_v17 = vor.u32 %v2115_v12, %v2112_v46  ;;  %v1366_v62 = vunpack.c.l.b16 %v1289_v58 }
 0x14c   : > { %v1087_v10 = vpop.f32.mrf.mxu1 }
 0x14d   : > { %2727 = vst.msk [vmem:[#allocation2 + $0x48] sm:$0xff] %vm172_vm1, %v2691_v3  ;;  %v1158_v13 = vadd.f32 %v1087_v10, %v792_v9  ;;  %5616 = vmatmul.msk.bf16.gmra.mxu0 %vm172_vm1, %v6096_v6  ;;  %v2117_v36 = vsel %vm1386_vm2, %v6831_v41, %v6877_v17  ;;  %v2119_v41 = vshrl.u32 %v1956_v7, 16 }
 0x14e   : > { %v1229_v8 = vld [vmem:[#allocation2 + $0x60] sm:$0xff]  ;;  %v6883_v26 = vpop.f32.mrf.mxu3 }
 0x14f   : > { %v1728_v4 = vadd.f32 %v1656_v53, %v1229_v8  ;;  %1194 = vst.msk [vmem:[#allocation2 + $0x68] sm:$0xff] %vm172_vm1, %v1158_v13  ;;  %v795_v13 = vld [vmem:[#allocation2 + $0x80] sm:$0xff]  ;;  %v1385_v8 = vpack.c.b16 %v1366_v62, %v1366_v62 }
 0x150   : > { %v1799_v44 = vld [vmem:[#allocation2 + $0x58] sm:$0xff] }
 0x151   : > { %v2297_v18 = vadd.f32 %v6791_v2, %v1799_v44  ;;  %1764 = vst.msk [vmem:[#allocation2 + $0x60] sm:$0xff] %vm172_vm1, %v1728_v4  ;;  %v981_v2 = vsel %vm948_vm3, %v978_v40, %v980_v16  ;;  %v1549_v27 = vshrl.u32 %v1385_v8, 16 }
 0x152   : > { %v2368_v20 = vld [vmem:[#allocation2 + $0x50] sm:$0xff]  ;;  %v6893_v35 = vpop.f32.mrf.mxu0 }
 0x153   : > { %2333 = vst.msk [vmem:[#allocation2 + $0x58] sm:$0xff] %vm172_vm1, %v2297_v18  ;;  %v2692_v28 = vadd.f32 %v6825_v32, %v2368_v20  ;;  %v1658_v63 = vpop.f32.mrf.mxu2  ;;  %v1538_v32 = vsel %vm1386_vm2, %v6835_v43, %v6881_v19  ;;  %5522 = vmatmul.msk.bf16.gmra.mxu3 %vm172_vm1, %v2117_v36  ;;  %v1540_v43 = vshrl.u32 %v6061_v31, 16  ;;  %v851_v18 = vld [vmem:[%s6248_s25 + $0x90] sm:$0x7] }
 0x154   : > { %v1090_v1 = vpop.f32.mrf.mxu1 }
 0x155   : > { %2728 = vst.msk [vmem:[#allocation2 + $0x50] sm:$0xff] %vm172_vm1, %v2692_v28  ;;  %v1159_v39 = vadd.f32 %v1090_v1, %v793_v33  ;;  %v1542_v52 = vrot.slane %v1540_v43, 3  ;;  %v6139_v33 = vld [vmem:[%s6248_s25 + $0x14] sm:$0xf0] }
 0x156   : > { %v1230_v23 = vld [vmem:[#allocation2 + $0x68] sm:$0xff]  ;;  %v6909_v25 = vpop.f32.mrf.mxu3 }
 0x157   : > { %v1729_v34 = vadd.f32 %v1658_v63, %v1230_v23  ;;  %1195 = vst.msk [vmem:[#allocation2 + $0x70] sm:$0xff] %vm172_vm1, %v1159_v39  ;;  %5329 = vmatmul.msk.bf16.gmra.mxu1 %vm172_vm1, %v981_v2  ;;  %v6926_v6 = vor.u32 %v1545_v45, %v1542_v52  ;;  %v5816_v63 = vld [vmem:[%s6248_s25 + $0x14] sm:$0xe]  ;;  %v6098_v39 = vld [vmem:[%s6248_s25 + $0x8c] sm:$0xff] }
 0x158   : > { %v1800_v40 = vld [vmem:[#allocation2 + $0x60] sm:$0xff]  ;;  %5425 = vmatmul.msk.bf16.gmra.mxu2 %vm172_vm1, %v1538_v32  ;;  %v796_v32 = vld [vmem:[#allocation2 + $0x88] sm:$0xff]  ;;  %v797_v52 = vld [vmem:[#allocation2 + $0x90] sm:$0xff] }
 0x159   : > { %v2298_v30 = vadd.f32 %v6817_v24, %v1800_v40  ;;  %1765 = vst.msk [vmem:[#allocation2 + $0x68] sm:$0xff] %vm172_vm1, %v1729_v34  ;;  %v2121_v24 = vrot.slane %v2119_v41, 3  ;;  %v5817_v34 = vor.u32 %v6139_v33, %v5816_v63  ;;  %v1551_v41 = vrot.slane %v1549_v27, 3  ;;  %v7011_v27 = vld [vmem:[%s6248_s25 + $0x24] sm:$0xff] }
 0x15a   : > { %v2369_v29 = vld [vmem:[#allocation2 + $0x58] sm:$0xff]  ;;  %v6917_v56 = vpop.f32.mrf.mxu0 }
 0x15b   : > { %2334 = vst.msk [vmem:[#allocation2 + $0x60] sm:$0xff] %vm172_vm1, %v2298_v30  ;;  %v2693_v51 = vadd.f32 %v6846_v21, %v2369_v29  ;;  %v1661_v22 = vpop.f32.mrf.mxu2  ;;  %v2125_v3 = vor.u32 %v2124_v49, %v2121_v24  ;;  %v4021_v29 = vrot.slane %v5817_v34, 1 }
 0x15c   : > { %v1092_v50 = vpop.f32.mrf.mxu1 }
 0x15d   : > { %2729 = vst.msk [vmem:[#allocation2 + $0x58] sm:$0xff] %vm172_vm1, %v2693_v51  ;;  %v1160_v57 = vadd.f32 %v1092_v50, %v794_v54  ;;  %5617 = vmatmul.msk.bf16.gmra.mxu0 %vm172_vm1, %v6097_v38  ;;  %v2126_v4 = vsel %vm1386_vm2, %v6877_v17, %v2125_v3  ;;  %v928_v17 = vunpack.c.l.b16 %v851_v18  ;;  %v6101_v50 = vld [vmem:[%s6248_s25 + $0xc] sm:$0xff] }
 0x15e   : > { %v1231_v59 = vld [vmem:[#allocation2 + $0x70] sm:$0xff]  ;;  %v6928_v10 = vpop.f32.mrf.mxu3  ;;  %v2927_v55 = vshll.u32 %v6101_v50, 16 }
 0x15f   : > { %v1730_v60 = vadd.f32 %v1661_v22, %v1231_v59  ;;  %1196 = vst.msk [vmem:[#allocation2 + $0x78] sm:$0xff] %vm172_vm1, %v1160_v57  ;;  %v947_v23 = vpack.c.b16 %v928_v17, %v928_v17 }
 0x160   : > { %v1801_v21 = vld [vmem:[#allocation2 + $0x68] sm:$0xff] }
 0x161   : > { %v2299_v53 = vadd.f32 %v6837_v47, %v1801_v21  ;;  %1766 = vst.msk [vmem:[#allocation2 + $0x70] sm:$0xff] %vm172_vm1, %v1730_v60  ;;  %v983_v47 = vsel %vm948_vm3, %v980_v16, %v982_v61  ;;  %v984_v48 = vrot.slane %v947_v23, 3  ;;  %v6120_v21 = vld [vmem:[%s6248_s25 + $0x14] sm:$0xff]  ;;  %v4024_v23 = vrot.slane %v7011_v27, 1  ;;  %v7093_v27 = vld [vmem:[%s6248_s25 + $0x24] sm:$0xff] }
 0x162   : > { %v2370_v9 = vld [vmem:[#allocation2 + $0x60] sm:$0xff]  ;;  %v6937_v15 = vpop.f32.mrf.mxu0  ;;  %v3473_v63 = vshrl.u32 %v6120_v21, 16 }
 0x163   : > { %2335 = vst.msk [vmem:[#allocation2 + $0x68] sm:$0xff] %vm172_vm1, %v2299_v53  ;;  %v2694_v46 = vadd.f32 %v6871_v5, %v2370_v9  ;;  %v1663_v12 = vpop.f32.mrf.mxu2  ;;  %v1547_v5 = vsel %vm1386_vm2, %v6881_v19, %v6926_v6  ;;  %5523 = vmatmul.msk.bf16.gmra.mxu3 %vm172_vm1, %v2126_v4  ;;  %v1552_v19 = vshll.u32 %v1385_v8, 16  ;;  %v6995_v9 = vld [vmem:[%s6248_s25 + $0x1c] sm:$0xff]  ;;  %v2929_v8 = vrot.slane %v2927_v55, 1 }
 0x164   : > { %v1095_v14 = vpop.f32.mrf.mxu1 }
 0x165   : > { %2730 = vst.msk [vmem:[#allocation2 + $0x60] sm:$0xff] %vm172_vm1, %v2694_v46  ;;  %v1161_v44 = vadd.f32 %v1095_v14, %v795_v13  ;;  %v1554_v42 = vrot.slane %v1552_v19, 4  ;;  %v3475_v46 = vshll.u32 %v6120_v21, 16  ;;  %v6158_v13 = vld [vmem:[%s6248_s25 + $0x14] sm:$0xf0] }
 0x166   : > { %v1232_v20 = vld [vmem:[#allocation2 + $0x78] sm:$0xff]  ;;  %v6954_v2 = vpop.f32.mrf.mxu3 }
 0x167   : > { %v1731_v11 = vadd.f32 %v1663_v12, %v1232_v20  ;;  %1197 = vst.msk [vmem:[#allocation2 + $0x80] sm:$0xff] %vm172_vm1, %v1161_v44  ;;  %5330 = vmatmul.msk.bf16.gmra.mxu1 %vm172_vm1, %v983_v47  ;;  %v1555_v38 = vor.u32 %v1554_v42, %v1551_v41  ;;  %v5912_v12 = vld [vmem:[%s6248_s25 + $0x14] sm:$0xe]  ;;  %v2925_v47 = vshrl.u32 %v6101_v50, 16  ;;  %v3477_v33 = vrot.slane %v3475_v46, 1  ;;  %v799_v50 = vld [vmem:[#allocation2 + $0xa0] sm:$0xff] }
 0x168   : > { %v1802_v16 = vld [vmem:[#allocation2 + $0x70] sm:$0xff]  ;;  %5426 = vmatmul.msk.bf16.gmra.mxu2 %vm172_vm1, %v1547_v5 }
 0x169   : > { %v2300_v28 = vadd.f32 %v6863_v0, %v1802_v16  ;;  %1767 = vst.msk [vmem:[#allocation2 + $0x78] sm:$0xff] %vm172_vm1, %v1731_v11  ;;  %v6962_v0 = vld [vmem:[%s6248_s25 + $0x1c] sm:$0xff]  ;;  %v6099_v20 = vld [vmem:[%s6248_s25 + $0x94] sm:$0xff] }
 0x16a   : > { %v2371_v1 = vld [vmem:[#allocation2 + $0x68] sm:$0xff]  ;;  %v6959_v7 = vpop.f32.mrf.mxu0  ;;  %v4022_v51 = vrot.slane %v6962_v0, 1  ;;  %v798_v11 = vld [vmem:[#allocation2 + $0x98] sm:$0xff] }
 0x16b   : > { %2336 = vst.msk [vmem:[#allocation2 + $0x70] sm:$0xff] %vm172_vm1, %v2300_v28  ;;  %v2695_v36 = vadd.f32 %v6893_v35, %v2371_v1  ;;  %v1666_v37 = vpop.f32.mrf.mxu2  ;;  %v5913_v28 = vor.u32 %v6158_v13, %v5912_v12  ;;  %v3480_v1 = vshll.u32 %v6995_v9, 16 }
 0x16c   : > { %v1097_v31 = vpop.f32.mrf.mxu1  ;;  %v4023_v59 = vsel %vm4020_vm4, %v4021_v29, %v4022_v51 }
 0x16d   : > { %2731 = vst.msk [vmem:[#allocation2 + $0x68] sm:$0xff] %vm172_vm1, %v2695_v36  ;;  %v1162_v40 = vadd.f32 %v1097_v31, %v796_v32  ;;  %5618 = vmatmul.msk.bf16.gmra.mxu0 %vm172_vm1, %v6098_v39  ;;  %v2930_v36 = vor.u32 %v2929_v8, %v2925_v47  ;;  %v4460_v34 = vshrl.u32 %v5913_v28, 16 }
 0x16e   : > { %v1233_v30 = vld [vmem:[#allocation2 + $0x80] sm:$0xff]  ;;  %v6971_v24 = vpop.f32.mrf.mxu3 }
 0x16f   : > { %v1732_v43 = vadd.f32 %v1666_v37, %v1233_v30  ;;  %1198 = vst.msk [vmem:[#allocation2 + $0x88] sm:$0xff] %vm172_vm1, %v1162_v40  ;;  %v4463_v40 = vshll.u32 %v5913_v28, 16  ;;  %v3478_v30 = vor.u32 %v3477_v33, %v3473_v63 }
 0x170   : > { %v1803_v35 = vld [vmem:[#allocation2 + $0x78] sm:$0xff] }
 0x171   : > { %v2301_v22 = vadd.f32 %v6883_v26, %v1803_v35  ;;  %1768 = vst.msk [vmem:[#allocation2 + $0x80] sm:$0xff] %vm172_vm1, %v1732_v43  ;;  %v985_v26 = vsel %vm948_vm3, %v982_v61, %v984_v48  ;;  %v6990_v61 = vld [vmem:[%s6248_s25 + $0x14] sm:$0xff]  ;;  %v3482_v43 = vrot.slane %v3480_v1, 1 }
 0x172   : > { %v2372_v54 = vld [vmem:[#allocation2 + $0x70] sm:$0xff]  ;;  %v6978_v58 = vpop.f32.mrf.mxu0  ;;  %v2932_v18 = vshll.u32 %v6990_v61, 16  ;;  %v2936_v13 = vshrl.u32 %v6990_v61, 16 }
 0x173   : > { %2337 = vst.msk [vmem:[#allocation2 + $0x78] sm:$0xff] %vm172_vm1, %v2301_v22  ;;  %v2696_v49 = vadd.f32 %v6917_v56, %v2372_v54  ;;  %v1668_v57 = vpop.f32.mrf.mxu2  ;;  %v1556_v56 = vsel %vm1386_vm2, %v6926_v6, %v1555_v38  ;;  %5890 = vmatmul.msk.bf16.vlgmr.msra.gmra.mxu3 %vm172_vm1, %v4023_v59  ;;  %v3483_v59 = vsel %vm2923_vm5, %v3478_v30, %v3482_v43 }
 0x174   : > { %v1100_v45 = vpop.f32.mrf.mxu1  ;;  %v7016_v39 = vrot.slane %v2932_v18, 1  ;;  %v6160_v18 = vld [vmem:[%s6248_s25 + $0x24] sm:$0xff] }
 0x175   : > { %2732 = vst.msk [vmem:[#allocation2 + $0x70] sm:$0xff] %vm172_vm1, %v2696_v49  ;;  %v1163_v60 = vadd.f32 %v1100_v45, %v797_v52  ;;  %v4462_v52 = vrot.slane %v4460_v34, 1  ;;  %v4465_v45 = vrot.slane %v4463_v40, 2  ;;  %v4477_v33 = vshrl.u32 %v6160_v18, 16  ;;  %v801_v34 = vld [vmem:[#allocation2 + $0xb0] sm:$0xff] }
 0x176   : > { %v1234_v62 = vld [vmem:[#allocation2 + $0x88] sm:$0xff]  ;;  %v7001_v4 = vpop.f32.mrf.mxu3  ;;  %v2935_v38 = vsel %vm2923_vm5, %v2930_v36, %v7016_v39  ;;  %v4480_v1 = vshll.u32 %v6160_v18, 16 }
 0x177   : > { %v1733_v3 = vadd.f32 %v1668_v57, %v1234_v62  ;;  %1199 = vst.msk [vmem:[#allocation2 + $0x90] sm:$0xff] %vm172_vm1, %v1163_v60  ;;  %5331 = vmatmul.msk.bf16.gmra.mxu1 %vm172_vm1, %v985_v26  ;;  %v4025_v57 = vsel %vm4020_vm4, %v4022_v51, %v4024_v23  ;;  %v7042_v51 = vld [vmem:[%s6248_s25 + $0x1c] sm:$0xff]  ;;  %v4466_v21 = vor.u32 %v4465_v45, %v4462_v52  ;;  %v4479_v30 = vrot.slane %v4477_v33, 1 }
 0x178   : > { %v1804_v53 = vld [vmem:[#allocation2 + $0x80] sm:$0xff]  ;;  %5427 = vmatmul.msk.bf16.gmra.mxu2 %vm172_vm1, %v1556_v56 }
 0x179   : > { %v2302_v6 = vadd.f32 %v6909_v25, %v1804_v53  ;;  %1769 = vst.msk [vmem:[#allocation2 + $0x88] sm:$0xff] %vm172_vm1, %v1733_v3  ;;  %v6159_v25 = vld [vmem:[%s6248_s25 + $0x1c] sm:$0xff]  ;;  %v7049_v3 = vld [vmem:[%s6248_s25 + $0x24] sm:$0xff] }
 0x17a   : > { %v2373_v14 = vld [vmem:[#allocation2 + $0x78] sm:$0xff]  ;;  %v7008_v17 = vpop.f32.mrf.mxu0  ;;  %v4468_v32 = vshrl.u32 %v6159_v25, 16  ;;  %v4471_v41 = vshll.u32 %v6159_v25, 16  ;;  %v3488_v25 = vshll.u32 %v7049_v3, 16 }
 0x17b   : > { %2338 = vst.msk [vmem:[#allocation2 + $0x80] sm:$0xff] %vm172_vm1, %v2302_v6  ;;  %v2697_v44 = vadd.f32 %v6937_v15, %v2373_v14  ;;  %v1671_v5 = vpop.f32.mrf.mxu2  ;;  %v800_v14 = vld [vmem:[#allocation2 + $0xa8] sm:$0xff] }
 0x17c   : > { %v1102_v16 = vpop.f32.mrf.mxu1  ;;  %v4470_v54 = vrot.slane %v4468_v32, 1  ;;  %v4473_v26 = vrot.slane %v4471_v41, 2  ;;  %v3490_v36 = vrot.slane %v3488_v25, 1 }
 0x17d   : > { %2733 = vst.msk [vmem:[#allocation2 + $0x78] sm:$0xff] %vm172_vm1, %v2697_v44  ;;  %v1164_v19 = vadd.f32 %v1102_v16, %v798_v11  ;;  %5619 = vmatmul.msk.bf16.gmra.mxu0 %vm172_vm1, %v6099_v20  ;;  %v2938_v16 = vor.u32 %v2936_v13, %v7016_v39 }
 0x17e   : > { %v1235_v15 = vld [vmem:[#allocation2 + $0x90] sm:$0xff]  ;;  %v7022_v48 = vpop.f32.mrf.mxu3  ;;  %v7044_v62 = vor.u32 %v4473_v26, %v4470_v54  ;;  %v2944_v26 = vshrl.u32 %v7042_v51, 16 }
 0x17f   : > { %v1734_v37 = vadd.f32 %v1671_v5, %v1235_v15  ;;  %1200 = vst.msk [vmem:[#allocation2 + $0x98] sm:$0xff] %vm172_vm1, %v1164_v19  ;;  %v7062_v5 = vld [vmem:[%s6248_s25 + $0x2c] sm:$0xff] }
 0x180   : > { %v1805_v31 = vld [vmem:[#allocation2 + $0x88] sm:$0xff]  ;;  %v4475_v44 = vsel %vm4458_vm6, %v4466_v21, %v7044_v62  ;;  %v4026_v63 = vrot.slane %v7062_v5, 1 }
 0x181   : > { %v2303_v42 = vadd.f32 %v6928_v10, %v1805_v31  ;;  %1770 = vst.msk [vmem:[#allocation2 + $0x90] sm:$0xff] %vm172_vm1, %v1734_v37  ;;  %v6161_v21 = vld [vmem:[%s6248_s25 + $0x2c] sm:$0xff] }
 0x182   : > { %v2374_v35 = vld [vmem:[#allocation2 + $0x80] sm:$0xff]  ;;  %v7028_v10 = vpop.f32.mrf.mxu0  ;;  %v7144_v5 = vld [vmem:[%s6248_s25 + $0x2c] sm:$0xff] }
 0x183   : > { %2339 = vst.msk [vmem:[#allocation2 + $0x88] sm:$0xff] %vm172_vm1, %v2303_v42  ;;  %v2698_v29 = vadd.f32 %v6959_v7, %v2374_v35  ;;  %v1673_v22 = vpop.f32.mrf.mxu2  ;;  %5891 = vmatmul.msk.bf16.gmra.mxu3 %vm172_vm1, %v4025_v57 }
 0x184   : > { %v1105_v49 = vpop.f32.mrf.mxu1 }
 0x185   : > { %2734 = vst.msk [vmem:[#allocation2 + $0x80] sm:$0xff] %vm172_vm1, %v2698_v29  ;;  %v1165_v7 = vadd.f32 %v1105_v49, %v799_v50  ;;  %v7100_v50 = vld [vmem:[%s6248_s25 + $0x2c] sm:$0xff] }
 0x186   : > { %v1236_v60 = vld [vmem:[#allocation2 + $0x98] sm:$0xff]  ;;  %v7051_v6 = vpop.f32.mrf.mxu3 }
 0x187   : > { %v1735_v56 = vadd.f32 %v1673_v22, %v1236_v60  ;;  %1201 = vst.msk [vmem:[#allocation2 + $0xa0] sm:$0xff] %vm172_vm1, %v1165_v7  ;;  %5698 = vmatmul.msk.bf16.vlgmr.msra.gmra.mxu1 %vm172_vm1, %v2935_v38  ;;  %v802_v7 = vld [vmem:[#allocation2 + $0xb8] sm:$0xff]  ;;  %v2948_v60 = vshll.u32 %v7093_v27, 16 }
 0x188   : > { %v1806_v0 = vld [vmem:[#allocation2 + $0x90] sm:$0xff]  ;;  %5794 = vmatmul.msk.bf16.vlgmr.msra.gmra.mxu2 %vm172_vm1, %v3483_v59 }
 0x189   : > { %v2304_v55 = vadd.f32 %v6954_v2, %v1806_v0  ;;  %1771 = vst.msk [vmem:[#allocation2 + $0x98] sm:$0xff] %vm172_vm1, %v1735_v56  ;;  %v2940_v2 = vshll.u32 %v7042_v51, 16  ;;  %v7114_v0 = vld [vmem:[%s6248_s25 + $0x34] sm:$0xff]  ;;  %v3496_v51 = vshll.u32 %v7100_v50, 16 }
 0x18a   : > { %v2375_v53 = vld [vmem:[#allocation2 + $0x88] sm:$0xff]  ;;  %v7057_v8 = vpop.f32.mrf.mxu0 }
 0x18b   : > { %2340 = vst.msk [vmem:[#allocation2 + $0x90] sm:$0xff] %vm172_vm1, %v2304_v55  ;;  %v2699_v46 = vadd.f32 %v6978_v58, %v2375_v53  ;;  %v1676_v12 = vpop.f32.mrf.mxu2  ;;  %v3484_v58 = vshrl.u32 %v6995_v9, 16  ;;  %v2942_v19 = vrot.slane %v2940_v2, 1  ;;  %v4489_v2 = vshll.u32 %v6161_v21, 16 }
 0x18c   : > { %v1107_v47 = vpop.f32.mrf.mxu1  ;;  %v3498_v18 = vrot.slane %v3496_v51, 1 }
 0x18d   : > { %2735 = vst.msk [vmem:[#allocation2 + $0x88] sm:$0xff] %vm172_vm1, %v2699_v46  ;;  %v1166_v20 = vadd.f32 %v1107_v47, %v800_v14  ;;  %5986 = vmatmul.msk.bf16.vlgmr.msra.gmra.mxu0 %vm172_vm1, %v4475_v44  ;;  %v3486_v9 = vor.u32 %v3484_v58, %v3482_v43  ;;  %v2943_v41 = vsel %vm2923_vm5, %v2938_v16, %v2942_v19  ;;  %v4482_v43 = vrot.slane %v4480_v1, 2 }
 0x18e   : > { %v1237_v61 = vld [vmem:[#allocation2 + $0xa0] sm:$0xff]  ;;  %v7074_v32 = vpop.f32.mrf.mxu3  ;;  %v2950_v14 = vrot.slane %v2948_v60, 1  ;;  %v4486_v47 = vshrl.u32 %v6161_v21, 16  ;;  %v4491_v1 = vrot.slane %v4489_v2, 2 }
 0x18f   : > { %v1736_v11 = vadd.f32 %v1676_v12, %v1237_v61  ;;  %1202 = vst.msk [vmem:[#allocation2 + $0xa8] sm:$0xff] %vm172_vm1, %v1166_v20  ;;  %v3491_v35 = vsel %vm2923_vm5, %v3486_v9, %v3490_v36  ;;  %v2946_v12 = vor.u32 %v2944_v26, %v2942_v19 }
 0x190   : > { %v1807_v28 = vld [vmem:[#allocation2 + $0x98] sm:$0xff]  ;;  %v4488_v33 = vrot.slane %v4486_v47, 1 }
 0x191   : > { %v2305_v15 = vadd.f32 %v6971_v24, %v1807_v28  ;;  %1772 = vst.msk [vmem:[#allocation2 + $0xa0] sm:$0xff] %vm172_vm1, %v1736_v11  ;;  %v4027_v24 = vsel %vm4020_vm4, %v4024_v23, %v4026_v63  ;;  %v7095_v23 = vor.u32 %v4482_v43, %v4479_v30  ;;  %v803_v11 = vld [vmem:[#allocation2 + $0xc0] sm:$0xff]  ;;  %v2951_v28 = vsel %vm2923_vm5, %v2946_v12, %v2950_v14  ;;  %v804_v43 = vld [vmem:[#allocation2 + $0xc8] sm:$0xff] }
 0x192   : > { %v2376_v37 = vld [vmem:[#allocation2 + $0x90] sm:$0xff]  ;;  %v7079_v42 = vpop.f32.mrf.mxu0  ;;  %v2952_v30 = vshrl.u32 %v7093_v27, 16 }
 0x193   : > { %2341 = vst.msk [vmem:[#allocation2 + $0x98] sm:$0xff] %vm172_vm1, %v2305_v15  ;;  %v2700_v39 = vadd.f32 %v7008_v17, %v2376_v37  ;;  %v1678_v31 = vpop.f32.mrf.mxu2  ;;  %5892 = vmatmul.msk.bf16.gmra.mxu3 %vm172_vm1, %v4027_v24 }
 0x194   : > { %v1110_v40 = vpop.f32.mrf.mxu1 }
 0x195   : > { %2736 = vst.msk [vmem:[#allocation2 + $0x90] sm:$0xff] %vm172_vm1, %v2700_v39  ;;  %v1167_v17 = vadd.f32 %v1110_v40, %v801_v34 }
 0x196   : > { %v1238_v29 = vld [vmem:[#allocation2 + $0xa8] sm:$0xff]  ;;  %v7102_v57 = vpop.f32.mrf.mxu3 }
 0x197   : > { %v1737_v22 = vadd.f32 %v1678_v31, %v1238_v29  ;;  %1203 = vst.msk [vmem:[#allocation2 + $0xb0] sm:$0xff] %vm172_vm1, %v1167_v17  ;;  %5699 = vmatmul.msk.bf16.gmra.mxu1 %vm172_vm1, %v2943_v41  ;;  %v7151_v31 = vld [vmem:[%s6248_s25 + $0x34] sm:$0xff] }
 0x198   : > { %v1808_v38 = vld [vmem:[#allocation2 + $0xa0] sm:$0xff]  ;;  %5795 = vmatmul.msk.bf16.gmra.mxu2 %vm172_vm1, %v3491_v35  ;;  %v2956_v35 = vshll.u32 %v7144_v5, 16  ;;  %v3504_v27 = vshll.u32 %v7151_v31, 16 }
 0x199   : > { %v2306_v54 = vadd.f32 %v7001_v4, %v1808_v38  ;;  %1773 = vst.msk [vmem:[#allocation2 + $0xa8] sm:$0xff] %vm172_vm1, %v1737_v22  ;;  %v4484_v4 = vsel %vm4458_vm6, %v7044_v62, %v7095_v23  ;;  %v4028_v62 = vrot.slane %v7114_v0, 1  ;;  %v7165_v22 = vld [vmem:[%s6248_s25 + $0x3c] sm:$0xff]  ;;  %v6162_v38 = vld [vmem:[%s6248_s25 + $0x34] sm:$0xff] }
 0x19a   : > { %v2377_v49 = vld [vmem:[#allocation2 + $0x98] sm:$0xff]  ;;  %v7108_v56 = vpop.f32.mrf.mxu0  ;;  %v4498_v60 = vshll.u32 %v6162_v38, 16  ;;  %v3506_v21 = vrot.slane %v3504_v27, 1 }
 0x19b   : > { %2342 = vst.msk [vmem:[#allocation2 + $0xa0] sm:$0xff] %vm172_vm1, %v2306_v54  ;;  %v2701_v52 = vadd.f32 %v7028_v10, %v2377_v49  ;;  %v1681_v45 = vpop.f32.mrf.mxu2  ;;  %v3492_v10 = vshrl.u32 %v7049_v3, 16  ;;  %v7195_v0 = vld [vmem:[%s6248_s25 + $0x34] sm:$0xff] }
 0x19c   : > { %v1112_v59 = vpop.f32.mrf.mxu1  ;;  %v4500_v2 = vrot.slane %v4498_v60, 2 }
 0x19d   : > { %2737 = vst.msk [vmem:[#allocation2 + $0x98] sm:$0xff] %vm172_vm1, %v2701_v52  ;;  %v1168_v55 = vadd.f32 %v1112_v59, %v802_v7  ;;  %5987 = vmatmul.msk.bf16.gmra.mxu0 %vm172_vm1, %v4484_v4  ;;  %v3494_v3 = vor.u32 %v3492_v10, %v3490_v36  ;;  %v2958_v7 = vrot.slane %v2956_v35, 1  ;;  %v4495_v59 = vshrl.u32 %v6162_v38, 16 }
 0x19e   : > { %v1239_v53 = vld [vmem:[#allocation2 + $0xb0] sm:$0xff]  ;;  %v7125_v58 = vpop.f32.mrf.mxu3 }
 0x19f   : > { %v1738_v46 = vadd.f32 %v1681_v45, %v1239_v53  ;;  %1204 = vst.msk [vmem:[#allocation2 + $0xb8] sm:$0xff] %vm172_vm1, %v1168_v55  ;;  %v3499_v15 = vsel %vm2923_vm5, %v3494_v3, %v3498_v18  ;;  %v2954_v45 = vor.u32 %v2952_v30, %v2950_v14  ;;  %v4497_v47 = vrot.slane %v4495_v59, 1 }
 0x1a0   : > { %v1809_v13 = vld [vmem:[#allocation2 + $0xa8] sm:$0xff] }
 0x1a1   : > { %v2307_v44 = vadd.f32 %v7022_v48, %v1809_v13  ;;  %1774 = vst.msk [vmem:[#allocation2 + $0xb0] sm:$0xff] %vm172_vm1, %v1738_v46  ;;  %v4029_v48 = vsel %vm4020_vm4, %v4026_v63, %v4028_v62  ;;  %v7146_v63 = vor.u32 %v4491_v1, %v4488_v33  ;;  %v805_v46 = vld [vmem:[#allocation2 + $0xd0] sm:$0xff]  ;;  %v2959_v13 = vsel %vm2923_vm5, %v2954_v45, %v2958_v7  ;;  %v806_v1 = vld [vmem:[#allocation2 + $0xd8] sm:$0xff] }
 0x1a2   : > { %v2378_v20 = vld [vmem:[#allocation2 + $0xa0] sm:$0xff]  ;;  %v7130_v19 = vpop.f32.mrf.mxu0  ;;  %v2960_v33 = vshrl.u32 %v7144_v5, 16 }
 0x1a3   : > { %2343 = vst.msk [vmem:[#allocation2 + $0xa8] sm:$0xff] %vm172_vm1, %v2307_v44  ;;  %v2702_v25 = vadd.f32 %v7057_v8, %v2378_v20  ;;  %v1683_v61 = vpop.f32.mrf.mxu2  ;;  %5893 = vmatmul.msk.bf16.gmra.mxu3 %vm172_vm1, %v4029_v48 }
 0x1a4   : > { %v1115_v16 = vpop.f32.mrf.mxu1 }
 0x1a5   : > { %2738 = vst.msk [vmem:[#allocation2 + $0xa0] sm:$0xff] %vm172_vm1, %v2702_v25  ;;  %v1169_v8 = vadd.f32 %v1115_v16, %v803_v11 }
 0x1a6   : > { %v1240_v9 = vld [vmem:[#allocation2 + $0xb8] sm:$0xff]  ;;  %v7153_v40 = vpop.f32.mrf.mxu3 }
 0x1a7   : > { %v1739_v36 = vadd.f32 %v1683_v61, %v1240_v9  ;;  %1205 = vst.msk [vmem:[#allocation2 + $0xc0] sm:$0xff] %vm172_vm1, %v1169_v8  ;;  %5700 = vmatmul.msk.bf16.gmra.mxu1 %vm172_vm1, %v2951_v28  ;;  %v7202_v61 = vld [vmem:[%s6248_s25 + $0x3c] sm:$0xff] }
 0x1a8   : > { %v1810_v37 = vld [vmem:[#allocation2 + $0xb0] sm:$0xff]  ;;  %5796 = vmatmul.msk.bf16.gmra.mxu2 %vm172_vm1, %v3499_v15  ;;  %v2964_v15 = vshll.u32 %v7195_v0, 16  ;;  %v3512_v5 = vshll.u32 %v7202_v61, 16 }
 0x1a9   : > { %v2308_v39 = vadd.f32 %v7051_v6, %v1810_v37  ;;  %1775 = vst.msk [vmem:[#allocation2 + $0xb8] sm:$0xff] %vm172_vm1, %v1739_v36  ;;  %v4493_v6 = vsel %vm4458_vm6, %v7095_v23, %v7146_v63  ;;  %v4030_v23 = vrot.slane %v7165_v22, 1  ;;  %v7216_v36 = vld [vmem:[%s6248_s25 + $0x44] sm:$0xff]  ;;  %v6163_v37 = vld [vmem:[%s6248_s25 + $0x3c] sm:$0xff] }
 0x1aa   : > { %v2379_v34 = vld [vmem:[#allocation2 + $0xa8] sm:$0xff]  ;;  %v7159_v29 = vpop.f32.mrf.mxu0  ;;  %v4507_v35 = vshll.u32 %v6163_v37, 16  ;;  %v3514_v38 = vrot.slane %v3512_v5, 1  ;;  %v7246_v22 = vld [vmem:[%s6248_s25 + $0x3c] sm:$0xff] }
 0x1ab   : > { %2344 = vst.msk [vmem:[#allocation2 + $0xb0] sm:$0xff] %vm172_vm1, %v2308_v39  ;;  %v2703_v41 = vadd.f32 %v7079_v42, %v2379_v34  ;;  %v1686_v24 = vpop.f32.mrf.mxu2  ;;  %v3500_v42 = vshrl.u32 %v7100_v50, 16 }
 0x1ac   : > { %v1117_v17 = vpop.f32.mrf.mxu1  ;;  %v4509_v60 = vrot.slane %v4507_v35, 2 }
 0x1ad   : > { %2739 = vst.msk [vmem:[#allocation2 + $0xa8] sm:$0xff] %vm172_vm1, %v2703_v41  ;;  %v1170_v54 = vadd.f32 %v1117_v17, %v804_v43  ;;  %5988 = vmatmul.msk.bf16.gmra.mxu0 %vm172_vm1, %v4493_v6  ;;  %v3502_v50 = vor.u32 %v3500_v42, %v3498_v18  ;;  %v2966_v43 = vrot.slane %v2964_v15, 1  ;;  %v4504_v17 = vshrl.u32 %v6163_v37, 16 }
 0x1ae   : > { %v1241_v49 = vld [vmem:[#allocation2 + $0xc0] sm:$0xff]  ;;  %v7176_v10 = vpop.f32.mrf.mxu3 }
 0x1af   : > { %v1740_v52 = vadd.f32 %v1686_v24, %v1241_v49  ;;  %1206 = vst.msk [vmem:[#allocation2 + $0xc8] sm:$0xff] %vm172_vm1, %v1170_v54  ;;  %v3507_v44 = vsel %vm2923_vm5, %v3502_v50, %v3506_v21  ;;  %v2962_v24 = vor.u32 %v2960_v33, %v2958_v7  ;;  %v4506_v59 = vrot.slane %v4504_v17, 1 }
 0x1b0   : > { %v1811_v26 = vld [vmem:[#allocation2 + $0xb8] sm:$0xff] }
 0x1b1   : > { %v2309_v4 = vadd.f32 %v7074_v32, %v1811_v26  ;;  %1776 = vst.msk [vmem:[#allocation2 + $0xc0] sm:$0xff] %vm172_vm1, %v1740_v52  ;;  %v4031_v32 = vsel %vm4020_vm4, %v4028_v62, %v4030_v23  ;;  %v7197_v62 = vor.u32 %v4500_v2, %v4497_v47  ;;  %v807_v52 = vld [vmem:[#allocation2 + $0xe0] sm:$0xff]  ;;  %v2967_v26 = vsel %vm2923_vm5, %v2962_v24, %v2966_v43  ;;  %v808_v2 = vld [vmem:[#allocation2 + $0xe8] sm:$0xff] }
 0x1b2   : > { %v2380_v55 = vld [vmem:[#allocation2 + $0xb0] sm:$0xff]  ;;  %v7181_v14 = vpop.f32.mrf.mxu0  ;;  %v2968_v47 = vshrl.u32 %v7195_v0, 16 }
 0x1b3   : > { %2345 = vst.msk [vmem:[#allocation2 + $0xb8] sm:$0xff] %vm172_vm1, %v2309_v4  ;;  %v2704_v51 = vadd.f32 %v7108_v56, %v2380_v55  ;;  %v1688_v53 = vpop.f32.mrf.mxu2  ;;  %5894 = vmatmul.msk.bf16.gmra.mxu3 %vm172_vm1, %v4031_v32 }
 0x1b4   : > { %v1120_v12 = vpop.f32.mrf.mxu1 }
 0x1b5   : > { %2740 = vst.msk [vmem:[#allocation2 + $0xb0] sm:$0xff] %vm172_vm1, %v2704_v51  ;;  %v1171_v56 = vadd.f32 %v1120_v12, %v805_v46 }
 0x1b6   : > { %v1242_v3 = vld [vmem:[#allocation2 + $0xc8] sm:$0xff]  ;;  %v7204_v16 = vpop.f32.mrf.mxu3 }
 0x1b7   : > { %v1741_v18 = vadd.f32 %v1688_v53, %v1242_v3  ;;  %1207 = vst.msk [vmem:[#allocation2 + $0xd0] sm:$0xff] %vm172_vm1, %v1171_v56  ;;  %5701 = vmatmul.msk.bf16.gmra.mxu1 %vm172_vm1, %v2959_v13  ;;  %v7253_v53 = vld [vmem:[%s6248_s25 + $0x44] sm:$0xff] }
 0x1b8   : > { %v1812_v20 = vld [vmem:[#allocation2 + $0xc0] sm:$0xff]  ;;  %5797 = vmatmul.msk.bf16.gmra.mxu2 %vm172_vm1, %v3507_v44  ;;  %v2972_v44 = vshll.u32 %v7246_v22, 16  ;;  %v3520_v0 = vshll.u32 %v7253_v53, 16 }
 0x1b9   : > { %v2310_v25 = vadd.f32 %v7102_v57, %v1812_v20  ;;  %1777 = vst.msk [vmem:[#allocation2 + $0xc8] sm:$0xff] %vm172_vm1, %v1741_v18  ;;  %v4502_v57 = vsel %vm4458_vm6, %v7146_v63, %v7197_v62  ;;  %v4032_v63 = vrot.slane %v7216_v36, 1  ;;  %v7267_v18 = vld [vmem:[%s6248_s25 + $0x4c] sm:$0xff]  ;;  %v6164_v20 = vld [vmem:[%s6248_s25 + $0x44] sm:$0xff] }
 0x1ba   : > { %v2381_v11 = vld [vmem:[#allocation2 + $0xb8] sm:$0xff]  ;;  %v7210_v9 = vpop.f32.mrf.mxu0  ;;  %v4516_v15 = vshll.u32 %v6164_v20, 16  ;;  %v3522_v37 = vrot.slane %v3520_v0, 1  ;;  %v7297_v36 = vld [vmem:[%s6248_s25 + $0x44] sm:$0xff] }
 0x1bb   : > { %2346 = vst.msk [vmem:[#allocation2 + $0xc0] sm:$0xff] %vm172_vm1, %v2310_v25  ;;  %v2705_v28 = vadd.f32 %v7130_v19, %v2381_v11  ;;  %v1691_v48 = vpop.f32.mrf.mxu2  ;;  %v3508_v19 = vshrl.u32 %v7151_v31, 16 }
 0x1bc   : > { %v1122_v8 = vpop.f32.mrf.mxu1  ;;  %v4518_v35 = vrot.slane %v4516_v15, 2 }
 0x1bd   : > { %2741 = vst.msk [vmem:[#allocation2 + $0xb8] sm:$0xff] %vm172_vm1, %v2705_v28  ;;  %v1172_v39 = vadd.f32 %v1122_v8, %v806_v1  ;;  %5989 = vmatmul.msk.bf16.gmra.mxu0 %vm172_vm1, %v4502_v57  ;;  %v3510_v31 = vor.u32 %v3508_v19, %v3506_v21  ;;  %v2974_v1 = vrot.slane %v2972_v44, 1  ;;  %v4513_v8 = vshrl.u32 %v6164_v20, 16 }
 0x1be   : > { %v1243_v34 = vld [vmem:[#allocation2 + $0xd0] sm:$0xff]  ;;  %v7227_v42 = vpop.f32.mrf.mxu3 }
 0x1bf   : > { %v1742_v41 = vadd.f32 %v1691_v48, %v1243_v34  ;;  %1208 = vst.msk [vmem:[#allocation2 + $0xd8] sm:$0xff] %vm172_vm1, %v1172_v39  ;;  %v3515_v4 = vsel %vm2923_vm5, %v3510_v31, %v3514_v38  ;;  %v2970_v48 = vor.u32 %v2968_v47, %v2966_v43  ;;  %v4515_v17 = vrot.slane %v4513_v8, 1 }
 0x1c0   : > { %v1813_v30 = vld [vmem:[#allocation2 + $0xc8] sm:$0xff] }
 0x1c1   : > { %v2311_v6 = vadd.f32 %v7125_v58, %v1813_v30  ;;  %1778 = vst.msk [vmem:[#allocation2 + $0xd0] sm:$0xff] %vm172_vm1, %v1742_v41  ;;  %v4033_v58 = vsel %vm4020_vm4, %v4030_v23, %v4032_v63  ;;  %v7248_v23 = vor.u32 %v4509_v60, %v4506_v59  ;;  %v809_v41 = vld [vmem:[#allocation2 + $0xf0] sm:$0xff]  ;;  %v2975_v30 = vsel %vm2923_vm5, %v2970_v48, %v2974_v1  ;;  %v810_v60 = vld [vmem:[#allocation2 + $0xf8] sm:$0xff] }
 0x1c2   : > { %v2382_v54 = vld [vmem:[#allocation2 + $0xc0] sm:$0xff]  ;;  %v7232_v7 = vpop.f32.mrf.mxu0  ;;  %v2976_v59 = vshrl.u32 %v7246_v22, 16 }
 0x1c3   : > { %2347 = vst.msk [vmem:[#allocation2 + $0xc8] sm:$0xff] %vm172_vm1, %v2311_v6  ;;  %v2706_v27 = vadd.f32 %v7159_v29, %v2382_v54  ;;  %v1693_v49 = vpop.f32.mrf.mxu2  ;;  %5895 = vmatmul.msk.bf16.gmra.mxu3 %vm172_vm1, %v4033_v58 }
 0x1c4   : > { %v1125_v45 = vpop.f32.mrf.mxu1 }
 0x1c5   : > { %2742 = vst.msk [vmem:[#allocation2 + $0xc0] sm:$0xff] %vm172_vm1, %v2706_v27  ;;  %v1173_v29 = vadd.f32 %v1125_v45, %v807_v52 }
 0x1c6   : > { %v1244_v50 = vld [vmem:[#allocation2 + $0xd8] sm:$0xff]  ;;  %v7255_v12 = vpop.f32.mrf.mxu3 }
 0x1c7   : > { %v1743_v21 = vadd.f32 %v1693_v49, %v1244_v50  ;;  %1209 = vst.msk [vmem:[#allocation2 + $0xe0] sm:$0xff] %vm172_vm1, %v1173_v29  ;;  %5702 = vmatmul.msk.bf16.gmra.mxu1 %vm172_vm1, %v2967_v26  ;;  %v7304_v49 = vld [vmem:[%s6248_s25 + $0x4c] sm:$0xff] }
 0x1c8   : > { %v1814_v55 = vld [vmem:[#allocation2 + $0xd0] sm:$0xff]  ;;  %5798 = vmatmul.msk.bf16.gmra.mxu2 %vm172_vm1, %v3515_v4  ;;  %v2980_v4 = vshll.u32 %v7297_v36, 16  ;;  %v3528_v22 = vshll.u32 %v7304_v49, 16 }
 0x1c9   : > { %v2312_v51 = vadd.f32 %v7153_v40, %v1814_v55  ;;  %1779 = vst.msk [vmem:[#allocation2 + $0xd8] sm:$0xff] %vm172_vm1, %v1743_v21  ;;  %v4511_v40 = vsel %vm4458_vm6, %v7197_v62, %v7248_v23  ;;  %v4034_v62 = vrot.slane %v7267_v18, 1  ;;  %v7318_v21 = vld [vmem:[%s6248_s25 + $0x54] sm:$0xff]  ;;  %v6165_v55 = vld [vmem:[%s6248_s25 + $0x4c] sm:$0xff] }
 0x1ca   : > { %v2383_v46 = vld [vmem:[#allocation2 + $0xc8] sm:$0xff]  ;;  %v7261_v3 = vpop.f32.mrf.mxu0  ;;  %v4525_v44 = vshll.u32 %v6165_v55, 16  ;;  %v3530_v20 = vrot.slane %v3528_v22, 1 }
 0x1cb   : > { %2348 = vst.msk [vmem:[#allocation2 + $0xd0] sm:$0xff] %vm172_vm1, %v2312_v51  ;;  %v2707_v13 = vadd.f32 %v7181_v14, %v2383_v46  ;;  %v1696_v32 = vpop.f32.mrf.mxu2  ;;  %v3516_v14 = vshrl.u32 %v7202_v61, 16  ;;  %v7348_v18 = vld [vmem:[%s6248_s25 + $0x4c] sm:$0xff] }
 0x1cc   : > { %v1127_v56 = vpop.f32.mrf.mxu1  ;;  %v4527_v15 = vrot.slane %v4525_v44, 2 }
 0x1cd   : > { %2743 = vst.msk [vmem:[#allocation2 + $0xc8] sm:$0xff] %vm172_vm1, %v2707_v13  ;;  %v1174_v25 = vadd.f32 %v1127_v56, %v808_v2  ;;  %5990 = vmatmul.msk.bf16.gmra.mxu0 %vm172_vm1, %v4511_v40  ;;  %v3518_v61 = vor.u32 %v3516_v14, %v3514_v38  ;;  %v2982_v2 = vrot.slane %v2980_v4, 1  ;;  %v4522_v56 = vshrl.u32 %v6165_v55, 16 }
 0x1ce   : > { %v1245_v11 = vld [vmem:[#allocation2 + $0xe0] sm:$0xff]  ;;  %v7278_v19 = vpop.f32.mrf.mxu3 }
 0x1cf   : > { %v1744_v28 = vadd.f32 %v1696_v32, %v1245_v11  ;;  %1210 = vst.msk [vmem:[#allocation2 + $0xe8] sm:$0xff] %vm172_vm1, %v1174_v25  ;;  %v3523_v6 = vsel %vm2923_vm5, %v3518_v61, %v3522_v37  ;;  %v2978_v32 = vor.u32 %v2976_v59, %v2974_v1  ;;  %v4524_v8 = vrot.slane %v4522_v56, 1 }
 0x1d0   : > { %v1815_v33 = vld [vmem:[#allocation2 + $0xd8] sm:$0xff] }
 0x1d1   : > { %v2313_v57 = vadd.f32 %v7176_v10, %v1815_v33  ;;  %1780 = vst.msk [vmem:[#allocation2 + $0xe0] sm:$0xff] %vm172_vm1, %v1744_v28  ;;  %v4035_v10 = vsel %vm4020_vm4, %v4032_v63, %v4034_v62  ;;  %v7299_v63 = vor.u32 %v4518_v35, %v4515_v17  ;;  %v811_v28 = vld [vmem:[#allocation2 + $0x100] sm:$0xff]  ;;  %v2983_v33 = vsel %vm2923_vm5, %v2978_v32, %v2982_v2  ;;  %v812_v35 = vld [vmem:[#allocation2 + $0x108] sm:$0xff] }
 0x1d2   : > { %v2384_v39 = vld [vmem:[#allocation2 + $0xd0] sm:$0xff]  ;;  %v7283_v43 = vpop.f32.mrf.mxu0  ;;  %v2984_v17 = vshrl.u32 %v7297_v36, 16 }
 0x1d3   : > { %2349 = vst.msk [vmem:[#allocation2 + $0xd8] sm:$0xff] %vm172_vm1, %v2313_v57  ;;  %v2708_v5 = vadd.f32 %v7210_v9, %v2384_v39  ;;  %v1698_v34 = vpop.f32.mrf.mxu2  ;;  %5896 = vmatmul.msk.bf16.gmra.mxu3 %vm172_vm1, %v4035_v10 }
 0x1d4   : > { %v1130_v24 = vpop.f32.mrf.mxu1 }
 0x1d5   : > { %2744 = vst.msk [vmem:[#allocation2 + $0xd0] sm:$0xff] %vm172_vm1, %v2708_v5  ;;  %v1175_v9 = vadd.f32 %v1130_v24, %v809_v41 }
 0x1d6   : > { %v1246_v31 = vld [vmem:[#allocation2 + $0xe8] sm:$0xff]  ;;  %v7306_v45 = vpop.f32.mrf.mxu3 }
 0x1d7   : > { %v1745_v38 = vadd.f32 %v1698_v34, %v1246_v31  ;;  %1211 = vst.msk [vmem:[#allocation2 + $0xf0] sm:$0xff] %vm172_vm1, %v1175_v9  ;;  %5703 = vmatmul.msk.bf16.gmra.mxu1 %vm172_vm1, %v2975_v30  ;;  %v7355_v34 = vld [vmem:[%s6248_s25 + $0x54] sm:$0xff] }
 0x1d8   : > { %v1816_v54 = vld [vmem:[#allocation2 + $0xe0] sm:$0xff]  ;;  %5799 = vmatmul.msk.bf16.gmra.mxu2 %vm172_vm1, %v3523_v6  ;;  %v2988_v6 = vshll.u32 %v7348_v18, 16  ;;  %v3536_v36 = vshll.u32 %v7355_v34, 16 }
 0x1d9   : > { %v2314_v27 = vadd.f32 %v7204_v16, %v1816_v54  ;;  %1781 = vst.msk [vmem:[#allocation2 + $0xe8] sm:$0xff] %vm172_vm1, %v1745_v38  ;;  %v4520_v16 = vsel %vm4458_vm6, %v7248_v23, %v7299_v63  ;;  %v4036_v23 = vrot.slane %v7318_v21, 1  ;;  %v7369_v38 = vld [vmem:[%s6248_s25 + $0x5c] sm:$0xff]  ;;  %v6166_v54 = vld [vmem:[%s6248_s25 + $0x54] sm:$0xff] }
 0x1da   : > { %v2385_v52 = vld [vmem:[#allocation2 + $0xd8] sm:$0xff]  ;;  %v7312_v50 = vpop.f32.mrf.mxu0  ;;  %v4534_v4 = vshll.u32 %v6166_v54, 16  ;;  %v3538_v55 = vrot.slane %v3536_v36, 1 }
 0x1db   : > { %2350 = vst.msk [vmem:[#allocation2 + $0xe0] sm:$0xff] %vm172_vm1, %v2314_v27  ;;  %v2709_v26 = vadd.f32 %v7232_v7, %v2385_v52  ;;  %v1701_v58 = vpop.f32.mrf.mxu2  ;;  %v3524_v7 = vshrl.u32 %v7253_v53, 16  ;;  %v7399_v21 = vld [vmem:[%s6248_s25 + $0x54] sm:$0xff] }
 0x1dc   : > { %v1132_v29 = vpop.f32.mrf.mxu1  ;;  %v4536_v44 = vrot.slane %v4534_v4, 2 }
 0x1dd   : > { %2745 = vst.msk [vmem:[#allocation2 + $0xd8] sm:$0xff] %vm172_vm1, %v2709_v26  ;;  %v1176_v51 = vadd.f32 %v1132_v29, %v810_v60  ;;  %5991 = vmatmul.msk.bf16.gmra.mxu0 %vm172_vm1, %v4520_v16  ;;  %v3526_v53 = vor.u32 %v3524_v7, %v3522_v37  ;;  %v2990_v60 = vrot.slane %v2988_v6, 1  ;;  %v4531_v29 = vshrl.u32 %v6166_v54, 16 }
 0x1de   : > { %v1247_v46 = vld [vmem:[#allocation2 + $0xf0] sm:$0xff]  ;;  %v7329_v14 = vpop.f32.mrf.mxu3 }
 0x1df   : > { %v1746_v13 = vadd.f32 %v1701_v58, %v1247_v46  ;;  %1212 = vst.msk [vmem:[#allocation2 + $0xf8] sm:$0xff] %vm172_vm1, %v1176_v51  ;;  %v3531_v57 = vsel %vm2923_vm5, %v3526_v53, %v3530_v20  ;;  %v2986_v58 = vor.u32 %v2984_v17, %v2982_v2  ;;  %v4533_v56 = vrot.slane %v4531_v29, 1 }
 0x1e0   : > { %v1817_v47 = vld [vmem:[#allocation2 + $0xe8] sm:$0xff] }
 0x1e1   : > { %v2315_v40 = vadd.f32 %v7227_v42, %v1817_v47  ;;  %1782 = vst.msk [vmem:[#allocation2 + $0xf0] sm:$0xff] %vm172_vm1, %v1746_v13  ;;  %v4037_v42 = vsel %vm4020_vm4, %v4034_v62, %v4036_v23  ;;  %v7350_v62 = vor.u32 %v4527_v15, %v4524_v8  ;;  %v813_v13 = vld [vmem:[#allocation2 + $0x110] sm:$0xff]  ;;  %v2991_v47 = vsel %vm2923_vm5, %v2986_v58, %v2990_v60  ;;  %v814_v15 = vld [vmem:[#allocation2 + $0x118] sm:$0xff] }
 0x1e2   : > { %v2386_v25 = vld [vmem:[#allocation2 + $0xe0] sm:$0xff]  ;;  %v7334_v1 = vpop.f32.mrf.mxu0  ;;  %v2992_v8 = vshrl.u32 %v7348_v18, 16 }
 0x1e3   : > { %2351 = vst.msk [vmem:[#allocation2 + $0xe8] sm:$0xff] %vm172_vm1, %v2315_v40  ;;  %v2710_v0 = vadd.f32 %v7261_v3, %v2386_v25  ;;  %v1703_v11 = vpop.f32.mrf.mxu2  ;;  %5897 = vmatmul.msk.bf16.gmra.mxu3 %vm172_vm1, %v4037_v42 }
 0x1e4   : > { %v1135_v48 = vpop.f32.mrf.mxu1 }
 0x1e5   : > { %2746 = vst.msk [vmem:[#allocation2 + $0xe0] sm:$0xff] %vm172_vm1, %v2710_v0  ;;  %v1177_v3 = vadd.f32 %v1135_v48, %v811_v28 }
 0x1e6   : > { %v1248_v61 = vld [vmem:[#allocation2 + $0xf8] sm:$0xff]  ;;  %v7357_v24 = vpop.f32.mrf.mxu3 }
 0x1e7   : > { %v1747_v37 = vadd.f32 %v1703_v11, %v1248_v61  ;;  %1213 = vst.msk [vmem:[#allocation2 + $0x100] sm:$0xff] %vm172_vm1, %v1177_v3  ;;  %5704 = vmatmul.msk.bf16.gmra.mxu1 %vm172_vm1, %v2983_v33  ;;  %v7406_v11 = vld [vmem:[%s6248_s25 + $0x5c] sm:$0xff] }
 0x1e8   : > { %v1818_v39 = vld [vmem:[#allocation2 + $0xf0] sm:$0xff]  ;;  %5800 = vmatmul.msk.bf16.gmra.mxu2 %vm172_vm1, %v3531_v57  ;;  %v2996_v57 = vshll.u32 %v7399_v21, 16  ;;  %v3544_v18 = vshll.u32 %v7406_v11, 16 }
 0x1e9   : > { %v2316_v5 = vadd.f32 %v7255_v12, %v1818_v39  ;;  %1783 = vst.msk [vmem:[#allocation2 + $0xf8] sm:$0xff] %vm172_vm1, %v1747_v37  ;;  %v4529_v12 = vsel %vm4458_vm6, %v7299_v63, %v7350_v62  ;;  %v4038_v63 = vrot.slane %v7369_v38, 1  ;;  %v7420_v37 = vld [vmem:[%s6248_s25 + $0x64] sm:$0xff]  ;;  %v6167_v39 = vld [vmem:[%s6248_s25 + $0x5c] sm:$0xff] }
 0x1ea   : > { %v2387_v41 = vld [vmem:[#allocation2 + $0xe8] sm:$0xff]  ;;  %v7363_v31 = vpop.f32.mrf.mxu0  ;;  %v4543_v6 = vshll.u32 %v6167_v39, 16  ;;  %v3546_v54 = vrot.slane %v3544_v18, 1  ;;  %v7450_v38 = vld [vmem:[%s6248_s25 + $0x5c] sm:$0xff] }
 0x1eb   : > { %2352 = vst.msk [vmem:[#allocation2 + $0xf0] sm:$0xff] %vm172_vm1, %v2316_v5  ;;  %v2711_v30 = vadd.f32 %v7283_v43, %v2387_v41  ;;  %v1706_v10 = vpop.f32.mrf.mxu2  ;;  %v3532_v43 = vshrl.u32 %v7304_v49, 16 }
 0x1ec   : > { %v1137_v9 = vpop.f32.mrf.mxu1  ;;  %v4545_v4 = vrot.slane %v4543_v6, 2 }
 0x1ed   : > { %2747 = vst.msk [vmem:[#allocation2 + $0xe8] sm:$0xff] %vm172_vm1, %v2711_v30  ;;  %v1178_v27 = vadd.f32 %v1137_v9, %v812_v35  ;;  %5992 = vmatmul.msk.bf16.gmra.mxu0 %vm172_vm1, %v4529_v12  ;;  %v3534_v49 = vor.u32 %v3532_v43, %v3530_v20  ;;  %v2998_v35 = vrot.slane %v2996_v57, 1  ;;  %v4540_v9 = vshrl.u32 %v6167_v39, 16 }
 0x1ee   : > { %v1249_v52 = vld [vmem:[#allocation2 + $0x100] sm:$0xff]  ;;  %v7380_v7 = vpop.f32.mrf.mxu3 }
 0x1ef   : > { %v1748_v26 = vadd.f32 %v1706_v10, %v1249_v52  ;;  %1214 = vst.msk [vmem:[#allocation2 + $0x108] sm:$0xff] %vm172_vm1, %v1178_v27  ;;  %v3539_v40 = vsel %vm2923_vm5, %v3534_v49, %v3538_v55  ;;  %v2994_v10 = vor.u32 %v2992_v8, %v2990_v60  ;;  %v4542_v29 = vrot.slane %v4540_v9, 1 }
 0x1f0   : > { %v1819_v59 = vld [vmem:[#allocation2 + $0xf8] sm:$0xff] }
 0x1f1   : > { %v2317_v16 = vadd.f32 %v7278_v19, %v1819_v59  ;;  %1784 = vst.msk [vmem:[#allocation2 + $0x100] sm:$0xff] %vm172_vm1, %v1748_v26  ;;  %v4039_v19 = vsel %vm4020_vm4, %v4036_v23, %v4038_v63  ;;  %v7401_v23 = vor.u32 %v4536_v44, %v4533_v56  ;;  %v2754_v26 = vld [vmem:[#allocation2] sm:$0xff]  ;;  %v2999_v59 = vsel %vm2923_vm5, %v2994_v10, %v2998_v35  ;;  %v2755_v44 = vld [vmem:[#allocation2 + $0x8] sm:$0xff] }
 0x1f2   : > { %v2388_v51 = vld [vmem:[#allocation2 + $0xf0] sm:$0xff]  ;;  %v7385_v2 = vpop.f32.mrf.mxu0  ;;  %v3000_v56 = vshrl.u32 %v7399_v21, 16 }
 0x1f3   : > { %2353 = vst.msk [vmem:[#allocation2 + $0xf8] sm:$0xff] %vm172_vm1, %v2317_v16  ;;  %v2712_v22 = vadd.f32 %v7312_v50, %v2388_v51  ;;  %v1708_v46 = vpop.f32.mrf.mxu2  ;;  %5898 = vmatmul.msk.bf16.gmra.mxu3 %vm172_vm1, %v4039_v19 }
 0x1f4   : > { %v1140_v32 = vpop.f32.mrf.mxu1 }
 0x1f5   : > { %2748 = vst.msk [vmem:[#allocation2 + $0xf0] sm:$0xff] %vm172_vm1, %v2712_v22  ;;  %v1179_v50 = vadd.f32 %v1140_v32, %v813_v13 }
 0x1f6   : > { %v1250_v53 = vld [vmem:[#allocation2 + $0x108] sm:$0xff]  ;;  %v7408_v48 = vpop.f32.mrf.mxu3 }
 0x1f7   : > { %v1749_v20 = vadd.f32 %v1708_v46, %v1250_v53  ;;  %1215 = vst.msk [vmem:[#allocation2 + $0x110] sm:$0xff] %vm172_vm1, %v1179_v50  ;;  %5705 = vmatmul.msk.bf16.gmra.mxu1 %vm172_vm1, %v2991_v47  ;;  %v7457_v46 = vld [vmem:[%s6248_s25 + $0x64] sm:$0xff] }
 0x1f8   : > { %v1820_v25 = vld [vmem:[#allocation2 + $0x100] sm:$0xff]  ;;  %5801 = vmatmul.msk.bf16.gmra.mxu2 %vm172_vm1, %v3539_v40  ;;  %v3004_v40 = vshll.u32 %v7450_v38, 16  ;;  %v3552_v21 = vshll.u32 %v7457_v46, 16 }
 0x1f9   : > { %v2318_v0 = vadd.f32 %v7306_v45, %v1820_v25  ;;  %1785 = vst.msk [vmem:[#allocation2 + $0x108] sm:$0xff] %vm172_vm1, %v1749_v20  ;;  %v4538_v45 = vsel %vm4458_vm6, %v7350_v62, %v7401_v23  ;;  %v4040_v62 = vrot.slane %v7420_v37, 1  ;;  %v7471_v20 = vld [vmem:[%s6248_s25 + $0x6c] sm:$0xff]  ;;  %v6168_v25 = vld [vmem:[%s6248_s25 + $0x64] sm:$0xff] }
 0x1fa   : > { %v2389_v28 = vld [vmem:[#allocation2 + $0xf8] sm:$0xff]  ;;  %v7414_v61 = vpop.f32.mrf.mxu0  ;;  %v4552_v57 = vshll.u32 %v6168_v25, 16  ;;  %v3554_v39 = vrot.slane %v3552_v21, 1  ;;  %v7501_v37 = vld [vmem:[%s6248_s25 + $0x64] sm:$0xff] }
 0x1fb   : > { %2354 = vst.msk [vmem:[#allocation2 + $0x100] sm:$0xff] %vm172_vm1, %v2318_v0  ;;  %v2713_v33 = vadd.f32 %v7334_v1, %v2389_v28  ;;  %v1711_v42 = vpop.f32.mrf.mxu2  ;;  %v3540_v1 = vshrl.u32 %v7355_v34, 16 }
 0x1fc   : > { %v1142_v3 = vpop.f32.mrf.mxu1  ;;  %v4554_v6 = vrot.slane %v4552_v57, 2 }
 0x1fd   : > { %2749 = vst.msk [vmem:[#allocation2 + $0xf8] sm:$0xff] %vm172_vm1, %v2713_v33  ;;  %v1180_v5 = vadd.f32 %v1142_v3, %v814_v15  ;;  %5993 = vmatmul.msk.bf16.gmra.mxu0 %vm172_vm1, %v4538_v45  ;;  %v3542_v34 = vor.u32 %v3540_v1, %v3538_v55  ;;  %v3006_v15 = vrot.slane %v3004_v40, 1  ;;  %v4549_v3 = vshrl.u32 %v6168_v25, 16 }
 0x1fe   : > { %v1251_v41 = vld [vmem:[#allocation2 + $0x110] sm:$0xff]  ;;  %v7431_v43 = vpop.f32.mrf.mxu3 }
 0x1ff   : > { %v1750_v30 = vadd.f32 %v1711_v42, %v1251_v41  ;;  %1216 = vst.msk [vmem:[#allocation2 + $0x118] sm:$0xff] %vm172_vm1, %v1180_v5  ;;  %v3547_v16 = vsel %vm2923_vm5, %v3542_v34, %v3546_v54  ;;  %v3002_v42 = vor.u32 %v3000_v56, %v2998_v35  ;;  %v4551_v9 = vrot.slane %v4549_v3, 1 }
 0x200   : > { %v1821_v17 = vld [vmem:[#allocation2 + $0x108] sm:$0xff] }
 0x201   : > { %v2319_v12 = vadd.f32 %v7329_v14, %v1821_v17  ;;  %1786 = vst.msk [vmem:[#allocation2 + $0x110] sm:$0xff] %vm172_vm1, %v1750_v30  ;;  %v4041_v14 = vsel %vm4020_vm4, %v4038_v63, %v4040_v62  ;;  %v7452_v63 = vor.u32 %v4545_v4, %v4542_v29  ;;  %v2756_v30 = vld [vmem:[#allocation2 + $0x10] sm:$0xff]  ;;  %v3007_v17 = vsel %vm2923_vm5, %v3002_v42, %v3006_v15  ;;  %v2757_v4 = vld [vmem:[#allocation2 + $0x18] sm:$0xff] }
 0x202   : > { %v2390_v27 = vld [vmem:[#allocation2 + $0x100] sm:$0xff]  ;;  %v7436_v60 = vpop.f32.mrf.mxu0  ;;  %v3008_v29 = vshrl.u32 %v7450_v38, 16 }
 0x203   : > { %2355 = vst.msk [vmem:[#allocation2 + $0x108] sm:$0xff] %vm172_vm1, %v2319_v12  ;;  %v2714_v36 = vadd.f32 %v7363_v31, %v2390_v27  ;;  %v1713_v52 = vpop.f32.mrf.mxu2  ;;  %5899 = vmatmul.msk.bf16.gmra.mxu3 %vm172_vm1, %v4041_v14 }
 0x204   : > { %v3141_v58 = vpop.f32.mrf.mxu1 }
 0x205   : > { %2750 = vst.msk [vmem:[#allocation2 + $0x100] sm:$0xff] %vm172_vm1, %v2714_v36  ;;  %v3231_v31 = vadd.f32 %v3141_v58, %v2754_v26 }
 0x206   : > { %v1252_v49 = vld [vmem:[#allocation2 + $0x118] sm:$0xff]  ;;  %v7459_v32 = vpop.f32.mrf.mxu3 }
 0x207   : > { %v1751_v55 = vadd.f32 %v1713_v52, %v1252_v49  ;;  %3267 = vst.msk [vmem:[#allocation2] sm:$0xff] %vm172_vm1, %v3231_v31  ;;  %5706 = vmatmul.msk.bf16.gmra.mxu1 %vm172_vm1, %v2999_v59  ;;  %v7508_v52 = vld [vmem:[%s6248_s25 + $0x6c] sm:$0xff] }
 0x208   : > { %v1822_v51 = vld [vmem:[#allocation2 + $0x110] sm:$0xff]  ;;  %5802 = vmatmul.msk.bf16.gmra.mxu2 %vm172_vm1, %v3547_v16  ;;  %v3012_v16 = vshll.u32 %v7501_v37, 16  ;;  %v3560_v38 = vshll.u32 %v7508_v52, 16 }
 0x209   : > { %v2320_v22 = vadd.f32 %v7357_v24, %v1822_v51  ;;  %1787 = vst.msk [vmem:[#allocation2 + $0x118] sm:$0xff] %vm172_vm1, %v1751_v55  ;;  %v4547_v24 = vsel %vm4458_vm6, %v7401_v23, %v7452_v63  ;;  %v4042_v23 = vrot.slane %v7471_v20, 1  ;;  %v7522_v55 = vld [vmem:[%s6248_s25 + $0x74] sm:$0xff]  ;;  %v6169_v51 = vld [vmem:[%s6248_s25 + $0x6c] sm:$0xff] }
 0x20a   : > { %v2391_v13 = vld [vmem:[#allocation2 + $0x108] sm:$0xff]  ;;  %v7465_v53 = vpop.f32.mrf.mxu0  ;;  %v4561_v40 = vshll.u32 %v6169_v51, 16  ;;  %v7533_v25 = vrot.slane %v3560_v38, 1 }
 0x20b   : > { %2356 = vst.msk [vmem:[#allocation2 + $0x110] sm:$0xff] %vm172_vm1, %v2320_v22  ;;  %v2715_v47 = vadd.f32 %v7385_v2, %v2391_v13  ;;  %v3689_v19 = vpop.f32.mrf.mxu2  ;;  %v3548_v2 = vshrl.u32 %v7406_v11, 16 }
 0x20c   : > { %v3143_v50 = vpop.f32.mrf.mxu1  ;;  %v4563_v57 = vrot.slane %v4561_v40, 2 }
 0x20d   : > { %2751 = vst.msk [vmem:[#allocation2 + $0x108] sm:$0xff] %vm172_vm1, %v2715_v47  ;;  %v3232_v0 = vadd.f32 %v3143_v50, %v2755_v44  ;;  %5994 = vmatmul.msk.bf16.gmra.mxu0 %vm172_vm1, %v4547_v24  ;;  %v3550_v11 = vor.u32 %v3548_v2, %v3546_v54  ;;  %v3014_v44 = vrot.slane %v3012_v16, 1  ;;  %v4558_v50 = vshrl.u32 %v6169_v51, 16 }
 0x20e   : > { %v3303_v28 = vld [vmem:[#allocation2] sm:$0xff]  ;;  %v7482_v1 = vpop.f32.mrf.mxu3 }
 0x20f   : > { %v3779_v33 = vadd.f32 %v3689_v19, %v3303_v28  ;;  %3268 = vst.msk [vmem:[#allocation2 + $0x8] sm:$0xff] %vm172_vm1, %v3232_v0  ;;  %v3555_v12 = vsel %vm2923_vm5, %v3550_v11, %v3554_v39  ;;  %v3010_v19 = vor.u32 %v3008_v29, %v3006_v15  ;;  %v4560_v3 = vrot.slane %v4558_v50, 1 }
 0x210   : > { %v1823_v8 = vld [vmem:[#allocation2 + $0x118] sm:$0xff] }
 0x211   : > { %v2321_v45 = vadd.f32 %v7380_v7, %v1823_v8  ;;  %3815 = vst.msk [vmem:[#allocation2] sm:$0xff] %vm172_vm1, %v3779_v33  ;;  %v4043_v7 = vsel %vm4020_vm4, %v4040_v62, %v4042_v23  ;;  %v7503_v62 = vor.u32 %v4554_v6, %v4551_v9  ;;  %v2758_v33 = vld [vmem:[#allocation2 + $0x20] sm:$0xff]  ;;  %v3015_v8 = vsel %vm2923_vm5, %v3010_v19, %v3014_v44  ;;  %v2759_v6 = vld [vmem:[#allocation2 + $0x28] sm:$0xff] }
 0x212   : > { %v2392_v5 = vld [vmem:[#allocation2 + $0x110] sm:$0xff]  ;;  %v7487_v35 = vpop.f32.mrf.mxu0 }
 0x213   : > { %2357 = vst.msk [vmem:[#allocation2 + $0x118] sm:$0xff] %vm172_vm1, %v2321_v45  ;;  %v2716_v18 = vadd.f32 %v7414_v61, %v2392_v5  ;;  %v3691_v41 = vpop.f32.mrf.mxu2  ;;  %5900 = vmatmul.msk.bf16.gmra.mxu3 %vm172_vm1, %v4043_v7  ;;  %v7557_v5 = vor.u32 %v4563_v57, %v4560_v3 }
 0x214   : > { %v3146_v10 = vpop.f32.mrf.mxu1 }
 0x215   : > { %2752 = vst.msk [vmem:[#allocation2 + $0x110] sm:$0xff] %vm172_vm1, %v2716_v18  ;;  %v3233_v61 = vadd.f32 %v3146_v10, %v2756_v30  ;;  %v7562_v18 = vld [vmem:[%s8176_s2] ss:$0 sm:$0xff]  ;;  %v7567_v30 = vld [vmem:[%s6248_s25 + $0x74] sm:$0xff] }
 0x216   : > { %v3304_v34 = vld [vmem:[#allocation2 + $0x8] sm:$0xff]  ;;  %v7510_v58 = vpop.f32.mrf.mxu3 }
 0x217   : > { %v3780_v54 = vadd.f32 %v3691_v41, %v3304_v34  ;;  %3269 = vst.msk [vmem:[#allocation2 + $0x10] sm:$0xff] %vm172_vm1, %v3233_v61  ;;  %5707 = vmatmul.msk.bf16.gmra.mxu1 %vm172_vm1, %v3007_v17  ;;  %v3016_v61 = vshrl.u32 %v7501_v37, 16  ;;  %v3564_v37 = vshrl.u32 %v7508_v52, 16 }
 0x218   : > { %v3851_v27 = vld [vmem:[#allocation2] sm:$0xff]  ;;  %5803 = vmatmul.msk.bf16.gmra.mxu2 %vm172_vm1, %v3555_v12 }
 0x219   : > { %v4217_v36 = vadd.f32 %v7408_v48, %v3851_v27  ;;  %3816 = vst.msk [vmem:[#allocation2 + $0x8] sm:$0xff] %vm172_vm1, %v3780_v54  ;;  %v4556_v48 = vsel %vm4458_vm6, %v7452_v63, %v7503_v62  ;;  %v4044_v63 = vrot.slane %v7522_v55, 1  ;;  %v4565_v27 = vsel %vm4458_vm6, %v7503_v62, %v7557_v5 }
 0x21a   : > { %v2393_v26 = vld [vmem:[#allocation2 + $0x118] sm:$0xff]  ;;  %v7516_v49 = vpop.f32.mrf.mxu0 }
 0x21b   : > { %4253 = vst.msk [vmem:[#allocation2] sm:$0xff] %vm172_vm1, %v4217_v36  ;;  %v2717_v59 = vadd.f32 %v7436_v60, %v2393_v26  ;;  %v3694_v14 = vpop.f32.mrf.mxu2  ;;  %v3556_v60 = vshrl.u32 %v7457_v46, 16  ;;  %v7582_v36 = vld [vmem:[%s6248_s25 + $0x7c] sm:$0xff]  ;;  %v6170_v26 = vld [vmem:[%s6248_s25 + $0x74] sm:$0xff] }
 0x21c   : > { %v3148_v31 = vpop.f32.mrf.mxu1  ;;  %v4046_v52 = vrot.slane %v7582_v36, 1  ;;  %v4567_v51 = vshrl.u32 %v6170_v26, 16 }
 0x21d   : > { %2753 = vst.msk [vmem:[#allocation2 + $0x118] sm:$0xff] %vm172_vm1, %v2717_v59  ;;  %v3234_v22 = vadd.f32 %v3148_v31, %v2757_v4  ;;  %5995 = vmatmul.msk.bf16.gmra.mxu0 %vm172_vm1, %v4556_v48  ;;  %v3558_v46 = vor.u32 %v3556_v60, %v3554_v39  ;;  %v3018_v31 = vor.u32 %v3016_v61, %v3014_v44 }
 0x21e   : > { %v3305_v13 = vld [vmem:[#allocation2 + $0x10] sm:$0xff]  ;;  %v7535_v2 = vpop.f32.mrf.mxu3 }
 0x21f   : > { %v3781_v47 = vadd.f32 %v3694_v14, %v3305_v13  ;;  %3270 = vst.msk [vmem:[#allocation2 + $0x18] sm:$0xff] %vm172_vm1, %v3234_v22  ;;  %v3563_v45 = vsel %vm2923_vm5, %v3558_v46, %v7533_v25  ;;  %v3568_v14 = vshll.u32 %v7567_v30, 16  ;;  %v4570_v22 = vshll.u32 %v6170_v26, 16 }
 0x220   : > { %v3852_v56 = vld [vmem:[#allocation2 + $0x8] sm:$0xff]  ;;  %v3566_v13 = vor.u32 %v3564_v37, %v7533_v25  ;;  %v4047_v25 = vsel %vm4020_vm4, %v4044_v63, %v4046_v52 }
 0x221   : > { %v4218_v24 = vadd.f32 %v7431_v43, %v3852_v56  ;;  %3817 = vst.msk [vmem:[#allocation2 + $0x10] sm:$0xff] %vm172_vm1, %v3781_v47  ;;  %v4045_v43 = vsel %vm4020_vm4, %v4042_v23, %v4044_v63  ;;  %v7555_v23 = vld [vmem:[%s6248_s25 + $0x6c] sm:$0xff]  ;;  %v7602_v47 = vrot.slane %v3568_v14, 1  ;;  %v7628_v63 = vld [vmem:[%s6248_s25 + $0x74] sm:$0xff] }
 0x222   : > { %v4289_v0 = vld [vmem:[#allocation2] sm:$0xff]  ;;  %v7540_v15 = vpop.f32.mrf.mxu0  ;;  %v3020_v34 = vshll.u32 %v7555_v23, 16  ;;  %v3028_v61 = vshll.u32 %v7628_v63, 16 }
 0x223   : > { %4254 = vst.msk [vmem:[#allocation2 + $0x8] sm:$0xff] %vm172_vm1, %v4218_v24  ;;  %v4788_v21 = vadd.f32 %v7465_v53, %v4289_v0  ;;  %v3696_v28 = vpop.f32.mrf.mxu2  ;;  %5901 = vmatmul.msk.bf16.gmra.mxu3 %vm172_vm1, %v4045_v43  ;;  %v2760_v24 = vld [vmem:[#allocation2 + $0x30] sm:$0xff] }
 0x224   : > { %v3151_v42 = vpop.f32.mrf.mxu1  ;;  %v7596_v48 = vrot.slane %v3020_v34, 1  ;;  %v7651_v34 = vld [vmem:[%s6248_s25 + $0x84] sm:$0xff] }
 0x225   : > { %4824 = vst.msk [vmem:[#allocation2] sm:$0xff] %vm172_vm1, %v4788_v21  ;;  %v3235_v53 = vadd.f32 %v3151_v42, %v2758_v33  ;;  %v4569_v21 = vrot.slane %v4567_v51, 1  ;;  %v3571_v42 = vsel %vm2923_vm5, %v3566_v13, %v7602_v47 }
 0x226   : > { %v3306_v11 = vld [vmem:[#allocation2 + $0x18] sm:$0xff]  ;;  %v7569_v17 = vpop.f32.mrf.mxu3 }
 0x227   : > { %v3782_v39 = vadd.f32 %v3696_v28, %v3306_v11  ;;  %3271 = vst.msk [vmem:[#allocation2 + $0x20] sm:$0xff] %vm172_vm1, %v3235_v53  ;;  %5708 = vmatmul.msk.bf16.gmra.mxu1 %vm172_vm1, %v3015_v8  ;;  %v4572_v28 = vrot.slane %v4570_v22, 2  ;;  %v7635_v11 = vld [vmem:[%s6248_s25 + $0x7c] sm:$0xff] }
 0x228   : > { %v3853_v20 = vld [vmem:[#allocation2 + $0x10] sm:$0xff]  ;;  %5804 = vmatmul.msk.bf16.gmra.mxu2 %vm172_vm1, %v3563_v45 }
 0x229   : > { %v4219_v41 = vadd.f32 %v7459_v32, %v3853_v20  ;;  %3818 = vst.msk [vmem:[#allocation2 + $0x18] sm:$0xff] %vm172_vm1, %v3782_v39  ;;  %v7630_v57 = vor.u32 %v4572_v28, %v4569_v21 }
 0x22a   : > { %v4290_v10 = vld [vmem:[#allocation2 + $0x8] sm:$0xff]  ;;  %v7576_v54 = vpop.f32.mrf.mxu0 }
 0x22b   : > { %4255 = vst.msk [vmem:[#allocation2 + $0x10] sm:$0xff] %vm172_vm1, %v4219_v41  ;;  %v4789_v7 = vadd.f32 %v7487_v35, %v4290_v10  ;;  %v3699_v9 = vpop.f32.mrf.mxu2 }
 0x22c   : > { %v4860_v12 = vld [vmem:[#allocation2] sm:$0xff]  ;;  %v3153_v32 = vpop.f32.mrf.mxu1 }
 0x22d   : > { %v4900_v59 = vadd.f32 %v7562_v18, %v4860_v12  ;;  %4825 = vst.msk [vmem:[#allocation2 + $0x8] sm:$0xff] %vm172_vm1, %v4789_v7  ;;  %v3236_v35 = vadd.f32 %v3153_v32, %v2759_v6  ;;  %5996 = vmatmul.msk.bf16.gmra.mxu0 %vm172_vm1, %v4565_v27  ;;  %v2761_v7 = vld [vmem:[#allocation2 + $0x38] sm:$0xff]  ;;  %v4574_v32 = vsel %vm4458_vm6, %v7557_v5, %v7630_v57 }
 0x22e   : > { %v3307_v29 = vld [vmem:[#allocation2 + $0x20] sm:$0xff]  ;;  %v7606_v56 = vpop.f32.mrf.mxu3 }
 0x22f   : > { %vm4936_vm7 = vcmp.ge.f32.partialorder %v4900_v59, 0.0  ;;  %v4972_v62 = vmul.f32 0.2, %v4900_v59  ;;  %v3783_v4 = vadd.f32 %v3699_v9, %v3307_v29  ;;  %3272 = vst.msk [vmem:[#allocation2 + $0x28] sm:$0xff] %vm172_vm1, %v3236_v35  ;;  %v3024_v9 = vshrl.u32 %v7555_v23, 16  ;;  %v6171_v27 = vld [vmem:[%s6248_s25 + $0x7c] sm:$0xff] }
 0x230   : > { %v3854_v16 = vld [vmem:[#allocation2 + $0x18] sm:$0xff]  ;;  %v3572_v23 = vshrl.u32 %v7567_v30, 16  ;;  %v4579_v30 = vshll.u32 %v6171_v27, 16 }
 0x231   : > { %v5008_v60 = vsel %vm4936_vm7, %v4900_v59, %v4972_v62  ;;  %v4220_v38 = vadd.f32 %v7482_v1, %v3854_v16  ;;  %3819 = vst.msk [vmem:[#allocation2 + $0x20] sm:$0xff] %vm172_vm1, %v3783_v4  ;;  %v3023_v1 = vsel %vm2923_vm5, %v3018_v31, %v7596_v48  ;;  %v3576_v59 = vshll.u32 %v7635_v11, 16 }
 0x232   : > { %5044 = vst.msk [vmem:[%s7592_s15] sm:$0xff] %vm172_vm1, %v5008_v60  ;;  %v4291_v19 = vld [vmem:[#allocation2 + $0x10] sm:$0xff]  ;;  %v7612_v0 = vpop.f32.mrf.mxu0  ;;  %v3026_v5 = vor.u32 %v3024_v9, %v7596_v48  ;;  %v7661_v62 = vrot.slane %v3028_v61, 1  ;;  %v4048_v4 = vrot.slane %v7651_v34, 1  ;;  %v4576_v31 = vshrl.u32 %v6171_v27, 16 }
 0x233   : > { %4256 = vst.msk [vmem:[#allocation2 + $0x18] sm:$0xff] %vm172_vm1, %v4220_v38  ;;  %v4790_v44 = vadd.f32 %v7516_v49, %v4291_v19  ;;  %v3701_v50 = vpop.f32.mrf.mxu2  ;;  %5902 = vmatmul.msk.bf16.gmra.mxu3 %vm172_vm1, %v4047_v25  ;;  %v3574_v22 = vor.u32 %v3572_v23, %v7602_v47  ;;  %v7667_v60 = vrot.slane %v3576_v59, 1  ;;  %v7716_v61 = vld [vmem:[%s6248_s25 + $0x8c] sm:$0xff] }
 0x234   : > { %v4861_v40 = vld [vmem:[#allocation2 + $0x8] sm:$0xff]  ;;  %v3156_v46 = vpop.f32.mrf.mxu1  ;;  %v4049_v47 = vsel %vm4020_vm4, %v4046_v52, %v4048_v4  ;;  %v7693_v52 = vld [vmem:[%s6248_s25 + $0x7c] sm:$0xff] }
 0x235   : > { %v4901_v49 = vadd.f32 %v7562_v18, %v4861_v40  ;;  %4826 = vst.msk [vmem:[#allocation2 + $0x10] sm:$0xff] %vm172_vm1, %v4790_v44  ;;  %v3237_v33 = vadd.f32 %v3156_v46, %v2760_v24  ;;  %v4578_v46 = vrot.slane %v4576_v31, 1  ;;  %v3579_v21 = vsel %vm2923_vm5, %v3574_v22, %v7667_v60 }
 0x236   : > { %v3308_v8 = vld [vmem:[#allocation2 + $0x28] sm:$0xff]  ;;  %v7639_v20 = vpop.f32.mrf.mxu3  ;;  %v3036_v9 = vshll.u32 %v7693_v52, 16 }
 0x237   : > { %vm4937_vm8 = vcmp.ge.f32.partialorder %v4901_v49, 0.0  ;;  %v4973_v43 = vmul.f32 0.2, %v4901_v49  ;;  %v3784_v3 = vadd.f32 %v3701_v50, %v3308_v8  ;;  %3273 = vst.msk [vmem:[#allocation2 + $0x30] sm:$0xff] %vm172_vm1, %v3237_v33  ;;  %5709 = vmatmul.msk.bf16.gmra.mxu1 %vm172_vm1, %v3023_v1  ;;  %v2762_v50 = vld [vmem:[#allocation2 + $0x40] sm:$0xff]  ;;  %v4581_v1 = vrot.slane %v4579_v30, 2 }
 0x238   : > { %v3855_v55 = vld [vmem:[#allocation2 + $0x20] sm:$0xff]  ;;  %5805 = vmatmul.msk.bf16.gmra.mxu2 %vm172_vm1, %v3571_v42 }
 0x239   : > { %v5009_v53 = vsel %vm4937_vm8, %v4901_v49, %v4973_v43  ;;  %v4221_v45 = vadd.f32 %v7510_v58, %v3855_v55  ;;  %3820 = vst.msk [vmem:[#allocation2 + $0x28] sm:$0xff] %vm172_vm1, %v3784_v3  ;;  %v7695_v42 = vor.u32 %v4581_v1, %v4578_v46  ;;  %v7700_v3 = vld [vmem:[%s6248_s25 + $0x84] sm:$0xff] }
 0x23a   : > { %5045 = vst.msk [vmem:[%s7592_s15 + $0x8] sm:$0xff] %vm172_vm1, %v5009_v53  ;;  %v4292_v39 = vld [vmem:[#allocation2 + $0x18] sm:$0xff]  ;;  %v7645_v12 = vpop.f32.mrf.mxu0 }
 0x23b   : > { %4257 = vst.msk [vmem:[#allocation2 + $0x20] sm:$0xff] %vm172_vm1, %v4221_v45  ;;  %v4791_v41 = vadd.f32 %v7540_v15, %v4292_v39  ;;  %v3704_v10 = vpop.f32.mrf.mxu2 }
 0x23c   : > { %v4862_v58 = vld [vmem:[#allocation2 + $0x10] sm:$0xff]  ;;  %v3158_v6 = vpop.f32.mrf.mxu1 }
 0x23d   : > { %v4902_v26 = vadd.f32 %v7562_v18, %v4862_v58  ;;  %4827 = vst.msk [vmem:[#allocation2 + $0x18] sm:$0xff] %vm172_vm1, %v4791_v41  ;;  %v3238_v15 = vadd.f32 %v3158_v6, %v2761_v7  ;;  %5997 = vmatmul.msk.bf16.gmra.mxu0 %vm172_vm1, %v4574_v32  ;;  %v2763_v41 = vld [vmem:[#allocation2 + $0x48] sm:$0xff]  ;;  %v4583_v6 = vsel %vm4458_vm6, %v7630_v57, %v7695_v42 }
 0x23e   : > { %v3309_v35 = vld [vmem:[#allocation2 + $0x30] sm:$0xff]  ;;  %v7671_v38 = vpop.f32.mrf.mxu3  ;;  %v6172_v32 = vld [vmem:[%s6248_s25 + $0x84] sm:$0xff] }
 0x23f   : > { %vm4938_vm9 = vcmp.ge.f32.partialorder %v4902_v26, 0.0  ;;  %v4974_v37 = vmul.f32 0.2, %v4902_v26  ;;  %v3785_v14 = vadd.f32 %v3704_v10, %v3309_v35  ;;  %3274 = vst.msk [vmem:[#allocation2 + $0x38] sm:$0xff] %vm172_vm1, %v3238_v15  ;;  %v3032_v10 = vshrl.u32 %v7628_v63, 16 }
 0x240   : > { %v3856_v29 = vld [vmem:[#allocation2 + $0x28] sm:$0xff]  ;;  %v3580_v63 = vshrl.u32 %v7635_v11, 16  ;;  %v4588_v11 = vshll.u32 %v6172_v32, 16 }
 0x241   : > { %v5010_v16 = vsel %vm4938_vm9, %v4902_v26, %v4974_v37  ;;  %v4222_v51 = vadd.f32 %v7535_v2, %v3856_v29  ;;  %3821 = vst.msk [vmem:[#allocation2 + $0x30] sm:$0xff] %vm172_vm1, %v3785_v14  ;;  %v3031_v2 = vsel %vm2923_vm5, %v3026_v5, %v7661_v62  ;;  %v3584_v26 = vshll.u32 %v7700_v3, 16 }
 0x242   : > { %5046 = vst.msk [vmem:[%s7592_s15 + $0x10] sm:$0xff] %vm172_vm1, %v5010_v16  ;;  %v4293_v48 = vld [vmem:[#allocation2 + $0x20] sm:$0xff]  ;;  %v7677_v24 = vpop.f32.mrf.mxu0  ;;  %v3034_v57 = vor.u32 %v3032_v10, %v7661_v62  ;;  %v7726_v37 = vrot.slane %v3036_v9, 1  ;;  %v4050_v14 = vrot.slane %v7716_v61, 1  ;;  %v4585_v5 = vshrl.u32 %v6172_v32, 16  ;;  %v7781_v9 = vld [vmem:[%s6248_s25 + $0x94] sm:$0xff] }
 0x243   : > { %4258 = vst.msk [vmem:[#allocation2 + $0x28] sm:$0xff] %vm172_vm1, %v4222_v51  ;;  %v4792_v13 = vadd.f32 %v7576_v54, %v4293_v48  ;;  %v3706_v19 = vpop.f32.mrf.mxu2  ;;  %5903 = vmatmul.msk.bf16.gmra.mxu3 %vm172_vm1, %v4049_v47  ;;  %v3582_v30 = vor.u32 %v3580_v63, %v7667_v60  ;;  %v7732_v16 = vrot.slane %v3584_v26, 1 }
 0x244   : > { %v4863_v44 = vld [vmem:[#allocation2 + $0x18] sm:$0xff]  ;;  %v3161_v40 = vpop.f32.mrf.mxu1  ;;  %v4051_v60 = vsel %vm4020_vm4, %v4048_v4, %v4050_v14  ;;  %v7758_v4 = vld [vmem:[%s6248_s25 + $0x84] sm:$0xff] }
 0x245   : > { %v4903_v54 = vadd.f32 %v7562_v18, %v4863_v44  ;;  %4828 = vst.msk [vmem:[#allocation2 + $0x20] sm:$0xff] %vm172_vm1, %v4792_v13  ;;  %v3239_v25 = vadd.f32 %v3161_v40, %v2762_v50  ;;  %v4587_v40 = vrot.slane %v4585_v5, 1  ;;  %v3587_v46 = vsel %vm2923_vm5, %v3582_v30, %v7732_v16 }
 0x246   : > { %v3310_v28 = vld [vmem:[#allocation2 + $0x38] sm:$0xff]  ;;  %v7704_v53 = vpop.f32.mrf.mxu3  ;;  %v3044_v10 = vshll.u32 %v7758_v4, 16 }
 0x247   : > { %vm4939_vm10 = vcmp.ge.f32.partialorder %v4903_v54, 0.0  ;;  %v4975_v49 = vmul.f32 0.2, %v4903_v54  ;;  %v3786_v33 = vadd.f32 %v3706_v19, %v3310_v28  ;;  %3275 = vst.msk [vmem:[#allocation2 + $0x40] sm:$0xff] %vm172_vm1, %v3239_v25  ;;  %5710 = vmatmul.msk.bf16.gmra.mxu1 %vm172_vm1, %v3031_v2  ;;  %v2764_v19 = vld [vmem:[#allocation2 + $0x50] sm:$0xff]  ;;  %v4590_v2 = vrot.slane %v4588_v11, 2 }
 0x248   : > { %v3857_v36 = vld [vmem:[#allocation2 + $0x30] sm:$0xff]  ;;  %5806 = vmatmul.msk.bf16.gmra.mxu2 %vm172_vm1, %v3579_v21 }
 0x249   : > { %v5011_v8 = vsel %vm4939_vm10, %v4903_v54, %v4975_v49  ;;  %v4223_v43 = vadd.f32 %v7569_v17, %v3857_v36  ;;  %3822 = vst.msk [vmem:[#allocation2 + $0x38] sm:$0xff] %vm172_vm1, %v3786_v33  ;;  %v7760_v21 = vor.u32 %v4590_v2, %v4587_v40  ;;  %v7765_v33 = vld [vmem:[%s6248_s25 + $0x8c] sm:$0xff] }
 0x24a   : > { %5047 = vst.msk [vmem:[%s7592_s15 + $0x18] sm:$0xff] %vm172_vm1, %v5011_v8  ;;  %v4294_v55 = vld [vmem:[#allocation2 + $0x28] sm:$0xff]  ;;  %v7710_v58 = vpop.f32.mrf.mxu0 }
 0x24b   : > { %4259 = vst.msk [vmem:[#allocation2 + $0x30] sm:$0xff] %vm172_vm1, %v4223_v43  ;;  %v4793_v45 = vadd.f32 %v7612_v0, %v4294_v55  ;;  %v3709_v39 = vpop.f32.mrf.mxu2 }
 0x24c   : > { %v4864_v17 = vld [vmem:[#allocation2 + $0x20] sm:$0xff]  ;;  %v3163_v7 = vpop.f32.mrf.mxu1 }
 0x24d   : > { %v4904_v27 = vadd.f32 %v7562_v18, %v4864_v17  ;;  %4829 = vst.msk [vmem:[#allocation2 + $0x28] sm:$0xff] %vm172_vm1, %v4793_v45  ;;  %v3240_v0 = vadd.f32 %v3163_v7, %v2763_v41  ;;  %5998 = vmatmul.msk.bf16.gmra.mxu0 %vm172_vm1, %v4583_v6  ;;  %v2765_v45 = vld [vmem:[#allocation2 + $0x58] sm:$0xff]  ;;  %v4592_v7 = vsel %vm4458_vm6, %v7695_v42, %v7760_v21  ;;  %v6173_v6 = vld [vmem:[%s6248_s25 + $0x8c] sm:$0xff] }
 0x24e   : > { %v3311_v15 = vld [vmem:[#allocation2 + $0x40] sm:$0xff]  ;;  %v7736_v51 = vpop.f32.mrf.mxu3 }
 0x24f   : > { %vm4940_vm11 = vcmp.ge.f32.partialorder %v4904_v27, 0.0  ;;  %v4976_v23 = vmul.f32 0.2, %v4904_v27  ;;  %v3787_v59 = vadd.f32 %v3709_v39, %v3311_v15  ;;  %3276 = vst.msk [vmem:[#allocation2 + $0x48] sm:$0xff] %vm172_vm1, %v3240_v0  ;;  %v3040_v39 = vshrl.u32 %v7693_v52, 16 }
 0x250   : > { %v3858_v35 = vld [vmem:[#allocation2 + $0x38] sm:$0xff]  ;;  %v3588_v52 = vshrl.u32 %v7700_v3, 16  ;;  %v4597_v3 = vshll.u32 %v6173_v6, 16 }
 0x251   : > { %v5012_v29 = vsel %vm4940_vm11, %v4904_v27, %v4976_v23  ;;  %v4224_v31 = vadd.f32 %v7606_v56, %v3858_v35  ;;  %3823 = vst.msk [vmem:[#allocation2 + $0x40] sm:$0xff] %vm172_vm1, %v3787_v59  ;;  %v3039_v56 = vsel %vm2923_vm5, %v3034_v57, %v7726_v37  ;;  %v3592_v27 = vshll.u32 %v7765_v33, 16 }
 0x252   : > { %5048 = vst.msk [vmem:[%s7592_s15 + $0x20] sm:$0xff] %vm172_vm1, %v5012_v29  ;;  %v4295_v62 = vld [vmem:[#allocation2 + $0x30] sm:$0xff]  ;;  %v7742_v50 = vpop.f32.mrf.mxu0  ;;  %v3042_v42 = vor.u32 %v3040_v39, %v7726_v37  ;;  %v7791_v23 = vrot.slane %v3044_v10, 1  ;;  %v4052_v59 = vrot.slane %v7781_v9, 1  ;;  %v4594_v57 = vshrl.u32 %v6173_v6, 16  ;;  %v7846_v10 = vld [vmem:[%s6248_s25 + $0x9c] sm:$0xff] }
 0x253   : > { %4260 = vst.msk [vmem:[#allocation2 + $0x38] sm:$0xff] %vm172_vm1, %v4224_v31  ;;  %v4794_v22 = vadd.f32 %v7645_v12, %v4295_v62  ;;  %v3711_v48 = vpop.f32.mrf.mxu2  ;;  %5904 = vmatmul.msk.bf16.gmra.mxu3 %vm172_vm1, %v4051_v60  ;;  %v3590_v11 = vor.u32 %v3588_v52, %v7732_v16  ;;  %v7797_v29 = vrot.slane %v3592_v27, 1  ;;  %v7887_v9 = vld [vmem:[%s6248_s25 + $0x94] sm:$0xff] }
 0x254   : > { %v4865_v13 = vld [vmem:[#allocation2 + $0x28] sm:$0xff]  ;;  %v3166_v44 = vpop.f32.mrf.mxu1  ;;  %v4053_v16 = vsel %vm4020_vm4, %v4050_v14, %v4052_v59 }
 0x255   : > { %v4905_v12 = vadd.f32 %v7562_v18, %v4865_v13  ;;  %4830 = vst.msk [vmem:[#allocation2 + $0x30] sm:$0xff] %vm172_vm1, %v4794_v22  ;;  %v3241_v47 = vadd.f32 %v3166_v44, %v2764_v19  ;;  %v4596_v44 = vrot.slane %v4594_v57, 1  ;;  %v3595_v40 = vsel %vm2923_vm5, %v3590_v11, %v7797_v29  ;;  %v7823_v14 = vld [vmem:[%s6248_s25 + $0x8c] sm:$0xff] }
 0x256   : > { %v3312_v1 = vld [vmem:[#allocation2 + $0x48] sm:$0xff]  ;;  %v7769_v8 = vpop.f32.mrf.mxu3  ;;  %v3052_v39 = vshll.u32 %v7823_v14, 16 }
 0x257   : > { %vm4941_vm12 = vcmp.ge.f32.partialorder %v4905_v12, 0.0  ;;  %v4977_v54 = vmul.f32 0.2, %v4905_v12  ;;  %v3788_v25 = vadd.f32 %v3711_v48, %v3312_v1  ;;  %3277 = vst.msk [vmem:[#allocation2 + $0x50] sm:$0xff] %vm172_vm1, %v3241_v47  ;;  %5711 = vmatmul.msk.bf16.gmra.mxu1 %vm172_vm1, %v3039_v56  ;;  %v2766_v48 = vld [vmem:[#allocation2 + $0x60] sm:$0xff]  ;;  %v4599_v56 = vrot.slane %v4597_v3, 2 }
 0x258   : > { %v3859_v34 = vld [vmem:[#allocation2 + $0x40] sm:$0xff]  ;;  %5807 = vmatmul.msk.bf16.gmra.mxu2 %vm172_vm1, %v3587_v46 }
 0x259   : > { %v5013_v28 = vsel %vm4941_vm12, %v4905_v12, %v4977_v54  ;;  %v4225_v49 = vadd.f32 %v7639_v20, %v3859_v34  ;;  %3824 = vst.msk [vmem:[#allocation2 + $0x48] sm:$0xff] %vm172_vm1, %v3788_v25  ;;  %v7825_v46 = vor.u32 %v4599_v56, %v4596_v44  ;;  %v7830_v25 = vld [vmem:[%s6248_s25 + $0x94] sm:$0xff] }
 0x25a   : > { %5049 = vst.msk [vmem:[%s7592_s15 + $0x28] sm:$0xff] %vm172_vm1, %v5013_v28  ;;  %v4296_v36 = vld [vmem:[#allocation2 + $0x38] sm:$0xff]  ;;  %v7775_v17 = vpop.f32.mrf.mxu0 }
 0x25b   : > { %4261 = vst.msk [vmem:[#allocation2 + $0x40] sm:$0xff] %vm172_vm1, %v4225_v49  ;;  %v4795_v43 = vadd.f32 %v7677_v24, %v4296_v36  ;;  %v3714_v55 = vpop.f32.mrf.mxu2 }
 0x25c   : > { %v4866_v20 = vld [vmem:[#allocation2 + $0x30] sm:$0xff]  ;;  %v3168_v41 = vpop.f32.mrf.mxu1 }
 0x25d   : > { %v4906_v32 = vadd.f32 %v7562_v18, %v4866_v20  ;;  %4831 = vst.msk [vmem:[#allocation2 + $0x38] sm:$0xff] %vm172_vm1, %v4795_v43  ;;  %v3242_v24 = vadd.f32 %v3168_v41, %v2765_v45  ;;  %5999 = vmatmul.msk.bf16.gmra.mxu0 %vm172_vm1, %v4592_v7  ;;  %v2767_v43 = vld [vmem:[#allocation2 + $0x68] sm:$0xff]  ;;  %v4601_v41 = vsel %vm4458_vm6, %v7760_v21, %v7825_v46  ;;  %v6174_v7 = vld [vmem:[%s6248_s25 + $0x94] sm:$0xff] }
 0x25e   : > { %v3313_v0 = vld [vmem:[#allocation2 + $0x50] sm:$0xff]  ;;  %v7801_v31 = vpop.f32.mrf.mxu3 }
 0x25f   : > { %vm4942_vm13 = vcmp.ge.f32.partialorder %v4906_v32, 0.0  ;;  %v4978_v63 = vmul.f32 0.2, %v4906_v32  ;;  %v3789_v26 = vadd.f32 %v3714_v55, %v3313_v0  ;;  %3278 = vst.msk [vmem:[#allocation2 + $0x58] sm:$0xff] %vm172_vm1, %v3242_v24  ;;  %v3048_v55 = vshrl.u32 %v7758_v4, 16 }
 0x260   : > { %v3860_v15 = vld [vmem:[#allocation2 + $0x48] sm:$0xff]  ;;  %v3596_v4 = vshrl.u32 %v7765_v33, 16  ;;  %v4606_v33 = vshll.u32 %v6174_v7, 16 }
 0x261   : > { %v5014_v35 = vsel %vm4942_vm13, %v4906_v32, %v4978_v63  ;;  %v4226_v5 = vadd.f32 %v7671_v38, %v3860_v15  ;;  %3825 = vst.msk [vmem:[#allocation2 + $0x50] sm:$0xff] %vm172_vm1, %v3789_v26  ;;  %v3047_v38 = vsel %vm2923_vm5, %v3042_v42, %v7791_v23  ;;  %v3600_v32 = vshll.u32 %v7830_v25, 16 }
 0x262   : > { %5050 = vst.msk [vmem:[%s7592_s15 + $0x30] sm:$0xff] %vm172_vm1, %v5014_v35  ;;  %v4297_v37 = vld [vmem:[#allocation2 + $0x40] sm:$0xff]  ;;  %v7807_v19 = vpop.f32.mrf.mxu0  ;;  %v3050_v21 = vor.u32 %v3048_v55, %v7791_v23  ;;  %v7856_v63 = vrot.slane %v3052_v39, 1  ;;  %v4054_v26 = vrot.slane %v7846_v10, 1  ;;  %v4603_v42 = vshrl.u32 %v6174_v7, 16 }
 0x263   : > { %4262 = vst.msk [vmem:[#allocation2 + $0x48] sm:$0xff] %vm172_vm1, %v4226_v5  ;;  %v4796_v30 = vadd.f32 %v7710_v58, %v4297_v37  ;;  %v3716_v62 = vpop.f32.mrf.mxu2  ;;  %5905 = vmatmul.msk.bf16.gmra.mxu3 %vm172_vm1, %v4053_v16  ;;  %v3598_v3 = vor.u32 %v3596_v4, %v7797_v29  ;;  %v7862_v35 = vrot.slane %v3600_v32, 1  ;;  %v3060_v55 = vshll.u32 %v7887_v9, 16 }
 0x264   : > { %v4867_v22 = vld [vmem:[#allocation2 + $0x38] sm:$0xff]  ;;  %v3171_v13 = vpop.f32.mrf.mxu1 }
 0x265   : > { %v4907_v58 = vadd.f32 %v7562_v18, %v4867_v22  ;;  %4832 = vst.msk [vmem:[#allocation2 + $0x40] sm:$0xff] %vm172_vm1, %v4796_v30  ;;  %v3243_v60 = vadd.f32 %v3171_v13, %v2766_v48  ;;  %v3055_v22 = vsel %vm2923_vm5, %v3050_v21, %v7856_v63  ;;  %v4055_v48 = vsel %vm4020_vm4, %v4052_v59, %v4054_v26 }
 0x266   : > { %v3314_v2 = vld [vmem:[#allocation2 + $0x58] sm:$0xff]  ;;  %v7834_v28 = vpop.f32.mrf.mxu3  ;;  %v4605_v13 = vrot.slane %v4603_v42, 1  ;;  %v3603_v44 = vsel %vm2923_vm5, %v3598_v3, %v7862_v35 }
 0x267   : > { %vm4943_vm14 = vcmp.ge.f32.partialorder %v4907_v58, 0.0  ;;  %v4979_v12 = vmul.f32 0.2, %v4907_v58  ;;  %v3790_v47 = vadd.f32 %v3716_v62, %v3314_v2  ;;  %3279 = vst.msk [vmem:[#allocation2 + $0x60] sm:$0xff] %vm172_vm1, %v3243_v60  ;;  %5712 = vmatmul.msk.bf16.gmra.mxu1 %vm172_vm1, %v3047_v38  ;;  %v2768_v62 = vld [vmem:[#allocation2 + $0x70] sm:$0xff]  ;;  %v4608_v38 = vrot.slane %v4606_v33, 2 }
 0x268   : > { %v3861_v61 = vld [vmem:[#allocation2 + $0x50] sm:$0xff]  ;;  %5808 = vmatmul.msk.bf16.gmra.mxu2 %vm172_vm1, %v3595_v40  ;;  %v2826_v3 = vld [vmem:[%s6248_s25 + $0x9c] sm:$0x1] }
 0x269   : > { %v5015_v1 = vsel %vm4943_vm14, %v4907_v58, %v4979_v12  ;;  %v4227_v54 = vadd.f32 %v7704_v53, %v3861_v61  ;;  %3826 = vst.msk [vmem:[#allocation2 + $0x58] sm:$0xff] %vm172_vm1, %v3790_v47  ;;  %v3923_v58 = vld [vmem:[%s6248_s25 + $0xa4] sm:$0x1]  ;;  %v7891_v2 = vor.u32 %v4608_v38, %v4605_v13  ;;  %v2903_v13 = vunpack.c.l.b16 %v2826_v3 }
 0x26a   : > { %5051 = vst.msk [vmem:[%s7592_s15 + $0x38] sm:$0xff] %vm172_vm1, %v5015_v1  ;;  %v4298_v34 = vld [vmem:[#allocation2 + $0x48] sm:$0xff]  ;;  %v7840_v20 = vpop.f32.mrf.mxu0  ;;  %v4000_v12 = vunpack.c.l.b16 %v3923_v58  ;;  %v7896_v1 = vld [vmem:[%s6248_s25 + $0x9c] sm:$0xff] }
 0x26b   : > { %4263 = vst.msk [vmem:[#allocation2 + $0x50] sm:$0xff] %vm172_vm1, %v4227_v54  ;;  %v4797_v49 = vadd.f32 %v7742_v50, %v4298_v34  ;;  %v3719_v36 = vpop.f32.mrf.mxu2  ;;  %v3056_v34 = vshrl.u32 %v7823_v14, 16  ;;  %v6175_v14 = vld [vmem:[%s6248_s25 + $0x9c] sm:$0xff]  ;;  %v3608_v4 = vshll.u32 %v7896_v1, 16 }
 0x26c   : > { %v4868_v53 = vld [vmem:[#allocation2 + $0x40] sm:$0xff]  ;;  %v3173_v45 = vpop.f32.mrf.mxu1  ;;  %v4019_v7 = vpack.c.b16 %v4000_v12, %v4000_v12  ;;  %v4615_v42 = vshll.u32 %v6175_v14, 16 }
 0x26d   : > { %v4908_v6 = vadd.f32 %v7562_v18, %v4868_v53  ;;  %4833 = vst.msk [vmem:[#allocation2 + $0x48] sm:$0xff] %vm172_vm1, %v4797_v49  ;;  %v3244_v50 = vadd.f32 %v3173_v45, %v2767_v43  ;;  %6000 = vmatmul.msk.bf16.gmra.mxu0 %vm172_vm1, %v4601_v41  ;;  %v2769_v53 = vld [vmem:[#allocation2 + $0x78] sm:$0xff]  ;;  %v4610_v41 = vsel %vm4458_vm6, %v7825_v46, %v7891_v2  ;;  %v7918_v46 = vrot.slane %v3060_v55, 1 }
 0x26e   : > { %v3315_v24 = vld [vmem:[#allocation2 + $0x60] sm:$0xff]  ;;  %v7866_v5 = vpop.f32.mrf.mxu3 }
 0x26f   : > { %vm4944_vm15 = vcmp.ge.f32.partialorder %v4908_v6, 0.0  ;;  %v4980_v52 = vmul.f32 0.2, %v4908_v6  ;;  %v3791_v27 = vadd.f32 %v3719_v36, %v3315_v24  ;;  %3280 = vst.msk [vmem:[#allocation2 + $0x68] sm:$0xff] %vm172_vm1, %v3244_v50  ;;  %v3058_v24 = vor.u32 %v3056_v34, %v7856_v63 }
 0x270   : > { %v3862_v0 = vld [vmem:[#allocation2 + $0x58] sm:$0xff] }
 0x271   : > { %v5016_v15 = vsel %vm4944_vm15, %v4908_v6, %v4980_v52  ;;  %v4228_v57 = vadd.f32 %v7736_v51, %v3862_v0  ;;  %3827 = vst.msk [vmem:[#allocation2 + $0x60] sm:$0xff] %vm172_vm1, %v3791_v27  ;;  %v4056_v0 = vrot.slane %v4019_v7, 1 }
 0x272   : > { %5052 = vst.msk [vmem:[%s7592_s15 + $0x40] sm:$0xff] %vm172_vm1, %v5016_v15  ;;  %v4299_v23 = vld [vmem:[#allocation2 + $0x50] sm:$0xff]  ;;  %v7872_v29 = vpop.f32.mrf.mxu0 }
 0x273   : > { %4264 = vst.msk [vmem:[#allocation2 + $0x58] sm:$0xff] %vm172_vm1, %v4228_v57  ;;  %v4798_v11 = vadd.f32 %v7775_v17, %v4299_v23  ;;  %v3721_v37 = vpop.f32.mrf.mxu2  ;;  %5906 = vmatmul.msk.bf16.gmra.mxu3 %vm172_vm1, %v4055_v48  ;;  %v7924_v57 = vrot.slane %v3608_v4, 1  ;;  %v4057_v38 = vsel %vm4020_vm4, %v4054_v26, %v4056_v0  ;;  %v2922_v26 = vpack.c.b16 %v2903_v13, %v2903_v13 }
 0x274   : > { %v4869_v30 = vld [vmem:[#allocation2 + $0x48] sm:$0xff]  ;;  %v3176_v51 = vpop.f32.mrf.mxu1 }
 0x275   : > { %v4909_v17 = vadd.f32 %v7562_v18, %v4869_v30  ;;  %4834 = vst.msk [vmem:[#allocation2 + $0x50] sm:$0xff] %vm172_vm1, %v4798_v11  ;;  %v3245_v16 = vadd.f32 %v3176_v51, %v2768_v62  ;;  %v3375_v11 = vld [vmem:[%s6248_s25 + $0xa4] sm:$0x1] }
 0x276   : > { %v3316_v56 = vld [vmem:[#allocation2 + $0x68] sm:$0xff]  ;;  %v7901_v49 = vpop.f32.mrf.mxu3  ;;  %v3452_v58 = vunpack.c.l.b16 %v3375_v11 }
 0x277   : > { %vm4945_vm0 = vcmp.ge.f32.partialorder %v4909_v17, 0.0  ;;  %v4981_v60 = vmul.f32 0.2, %v4909_v17  ;;  %v3792_v40 = vadd.f32 %v3721_v37, %v3316_v56  ;;  %3281 = vst.msk [vmem:[#allocation2 + $0x70] sm:$0xff] %vm172_vm1, %v3245_v16  ;;  %5713 = vmatmul.msk.bf16.gmra.mxu1 %vm172_vm1, %v3055_v22  ;;  %v4617_v16 = vrot.slane %v4615_v42, 2 }
 0x278   : > { %v3863_v59 = vld [vmem:[#allocation2 + $0x60] sm:$0xff]  ;;  %5809 = vmatmul.msk.bf16.gmra.mxu2 %vm172_vm1, %v3603_v44 }
 0x279   : > { %v5017_v47 = vsel %vm4945_vm0, %v4909_v17, %v4981_v60  ;;  %v4229_v61 = vadd.f32 %v7769_v8, %v3863_v59  ;;  %3828 = vst.msk [vmem:[#allocation2 + $0x68] sm:$0xff] %vm172_vm1, %v3792_v40  ;;  %v4361_v60 = vld [vmem:[%s6248_s25 + $0xa4] sm:$0x3] }
 0x27a   : > { %5053 = vst.msk [vmem:[%s7592_s15 + $0x48] sm:$0xff] %vm172_vm1, %v5017_v47  ;;  %v4300_v54 = vld [vmem:[#allocation2 + $0x58] sm:$0xff]  ;;  %v7906_v39 = vpop.f32.mrf.mxu0 }
 0x27b   : > { %4265 = vst.msk [vmem:[#allocation2 + $0x60] sm:$0xff] %vm172_vm1, %v4229_v61  ;;  %v4799_v36 = vadd.f32 %v7807_v19, %v4300_v54  ;;  %v3724_v43 = vpop.f32.mrf.mxu2  ;;  %v3604_v19 = vshrl.u32 %v7830_v25, 16  ;;  %v4612_v25 = vshrl.u32 %v6175_v14, 16  ;;  %v4438_v61 = vunpack.c.l.b16 %v4361_v60 }
 0x27c   : > { %v4870_v8 = vld [vmem:[#allocation2 + $0x50] sm:$0xff]  ;;  %v3178_v45 = vpop.f32.mrf.mxu1  ;;  %v3064_v14 = vshrl.u32 %v7887_v9, 16 }
 0x27d   : > { %v4910_v6 = vadd.f32 %v7562_v18, %v4870_v8  ;;  %4835 = vst.msk [vmem:[#allocation2 + $0x58] sm:$0xff] %vm172_vm1, %v4799_v36  ;;  %v3246_v50 = vadd.f32 %v3178_v45, %v2769_v53  ;;  %6001 = vmatmul.msk.bf16.gmra.mxu0 %vm172_vm1, %v4610_v41  ;;  %v3606_v63 = vor.u32 %v3604_v19, %v7862_v35  ;;  %v2770_v35 = vld [vmem:[#allocation2 + $0x80] sm:$0xff]  ;;  %v4614_v17 = vrot.slane %v4612_v25, 1  ;;  %v2771_v41 = vld [vmem:[#allocation2 + $0x88] sm:$0xff] }
 0x27e   : > { %v3317_v32 = vld [vmem:[#allocation2 + $0x70] sm:$0xff]  ;;  %v7930_v37 = vpop.f32.mrf.mxu3  ;;  %v3471_v36 = vpack.c.b16 %v3452_v58, %v3452_v58  ;;  %v4457_v19 = vpack.c.b16 %v4438_v61, %v4438_v61 }
 0x27f   : > { %vm4946_vm2 = vcmp.ge.f32.partialorder %v4910_v6, 0.0  ;;  %v4982_v52 = vmul.f32 0.2, %v4910_v6  ;;  %v3793_v27 = vadd.f32 %v3724_v43, %v3317_v32  ;;  %3282 = vst.msk [vmem:[#allocation2 + $0x78] sm:$0xff] %vm172_vm1, %v3246_v50  ;;  %v3611_v56 = vsel %vm2923_vm5, %v3606_v63, %v7924_v57 }
 0x280   : > { %v3864_v21 = vld [vmem:[#allocation2 + $0x68] sm:$0xff]  ;;  %v7950_v47 = vor.u32 %v4617_v16, %v4614_v17  ;;  %v4621_v25 = vshrl.u32 %v4457_v19, 16  ;;  %v4624_v42 = vshll.u32 %v4457_v19, 16 }
 0x281   : > { %v5018_v33 = vsel %vm4946_vm2, %v4910_v6, %v4982_v52  ;;  %v4230_v15 = vadd.f32 %v7801_v31, %v3864_v21  ;;  %3829 = vst.msk [vmem:[#allocation2 + $0x70] sm:$0xff] %vm172_vm1, %v3793_v27  ;;  %v3063_v31 = vsel %vm2923_vm5, %v3058_v24, %v7918_v46  ;;  %v3068_v6 = vshll.u32 %v2922_v26, 16  ;;  %v2773_v26 = vld [vmem:[#allocation2 + $0x98] sm:$0xff] }
 0x282   : > { %5054 = vst.msk [vmem:[%s7592_s15 + $0x50] sm:$0xff] %vm172_vm1, %v5018_v33  ;;  %v4301_v23 = vld [vmem:[#allocation2 + $0x60] sm:$0xff]  ;;  %v7936_v48 = vpop.f32.mrf.mxu0  ;;  %v4619_v50 = vsel %vm4458_vm6, %v7891_v2, %v7950_v47  ;;  %v3616_v24 = vshll.u32 %v3471_v36, 16  ;;  %v3066_v2 = vor.u32 %v3064_v14, %v7918_v46 }
 0x283   : > { %4266 = vst.msk [vmem:[#allocation2 + $0x68] sm:$0xff] %vm172_vm1, %v4230_v15  ;;  %v4800_v30 = vadd.f32 %v7840_v20, %v4301_v23  ;;  %v3726_v62 = vpop.f32.mrf.mxu2  ;;  %5907 = vmatmul.msk.bf16.gmra.mxu3 %vm172_vm1, %v4057_v38  ;;  %v3070_v0 = vrot.slane %v3068_v6, 1 }
 0x284   : > { %v4871_v51 = vld [vmem:[#allocation2 + $0x58] sm:$0xff]  ;;  %v3181_v22 = vpop.f32.mrf.mxu1  ;;  %v3618_v63 = vrot.slane %v3616_v24, 1 }
 0x285   : > { %v4911_v44 = vadd.f32 %v7562_v18, %v4871_v51  ;;  %4836 = vst.msk [vmem:[#allocation2 + $0x60] sm:$0xff] %vm172_vm1, %v4800_v30  ;;  %v3247_v20 = vadd.f32 %v3181_v22, %v2770_v35  ;;  %v4623_v35 = vrot.slane %v4621_v25, 1 }
 0x286   : > { %v3318_v40 = vld [vmem:[#allocation2 + $0x78] sm:$0xff]  ;;  %v7956_v55 = vpop.f32.mrf.mxu3 }
 0x287   : > { %vm4947_vm3 = vcmp.ge.f32.partialorder %v4911_v44, 0.0  ;;  %v4983_v59 = vmul.f32 0.2, %v4911_v44  ;;  %v3794_v12 = vadd.f32 %v3726_v62, %v3318_v40  ;;  %3283 = vst.msk [vmem:[#allocation2 + $0x80] sm:$0xff] %vm172_vm1, %v3247_v20  ;;  %5714 = vmatmul.msk.bf16.gmra.mxu1 %vm172_vm1, %v3063_v31  ;;  %v2772_v62 = vld [vmem:[#allocation2 + $0x90] sm:$0xff] }
 0x288   : > { %v3865_v10 = vld [vmem:[#allocation2 + $0x70] sm:$0xff]  ;;  %5810 = vmatmul.msk.bf16.gmra.mxu2 %vm172_vm1, %v3611_v56 }
 0x289   : > { %v5019_v54 = vsel %vm4947_vm3, %v4911_v44, %v4983_v59  ;;  %v4231_v34 = vadd.f32 %v7834_v28, %v3865_v10  ;;  %3830 = vst.msk [vmem:[#allocation2 + $0x78] sm:$0xff] %vm172_vm1, %v3794_v12 }
 0x28a   : > { %5055 = vst.msk [vmem:[%s7592_s15 + $0x58] sm:$0xff] %vm172_vm1, %v5019_v54  ;;  %v4302_v43 = vld [vmem:[#allocation2 + $0x68] sm:$0xff]  ;;  %v7961_v28 = vpop.f32.mrf.mxu0 }
 0x28b   : > { %4267 = vst.msk [vmem:[#allocation2 + $0x70] sm:$0xff] %vm172_vm1, %v4231_v34  ;;  %v4801_v8 = vadd.f32 %v7872_v29, %v4302_v43  ;;  %v3729_v53 = vpop.f32.mrf.mxu2  ;;  %v3612_v29 = vshrl.u32 %v7896_v1, 16 }
 0x28c   : > { %v4872_v45 = vld [vmem:[#allocation2 + $0x60] sm:$0xff]  ;;  %v3183_v7 = vpop.f32.mrf.mxu1 }
 0x28d   : > { %v4912_v4 = vadd.f32 %v7562_v18, %v4872_v45  ;;  %4837 = vst.msk [vmem:[#allocation2 + $0x68] sm:$0xff] %vm172_vm1, %v4801_v8  ;;  %v3248_v32 = vadd.f32 %v3183_v7, %v2771_v41  ;;  %6002 = vmatmul.msk.bf16.gmra.mxu0 %vm172_vm1, %v4619_v50  ;;  %v3614_v1 = vor.u32 %v3612_v29, %v7924_v57  ;;  %v4626_v57 = vrot.slane %v4624_v42, 2  ;;  %v2774_v50 = vld [vmem:[#allocation2 + $0xa0] sm:$0xff] }
 0x28e   : > { %v3319_v52 = vld [vmem:[#allocation2 + $0x80] sm:$0xff]  ;;  %v7977_v23 = vpop.f32.mrf.mxu3 }
 0x28f   : > { %vm4948_vm4 = vcmp.ge.f32.partialorder %v4912_v4, 0.0  ;;  %v4984_v9 = vmul.f32 0.2, %v4912_v4  ;;  %v3795_v27 = vadd.f32 %v3729_v53, %v3319_v52  ;;  %3284 = vst.msk [vmem:[#allocation2 + $0x88] sm:$0xff] %vm172_vm1, %v3248_v32  ;;  %v3619_v38 = vsel %vm2923_vm5, %v3614_v1, %v3618_v63 }
 0x290   : > { %v3866_v21 = vld [vmem:[#allocation2 + $0x78] sm:$0xff]  ;;  %v4627_v20 = vor.u32 %v4626_v57, %v4623_v35 }
 0x291   : > { %v5020_v33 = vsel %vm4948_vm4, %v4912_v4, %v4984_v9  ;;  %v4232_v15 = vadd.f32 %v7866_v5, %v3866_v21  ;;  %3831 = vst.msk [vmem:[#allocation2 + $0x80] sm:$0xff] %vm172_vm1, %v3795_v27  ;;  %v3071_v5 = vsel %vm2923_vm5, %v3066_v2, %v3070_v0 }
 0x292   : > { %5056 = vst.msk [vmem:[%s7592_s15 + $0x60] sm:$0xff] %vm172_vm1, %v5020_v33  ;;  %v4303_v3 = vld [vmem:[#allocation2 + $0x70] sm:$0xff]  ;;  %v7982_v51 = vpop.f32.mrf.mxu0 }
 0x293   : > { %4268 = vst.msk [vmem:[#allocation2 + $0x78] sm:$0xff] %vm172_vm1, %v4232_v15  ;;  %v4802_v46 = vadd.f32 %v7906_v39, %v4303_v3  ;;  %v3731_v11 = vpop.f32.mrf.mxu2  ;;  %v2775_v15 = vld [vmem:[#allocation2 + $0xa8] sm:$0xff] }
 0x294   : > { %v4873_v30 = vld [vmem:[#allocation2 + $0x68] sm:$0xff]  ;;  %v3186_v31 = vpop.f32.mrf.mxu1 }
 0x295   : > { %v4913_v22 = vadd.f32 %v7562_v18, %v4873_v30  ;;  %4838 = vst.msk [vmem:[#allocation2 + $0x70] sm:$0xff] %vm172_vm1, %v4802_v46  ;;  %v3249_v13 = vadd.f32 %v3186_v31, %v2772_v62 }
 0x296   : > { %v3320_v17 = vld [vmem:[#allocation2 + $0x88] sm:$0xff]  ;;  %v7994_v40 = vpop.f32.mrf.mxu3 }
 0x297   : > { %vm4949_vm7 = vcmp.ge.f32.partialorder %v4913_v22, 0.0  ;;  %v4985_v39 = vmul.f32 0.2, %v4913_v22  ;;  %v3796_v16 = vadd.f32 %v3731_v11, %v3320_v17  ;;  %3285 = vst.msk [vmem:[#allocation2 + $0x90] sm:$0xff] %vm172_vm1, %v3249_v13  ;;  %5715 = vmatmul.msk.bf16.gmra.mxu1 %vm172_vm1, %v3071_v5  ;;  %v2776_v13 = vld [vmem:[#allocation2 + $0xb0] sm:$0xff] }
 0x298   : > { %v3867_v44 = vld [vmem:[#allocation2 + $0x80] sm:$0xff]  ;;  %5811 = vmatmul.msk.bf16.gmra.mxu2 %vm172_vm1, %v3619_v38 }
 0x299   : > { %v5021_v56 = vsel %vm4949_vm7, %v4913_v22, %v4985_v39  ;;  %v4233_v58 = vadd.f32 %v7901_v49, %v3867_v44  ;;  %3832 = vst.msk [vmem:[#allocation2 + $0x88] sm:$0xff] %vm172_vm1, %v3796_v16  ;;  %v4628_v49 = vsel %vm4458_vm6, %v7950_v47, %v4627_v20 }
 0x29a   : > { %5057 = vst.msk [vmem:[%s7592_s15 + $0x68] sm:$0xff] %vm172_vm1, %v5021_v56  ;;  %v4304_v60 = vld [vmem:[#allocation2 + $0x78] sm:$0xff]  ;;  %v7998_v54 = vpop.f32.mrf.mxu0 }
 0x29b   : > { %4269 = vst.msk [vmem:[#allocation2 + $0x80] sm:$0xff] %vm172_vm1, %v4233_v58  ;;  %v4803_v59 = vadd.f32 %v7936_v48, %v4304_v60  ;;  %v3734_v12 = vpop.f32.mrf.mxu2 }
 0x29c   : > { %v4874_v10 = vld [vmem:[#allocation2 + $0x70] sm:$0xff]  ;;  %v3188_v61 = vpop.f32.mrf.mxu1 }
 0x29d   : > { %v4914_v34 = vadd.f32 %v7562_v18, %v4874_v10  ;;  %4839 = vst.msk [vmem:[#allocation2 + $0x78] sm:$0xff] %vm172_vm1, %v4803_v59  ;;  %v3250_v36 = vadd.f32 %v3188_v61, %v2773_v26  ;;  %6003 = vmatmul.msk.bf16.gmra.mxu0 %vm172_vm1, %v4628_v49 }
 0x29e   : > { %v3321_v43 = vld [vmem:[#allocation2 + $0x90] sm:$0xff]  ;;  %v8010_v47 = vpop.f32.mrf.mxu3 }
 0x29f   : > { %vm4950_vm5 = vcmp.ge.f32.partialorder %v4914_v34, 0.0  ;;  %v4986_v8 = vmul.f32 0.2, %v4914_v34  ;;  %v3797_v53 = vadd.f32 %v3734_v12, %v3321_v43  ;;  %3286 = vst.msk [vmem:[#allocation2 + $0x98] sm:$0xff] %vm172_vm1, %v3250_v36 }
 0x2a0   : > { %v3868_v48 = vld [vmem:[#allocation2 + $0x88] sm:$0xff] }
 0x2a1   : > { %v5022_v45 = vsel %vm4950_vm5, %v4914_v34, %v4986_v8  ;;  %v4234_v41 = vadd.f32 %v7930_v37, %v3868_v48  ;;  %3833 = vst.msk [vmem:[#allocation2 + $0x90] sm:$0xff] %vm172_vm1, %v3797_v53  ;;  %v8017_v37 = vld [vmem:[%s8176_s2] ss:$0 sm:$0xff] }
 0x2a2   : > { %5058 = vst.msk [vmem:[%s7592_s15 + $0x70] sm:$0xff] %vm172_vm1, %v5022_v45  ;;  %v4305_v18 = vld [vmem:[#allocation2 + $0x80] sm:$0xff]  ;;  %v4745_v4 = vpop.f32.mrf.mxu0 }
 0x2a3   : > { %4270 = vst.msk [vmem:[#allocation2 + $0x88] sm:$0xff] %vm172_vm1, %v4234_v41  ;;  %v4804_v7 = vadd.f32 %v7961_v28, %v4305_v18  ;;  %v3736_v14 = vpop.f32.mrf.mxu2 }
 0x2a4   : > { %v4875_v6 = vld [vmem:[#allocation2 + $0x78] sm:$0xff]  ;;  %v3191_v19 = vpop.f32.mrf.mxu1 }
 0x2a5   : > { %v4915_v32 = vadd.f32 %v8017_v37, %v4875_v6  ;;  %4840 = vst.msk [vmem:[#allocation2 + $0x80] sm:$0xff] %vm172_vm1, %v4804_v7  ;;  %v3251_v29 = vadd.f32 %v3191_v19, %v2774_v50  ;;  %v2778_v19 = vld [vmem:[#allocation2 + $0xc0] sm:$0xff] }
 0x2a6   : > { %v3322_v24 = vld [vmem:[#allocation2 + $0x98] sm:$0xff]  ;;  %v8028_v42 = vpop.f32.mrf.mxu3 }
 0x2a7   : > { %vm4951_vm6 = vcmp.ge.f32.partialorder %v4915_v32, 0.0  ;;  %v4987_v52 = vmul.f32 0.2, %v4915_v32  ;;  %v3798_v28 = vadd.f32 %v3736_v14, %v3322_v24  ;;  %3287 = vst.msk [vmem:[#allocation2 + $0xa0] sm:$0xff] %vm172_vm1, %v3251_v29 }
 0x2a8   : > { %v3869_v9 = vld [vmem:[#allocation2 + $0x90] sm:$0xff] }
 0x2a9   : > { %v5023_v27 = vsel %vm4951_vm6, %v4915_v32, %v4987_v52  ;;  %v4235_v21 = vadd.f32 %v7956_v55, %v3869_v9  ;;  %3834 = vst.msk [vmem:[#allocation2 + $0x98] sm:$0xff] %vm172_vm1, %v3798_v28 }
 0x2aa   : > { %5059 = vst.msk [vmem:[%s7592_s15 + $0x78] sm:$0xff] %vm172_vm1, %v5023_v27  ;;  %v4306_v2 = vld [vmem:[#allocation2 + $0x88] sm:$0xff]  ;;  %v4748_v63 = vpop.f32.mrf.mxu0 }
 0x2ab   : > { %4271 = vst.msk [vmem:[#allocation2 + $0x90] sm:$0xff] %vm172_vm1, %v4235_v21  ;;  %v4805_v0 = vadd.f32 %v7982_v51, %v4306_v2  ;;  %v3739_v25 = vpop.f32.mrf.mxu2 }
 0x2ac   : > { %v4876_v33 = vld [vmem:[#allocation2 + $0x80] sm:$0xff]  ;;  %v3193_v1 = vpop.f32.mrf.mxu1 }
 0x2ad   : > { %v4916_v3 = vadd.f32 %v8017_v37, %v4876_v33  ;;  %4841 = vst.msk [vmem:[#allocation2 + $0x88] sm:$0xff] %vm172_vm1, %v4805_v0  ;;  %v3252_v55 = vadd.f32 %v3193_v1, %v2775_v15  ;;  %v2779_v1 = vld [vmem:[#allocation2 + $0xc8] sm:$0xff] }
 0x2ae   : > { %v3323_v46 = vld [vmem:[#allocation2 + $0xa0] sm:$0xff]  ;;  %v8041_v44 = vpop.f32.mrf.mxu3 }
 0x2af   : > { %vm4952_vm8 = vcmp.ge.f32.partialorder %v4916_v3, 0.0  ;;  %v4988_v11 = vmul.f32 0.2, %v4916_v3  ;;  %v3799_v30 = vadd.f32 %v3739_v25, %v3323_v46  ;;  %3288 = vst.msk [vmem:[#allocation2 + $0xa8] sm:$0xff] %vm172_vm1, %v3252_v55 }
 0x2b0   : > { %v3870_v62 = vld [vmem:[#allocation2 + $0x98] sm:$0xff] }
 0x2b1   : > { %v5024_v31 = vsel %vm4952_vm8, %v4916_v3, %v4988_v11  ;;  %v4236_v5 = vadd.f32 %v7977_v23, %v3870_v62  ;;  %3835 = vst.msk [vmem:[#allocation2 + $0xa0] sm:$0xff] %vm172_vm1, %v3799_v30 }
 0x2b2   : > { %5060 = vst.msk [vmem:[%s7592_s15 + $0x80] sm:$0xff] %vm172_vm1, %v5024_v31  ;;  %v4307_v51 = vld [vmem:[#allocation2 + $0x90] sm:$0xff]  ;;  %v4750_v17 = vpop.f32.mrf.mxu0 }
 0x2b3   : > { %4272 = vst.msk [vmem:[#allocation2 + $0x98] sm:$0xff] %vm172_vm1, %v4236_v5  ;;  %v4806_v35 = vadd.f32 %v7998_v54, %v4307_v51  ;;  %v3741_v57 = vpop.f32.mrf.mxu2  ;;  %v2777_v54 = vld [vmem:[#allocation2 + $0xb8] sm:$0xff] }
 0x2b4   : > { %v4877_v22 = vld [vmem:[#allocation2 + $0x88] sm:$0xff]  ;;  %v3196_v38 = vpop.f32.mrf.mxu1 }
 0x2b5   : > { %v4917_v39 = vadd.f32 %v8017_v37, %v4877_v22  ;;  %4842 = vst.msk [vmem:[#allocation2 + $0x90] sm:$0xff] %vm172_vm1, %v4806_v35  ;;  %v3253_v23 = vadd.f32 %v3196_v38, %v2776_v13  ;;  %v2780_v13 = vld [vmem:[#allocation2 + $0xd0] sm:$0xff] }
 0x2b6   : > { %v3324_v16 = vld [vmem:[#allocation2 + $0xa8] sm:$0xff]  ;;  %v8052_v45 = vpop.f32.mrf.mxu3 }
 0x2b7   : > { %vm4953_vm9 = vcmp.ge.f32.partialorder %v4917_v39, 0.0  ;;  %v4989_v20 = vmul.f32 0.2, %v4917_v39  ;;  %v3800_v56 = vadd.f32 %v3741_v57, %v3324_v16  ;;  %3289 = vst.msk [vmem:[#allocation2 + $0xb0] sm:$0xff] %vm172_vm1, %v3253_v23 }
 0x2b8   : > { %v3871_v58 = vld [vmem:[#allocation2 + $0xa0] sm:$0xff] }
 0x2b9   : > { %v5025_v60 = vsel %vm4953_vm9, %v4917_v39, %v4989_v20  ;;  %v4237_v59 = vadd.f32 %v7994_v40, %v3871_v58  ;;  %3836 = vst.msk [vmem:[#allocation2 + $0xa8] sm:$0xff] %vm172_vm1, %v3800_v56 }
 0x2ba   : > { %5061 = vst.msk [vmem:[%s7592_s15 + $0x88] sm:$0xff] %vm172_vm1, %v5025_v60  ;;  %v4308_v12 = vld [vmem:[#allocation2 + $0x98] sm:$0xff]  ;;  %v4753_v34 = vpop.f32.mrf.mxu0 }
 0x2bb   : > { %4273 = vst.msk [vmem:[#allocation2 + $0xa0] sm:$0xff] %vm172_vm1, %v4237_v59  ;;  %v4807_v10 = vadd.f32 %v4745_v4, %v4308_v12  ;;  %v3744_v26 = vpop.f32.mrf.mxu2 }
 0x2bc   : > { %v4878_v61 = vld [vmem:[#allocation2 + $0x90] sm:$0xff]  ;;  %v3198_v49 = vpop.f32.mrf.mxu1 }
 0x2bd   : > { %v4918_v36 = vadd.f32 %v8017_v37, %v4878_v61  ;;  %4843 = vst.msk [vmem:[#allocation2 + $0x98] sm:$0xff] %vm172_vm1, %v4807_v10  ;;  %v3254_v43 = vadd.f32 %v3198_v49, %v2777_v54  ;;  %v2781_v54 = vld [vmem:[#allocation2 + $0xd8] sm:$0xff] }
 0x2be   : > { %v3325_v40 = vld [vmem:[#allocation2 + $0xb0] sm:$0xff]  ;;  %v8066_v0 = vpop.f32.mrf.mxu3 }
 0x2bf   : > { %vm4954_vm10 = vcmp.ge.f32.partialorder %v4918_v36, 0.0  ;;  %v4990_v8 = vmul.f32 0.2, %v4918_v36  ;;  %v3801_v53 = vadd.f32 %v3744_v26, %v3325_v40  ;;  %3290 = vst.msk [vmem:[#allocation2 + $0xb8] sm:$0xff] %vm172_vm1, %v3254_v43 }
 0x2c0   : > { %v3872_v48 = vld [vmem:[#allocation2 + $0xa8] sm:$0xff] }
 0x2c1   : > { %v5026_v41 = vsel %vm4954_vm10, %v4918_v36, %v4990_v8  ;;  %v4238_v18 = vadd.f32 %v8010_v47, %v3872_v48  ;;  %3837 = vst.msk [vmem:[#allocation2 + $0xb0] sm:$0xff] %vm172_vm1, %v3801_v53 }
 0x2c2   : > { %5062 = vst.msk [vmem:[%s7592_s15 + $0x90] sm:$0xff] %vm172_vm1, %v5026_v41  ;;  %v4309_v7 = vld [vmem:[#allocation2 + $0xa0] sm:$0xff]  ;;  %v4755_v32 = vpop.f32.mrf.mxu0 }
 0x2c3   : > { %4274 = vst.msk [vmem:[#allocation2 + $0xa8] sm:$0xff] %vm172_vm1, %v4238_v18  ;;  %v4808_v14 = vadd.f32 %v4748_v63, %v4309_v7  ;;  %v3746_v6 = vpop.f32.mrf.mxu2 }
 0x2c4   : > { %v4879_v50 = vld [vmem:[#allocation2 + $0x98] sm:$0xff]  ;;  %v3201_v4 = vpop.f32.mrf.mxu1 }
 0x2c5   : > { %v4919_v29 = vadd.f32 %v8017_v37, %v4879_v50  ;;  %4844 = vst.msk [vmem:[#allocation2 + $0xa0] sm:$0xff] %vm172_vm1, %v4808_v14  ;;  %v3255_v24 = vadd.f32 %v3201_v4, %v2778_v19  ;;  %v2782_v19 = vld [vmem:[#allocation2 + $0xe0] sm:$0xff] }
 0x2c6   : > { %v3326_v47 = vld [vmem:[#allocation2 + $0xb8] sm:$0xff] }
 0x2c7   : > { %vm4955_vm11 = vcmp.ge.f32.partialorder %v4919_v29, 0.0  ;;  %v4991_v52 = vmul.f32 0.2, %v4919_v29  ;;  %v3802_v28 = vadd.f32 %v3746_v6, %v3326_v47  ;;  %3291 = vst.msk [vmem:[#allocation2 + $0xc0] sm:$0xff] %vm172_vm1, %v3255_v24 }
 0x2c8   : > { %v3873_v9 = vld [vmem:[#allocation2 + $0xb0] sm:$0xff] }
 0x2c9   : > { %v5027_v27 = vsel %vm4955_vm11, %v4919_v29, %v4991_v52  ;;  %v4239_v21 = vadd.f32 %v8028_v42, %v3873_v9  ;;  %3838 = vst.msk [vmem:[#allocation2 + $0xb8] sm:$0xff] %vm172_vm1, %v3802_v28 }
 0x2ca   : > { %5063 = vst.msk [vmem:[%s7592_s15 + $0x98] sm:$0xff] %vm172_vm1, %v5027_v27  ;;  %v4310_v2 = vld [vmem:[#allocation2 + $0xa8] sm:$0xff]  ;;  %v4758_v3 = vpop.f32.mrf.mxu0 }
 0x2cb   : > { %4275 = vst.msk [vmem:[#allocation2 + $0xb0] sm:$0xff] %vm172_vm1, %v4239_v21  ;;  %v4809_v25 = vadd.f32 %v4750_v17, %v4310_v2  ;;  %v3749_v33 = vpop.f32.mrf.mxu2  ;;  %v4192_v17 = vpop.f32.mrf.mxu3 }
 0x2cc   : > { %v4880_v15 = vld [vmem:[#allocation2 + $0xa0] sm:$0xff]  ;;  %v3203_v63 = vpop.f32.mrf.mxu1 }
 0x2cd   : > { %v4920_v55 = vadd.f32 %v8017_v37, %v4880_v15  ;;  %4845 = vst.msk [vmem:[#allocation2 + $0xa8] sm:$0xff] %vm172_vm1, %v4809_v25  ;;  %v3256_v42 = vadd.f32 %v3203_v63, %v2779_v1  ;;  %v2783_v1 = vld [vmem:[#allocation2 + $0xe8] sm:$0xff] }
 0x2ce   : > { %v3327_v46 = vld [vmem:[#allocation2 + $0xc0] sm:$0xff] }
 0x2cf   : > { %vm4956_vm12 = vcmp.ge.f32.partialorder %v4920_v55, 0.0  ;;  %v4992_v11 = vmul.f32 0.2, %v4920_v55  ;;  %v3803_v30 = vadd.f32 %v3749_v33, %v3327_v46  ;;  %3292 = vst.msk [vmem:[#allocation2 + $0xc8] sm:$0xff] %vm172_vm1, %v3256_v42 }
 0x2d0   : > { %v3874_v62 = vld [vmem:[#allocation2 + $0xb8] sm:$0xff] }
 0x2d1   : > { %v5028_v31 = vsel %vm4956_vm12, %v4920_v55, %v4992_v11  ;;  %v4240_v5 = vadd.f32 %v8041_v44, %v3874_v62  ;;  %3839 = vst.msk [vmem:[#allocation2 + $0xc0] sm:$0xff] %vm172_vm1, %v3803_v30 }
 0x2d2   : > { %5064 = vst.msk [vmem:[%s7592_s15 + $0xa0] sm:$0xff] %vm172_vm1, %v5028_v31  ;;  %v4311_v51 = vld [vmem:[#allocation2 + $0xb0] sm:$0xff]  ;;  %v4760_v16 = vpop.f32.mrf.mxu0 }
 0x2d3   : > { %4276 = vst.msk [vmem:[#allocation2 + $0xb8] sm:$0xff] %vm172_vm1, %v4240_v5  ;;  %v4810_v35 = vadd.f32 %v4753_v34, %v4311_v51  ;;  %v3751_v57 = vpop.f32.mrf.mxu2  ;;  %v4194_v40 = vpop.f32.mrf.mxu3 }
 0x2d4   : > { %v4881_v22 = vld [vmem:[#allocation2 + $0xa8] sm:$0xff]  ;;  %v3206_v38 = vpop.f32.mrf.mxu1 }
 0x2d5   : > { %v4921_v39 = vadd.f32 %v8017_v37, %v4881_v22  ;;  %4846 = vst.msk [vmem:[#allocation2 + $0xb0] sm:$0xff] %vm172_vm1, %v4810_v35  ;;  %v3257_v23 = vadd.f32 %v3206_v38, %v2780_v13  ;;  %v2784_v38 = vld [vmem:[#allocation2 + $0xf0] sm:$0xff] }
 0x2d6   : > { %v3328_v44 = vld [vmem:[#allocation2 + $0xc8] sm:$0xff] }
 0x2d7   : > { %vm4957_vm13 = vcmp.ge.f32.partialorder %v4921_v39, 0.0  ;;  %v4993_v20 = vmul.f32 0.2, %v4921_v39  ;;  %v3804_v56 = vadd.f32 %v3751_v57, %v3328_v44  ;;  %3293 = vst.msk [vmem:[#allocation2 + $0xd0] sm:$0xff] %vm172_vm1, %v3257_v23 }
 0x2d8   : > { %v3875_v58 = vld [vmem:[#allocation2 + $0xc0] sm:$0xff] }
 0x2d9   : > { %v5029_v60 = vsel %vm4957_vm13, %v4921_v39, %v4993_v20  ;;  %v4241_v59 = vadd.f32 %v8052_v45, %v3875_v58  ;;  %3840 = vst.msk [vmem:[#allocation2 + $0xc8] sm:$0xff] %vm172_vm1, %v3804_v56 }
 0x2da   : > { %5065 = vst.msk [vmem:[%s7592_s15 + $0xa8] sm:$0xff] %vm172_vm1, %v5029_v60  ;;  %v4312_v12 = vld [vmem:[#allocation2 + $0xb8] sm:$0xff]  ;;  %v4763_v48 = vpop.f32.mrf.mxu0 }
 0x2db   : > { %4277 = vst.msk [vmem:[#allocation2 + $0xc0] sm:$0xff] %vm172_vm1, %v4241_v59  ;;  %v4811_v10 = vadd.f32 %v4755_v32, %v4312_v12  ;;  %v3754_v26 = vpop.f32.mrf.mxu2  ;;  %v4197_v9 = vpop.f32.mrf.mxu3 }
 0x2dc   : > { %v4882_v61 = vld [vmem:[#allocation2 + $0xb0] sm:$0xff]  ;;  %v3208_v49 = vpop.f32.mrf.mxu1 }
 0x2dd   : > { %v4922_v34 = vadd.f32 %v8017_v37, %v4882_v61  ;;  %4847 = vst.msk [vmem:[#allocation2 + $0xb8] sm:$0xff] %vm172_vm1, %v4811_v10  ;;  %v3258_v36 = vadd.f32 %v3208_v49, %v2781_v54  ;;  %v2785_v61 = vld [vmem:[#allocation2 + $0xf8] sm:$0xff] }
 0x2de   : > { %v3329_v43 = vld [vmem:[#allocation2 + $0xd0] sm:$0xff] }
 0x2df   : > { %vm4958_vm14 = vcmp.ge.f32.partialorder %v4922_v34, 0.0  ;;  %v4994_v8 = vmul.f32 0.2, %v4922_v34  ;;  %v3805_v53 = vadd.f32 %v3754_v26, %v3329_v43  ;;  %3294 = vst.msk [vmem:[#allocation2 + $0xd8] sm:$0xff] %vm172_vm1, %v3258_v36 }
 0x2e0   : > { %v3876_v45 = vld [vmem:[#allocation2 + $0xc8] sm:$0xff] }
 0x2e1   : > { %v5030_v41 = vsel %vm4958_vm14, %v4922_v34, %v4994_v8  ;;  %v4242_v18 = vadd.f32 %v8066_v0, %v3876_v45  ;;  %3841 = vst.msk [vmem:[#allocation2 + $0xd0] sm:$0xff] %vm172_vm1, %v3805_v53 }
 0x2e2   : > { %5066 = vst.msk [vmem:[%s7592_s15 + $0xb0] sm:$0xff] %vm172_vm1, %v5030_v41  ;;  %v4313_v7 = vld [vmem:[#allocation2 + $0xc0] sm:$0xff]  ;;  %v4765_v2 = vpop.f32.mrf.mxu0 }
 0x2e3   : > { %4278 = vst.msk [vmem:[#allocation2 + $0xc8] sm:$0xff] %vm172_vm1, %v4242_v18  ;;  %v4812_v14 = vadd.f32 %v4758_v3, %v4313_v7  ;;  %v3756_v6 = vpop.f32.mrf.mxu2  ;;  %v4199_v51 = vpop.f32.mrf.mxu3 }
 0x2e4   : > { %v4883_v50 = vld [vmem:[#allocation2 + $0xb8] sm:$0xff]  ;;  %v3211_v4 = vpop.f32.mrf.mxu1 }
 0x2e5   : > { %v4923_v32 = vadd.f32 %v8017_v37, %v4883_v50  ;;  %4848 = vst.msk [vmem:[#allocation2 + $0xc0] sm:$0xff] %vm172_vm1, %v4812_v14  ;;  %v3259_v29 = vadd.f32 %v3211_v4, %v2782_v19  ;;  %v2786_v50 = vld [vmem:[#allocation2 + $0x100] sm:$0xff] }
 0x2e6   : > { %v3330_v24 = vld [vmem:[#allocation2 + $0xd8] sm:$0xff] }
 0x2e7   : > { %vm4959_vm15 = vcmp.ge.f32.partialorder %v4923_v32, 0.0  ;;  %v4995_v47 = vmul.f32 0.2, %v4923_v32  ;;  %v3806_v52 = vadd.f32 %v3756_v6, %v3330_v24  ;;  %3295 = vst.msk [vmem:[#allocation2 + $0xe0] sm:$0xff] %vm172_vm1, %v3259_v29 }
 0x2e8   : > { %v3877_v28 = vld [vmem:[#allocation2 + $0xd0] sm:$0xff] }
 0x2e9   : > { %v5031_v27 = vsel %vm4959_vm15, %v4923_v32, %v4995_v47  ;;  %v4243_v21 = vadd.f32 %v4192_v17, %v3877_v28  ;;  %3842 = vst.msk [vmem:[#allocation2 + $0xd8] sm:$0xff] %vm172_vm1, %v3806_v52 }
 0x2ea   : > { %5067 = vst.msk [vmem:[%s7592_s15 + $0xb8] sm:$0xff] %vm172_vm1, %v5031_v27  ;;  %v4314_v0 = vld [vmem:[#allocation2 + $0xc8] sm:$0xff]  ;;  %v4768_v22 = vpop.f32.mrf.mxu0 }
 0x2eb   : > { %4279 = vst.msk [vmem:[#allocation2 + $0xd0] sm:$0xff] %vm172_vm1, %v4243_v21  ;;  %v4813_v25 = vadd.f32 %v4760_v16, %v4314_v0  ;;  %v3759_v33 = vpop.f32.mrf.mxu2  ;;  %v4202_v36 = vpop.f32.mrf.mxu3 }
 0x2ec   : > { %v4884_v15 = vld [vmem:[#allocation2 + $0xc0] sm:$0xff]  ;;  %v3213_v63 = vpop.f32.mrf.mxu1 }
 0x2ed   : > { %v4924_v3 = vadd.f32 %v8017_v37, %v4884_v15  ;;  %4849 = vst.msk [vmem:[#allocation2 + $0xc8] sm:$0xff] %vm172_vm1, %v4813_v25  ;;  %v3260_v55 = vadd.f32 %v3213_v63, %v2783_v1  ;;  %v2787_v15 = vld [vmem:[#allocation2 + $0x108] sm:$0xff] }
 0x2ee   : > { %v3331_v42 = vld [vmem:[#allocation2 + $0xe0] sm:$0xff] }
 0x2ef   : > { %vm4960_vm0 = vcmp.ge.f32.partialorder %v4924_v3, 0.0  ;;  %v4996_v46 = vmul.f32 0.2, %v4924_v3  ;;  %v3807_v11 = vadd.f32 %v3759_v33, %v3331_v42  ;;  %3296 = vst.msk [vmem:[#allocation2 + $0xe8] sm:$0xff] %vm172_vm1, %v3260_v55 }
 0x2f0   : > { %v3878_v30 = vld [vmem:[#allocation2 + $0xd8] sm:$0xff] }
 0x2f1   : > { %v5032_v62 = vsel %vm4960_vm0, %v4924_v3, %v4996_v46  ;;  %v4244_v31 = vadd.f32 %v4194_v40, %v3878_v30  ;;  %3843 = vst.msk [vmem:[#allocation2 + $0xe0] sm:$0xff] %vm172_vm1, %v3807_v11 }
 0x2f2   : > { %5068 = vst.msk [vmem:[%s7592_s15 + $0xc0] sm:$0xff] %vm172_vm1, %v5032_v62  ;;  %v4315_v5 = vld [vmem:[#allocation2 + $0xd0] sm:$0xff]  ;;  %v4770_v43 = vpop.f32.mrf.mxu0 }
 0x2f3   : > { %4280 = vst.msk [vmem:[#allocation2 + $0xd8] sm:$0xff] %vm172_vm1, %v4244_v31  ;;  %v4814_v35 = vadd.f32 %v4763_v48, %v4315_v5  ;;  %v3761_v57 = vpop.f32.mrf.mxu2  ;;  %v4204_v52 = vpop.f32.mrf.mxu3 }
 0x2f4   : > { %v4885_v13 = vld [vmem:[#allocation2 + $0xc8] sm:$0xff]  ;;  %v3216_v17 = vpop.f32.mrf.mxu1 }
 0x2f5   : > { %v4925_v39 = vadd.f32 %v8017_v37, %v4885_v13  ;;  %4850 = vst.msk [vmem:[#allocation2 + $0xd0] sm:$0xff] %vm172_vm1, %v4814_v35  ;;  %v3261_v23 = vadd.f32 %v3216_v17, %v2784_v38  ;;  %v2788_v13 = vld [vmem:[#allocation2 + $0x110] sm:$0xff] }
 0x2f6   : > { %v3332_v16 = vld [vmem:[#allocation2 + $0xe8] sm:$0xff] }
 0x2f7   : > { %vm4961_vm2 = vcmp.ge.f32.partialorder %v4925_v39, 0.0  ;;  %v4997_v44 = vmul.f32 0.2, %v4925_v39  ;;  %v3808_v20 = vadd.f32 %v3761_v57, %v3332_v16  ;;  %3297 = vst.msk [vmem:[#allocation2 + $0xf0] sm:$0xff] %vm172_vm1, %v3261_v23 }
 0x2f8   : > { %v3879_v56 = vld [vmem:[#allocation2 + $0xe0] sm:$0xff] }
 0x2f9   : > { %v5033_v58 = vsel %vm4961_vm2, %v4925_v39, %v4997_v44  ;;  %v4245_v60 = vadd.f32 %v4197_v9, %v3879_v56  ;;  %3844 = vst.msk [vmem:[#allocation2 + $0xe8] sm:$0xff] %vm172_vm1, %v3808_v20 }
 0x2fa   : > { %5069 = vst.msk [vmem:[%s7592_s15 + $0xc8] sm:$0xff] %vm172_vm1, %v5033_v58  ;;  %v4316_v59 = vld [vmem:[#allocation2 + $0xd8] sm:$0xff]  ;;  %v4773_v28 = vpop.f32.mrf.mxu0 }
 0x2fb   : > { %4281 = vst.msk [vmem:[#allocation2 + $0xe0] sm:$0xff] %vm172_vm1, %v4245_v60  ;;  %v4815_v12 = vadd.f32 %v4765_v2, %v4316_v59  ;;  %v3764_v10 = vpop.f32.mrf.mxu2  ;;  %v4207_v31 = vpop.f32.mrf.mxu3 }
 0x2fc   : > { %v4886_v26 = vld [vmem:[#allocation2 + $0xd0] sm:$0xff]  ;;  %v3218_v54 = vpop.f32.mrf.mxu1 }
 0x2fd   : > { %v4926_v49 = vadd.f32 %v8017_v37, %v4886_v26  ;;  %4851 = vst.msk [vmem:[#allocation2 + $0xd8] sm:$0xff] %vm172_vm1, %v4815_v12  ;;  %v3262_v34 = vadd.f32 %v3218_v54, %v2785_v61  ;;  %v2789_v54 = vld [vmem:[#allocation2 + $0x118] sm:$0xff] }
 0x2fe   : > { %v3333_v40 = vld [vmem:[#allocation2 + $0xf0] sm:$0xff] }
 0x2ff   : > { %vm4962_vm3 = vcmp.ge.f32.partialorder %v4926_v49, 0.0  ;;  %v4998_v8 = vmul.f32 0.2, %v4926_v49  ;;  %v3809_v53 = vadd.f32 %v3764_v10, %v3333_v40  ;;  %3298 = vst.msk [vmem:[#allocation2 + $0xf8] sm:$0xff] %vm172_vm1, %v3262_v34 }
 0x300   : > { %v3880_v48 = vld [vmem:[#allocation2 + $0xe8] sm:$0xff] }
 0x301   : > { %v5034_v45 = vsel %vm4962_vm3, %v4926_v49, %v4998_v8  ;;  %v4246_v41 = vadd.f32 %v4199_v51, %v3880_v48  ;;  %3845 = vst.msk [vmem:[#allocation2 + $0xf0] sm:$0xff] %vm172_vm1, %v3809_v53 }
 0x302   : > { %5070 = vst.msk [vmem:[%s7592_s15 + $0xd0] sm:$0xff] %vm172_vm1, %v5034_v45  ;;  %v4317_v18 = vld [vmem:[#allocation2 + $0xe0] sm:$0xff]  ;;  %v4775_v5 = vpop.f32.mrf.mxu0 }
 0x303   : > { %4282 = vst.msk [vmem:[#allocation2 + $0xe8] sm:$0xff] %vm172_vm1, %v4246_v41  ;;  %v4816_v7 = vadd.f32 %v4768_v22, %v4317_v18  ;;  %v3766_v14 = vpop.f32.mrf.mxu2  ;;  %v4209_v12 = vpop.f32.mrf.mxu3 }
 0x304   : > { %v4887_v6 = vld [vmem:[#allocation2 + $0xd8] sm:$0xff]  ;;  %v3221_v19 = vpop.f32.mrf.mxu1 }
 0x305   : > { %v4927_v4 = vadd.f32 %v8017_v37, %v4887_v6  ;;  %4852 = vst.msk [vmem:[#allocation2 + $0xe0] sm:$0xff] %vm172_vm1, %v4816_v7  ;;  %v3263_v32 = vadd.f32 %v3221_v19, %v2786_v50 }
 0x306   : > { %v3334_v29 = vld [vmem:[#allocation2 + $0xf8] sm:$0xff] }
 0x307   : > { %vm4963_vm4 = vcmp.ge.f32.partialorder %v4927_v4, 0.0  ;;  %v4999_v24 = vmul.f32 0.2, %v4927_v4  ;;  %v3810_v47 = vadd.f32 %v3766_v14, %v3334_v29  ;;  %3299 = vst.msk [vmem:[#allocation2 + $0x100] sm:$0xff] %vm172_vm1, %v3263_v32 }
 0x308   : > { %v3881_v9 = vld [vmem:[#allocation2 + $0xf0] sm:$0xff] }
 0x309   : > { %v5035_v27 = vsel %vm4963_vm4, %v4927_v4, %v4999_v24  ;;  %v4247_v21 = vadd.f32 %v4202_v36, %v3881_v9  ;;  %3846 = vst.msk [vmem:[#allocation2 + $0xf8] sm:$0xff] %vm172_vm1, %v3810_v47 }
 0x30a   : > { %5071 = vst.msk [vmem:[%s7592_s15 + $0xd8] sm:$0xff] %vm172_vm1, %v5035_v27  ;;  %v4318_v2 = vld [vmem:[#allocation2 + $0xe8] sm:$0xff]  ;;  %v4778_v10 = vpop.f32.mrf.mxu0 }
 0x30b   : > { %4283 = vst.msk [vmem:[#allocation2 + $0xf0] sm:$0xff] %vm172_vm1, %v4247_v21  ;;  %v4817_v0 = vadd.f32 %v4770_v43, %v4318_v2  ;;  %v3769_v25 = vpop.f32.mrf.mxu2  ;;  %v4212_v6 = vpop.f32.mrf.mxu3 }
 0x30c   : > { %v4888_v33 = vld [vmem:[#allocation2 + $0xe0] sm:$0xff]  ;;  %v3223_v1 = vpop.f32.mrf.mxu1 }
 0x30d   : > { %v4928_v63 = vadd.f32 %v8017_v37, %v4888_v33  ;;  %4853 = vst.msk [vmem:[#allocation2 + $0xe8] sm:$0xff] %vm172_vm1, %v4817_v0  ;;  %v3264_v3 = vadd.f32 %v3223_v1, %v2787_v15 }
 0x30e   : > { %v3335_v55 = vld [vmem:[#allocation2 + $0x100] sm:$0xff] }
 0x30f   : > { %vm4964_vm7 = vcmp.ge.f32.partialorder %v4928_v63, 0.0  ;;  %v5000_v42 = vmul.f32 0.2, %v4928_v63  ;;  %v3811_v46 = vadd.f32 %v3769_v25, %v3335_v55  ;;  %3300 = vst.msk [vmem:[#allocation2 + $0x108] sm:$0xff] %vm172_vm1, %v3264_v3 }
 0x310   : > { %v3882_v11 = vld [vmem:[#allocation2 + $0xf8] sm:$0xff] }
 0x311   : > { %v5036_v30 = vsel %vm4964_vm7, %v4928_v63, %v5000_v42  ;;  %v4248_v62 = vadd.f32 %v4204_v52, %v3882_v11  ;;  %3847 = vst.msk [vmem:[#allocation2 + $0x100] sm:$0xff] %vm172_vm1, %v3811_v46 }
 0x312   : > { %5072 = vst.msk [vmem:[%s7592_s15 + $0xe0] sm:$0xff] %vm172_vm1, %v5036_v30  ;;  %v4319_v51 = vld [vmem:[#allocation2 + $0xf0] sm:$0xff]  ;;  %v4780_v4 = vpop.f32.mrf.mxu0 }
 0x313   : > { %4284 = vst.msk [vmem:[#allocation2 + $0xf8] sm:$0xff] %vm172_vm1, %v4248_v62  ;;  %v4818_v35 = vadd.f32 %v4773_v28, %v4319_v51  ;;  %v3771_v57 = vpop.f32.mrf.mxu2  ;;  %v4214_v25 = vpop.f32.mrf.mxu3 }
 0x314   : > { %v4889_v22 = vld [vmem:[#allocation2 + $0xe8] sm:$0xff]  ;;  %v3226_v38 = vpop.f32.mrf.mxu1 }
 0x315   : > { %v4929_v17 = vadd.f32 %v8017_v37, %v4889_v22  ;;  %4854 = vst.msk [vmem:[#allocation2 + $0xf0] sm:$0xff] %vm172_vm1, %v4818_v35  ;;  %v3265_v39 = vadd.f32 %v3226_v38, %v2788_v13 }
 0x316   : > { %v3336_v23 = vld [vmem:[#allocation2 + $0x108] sm:$0xff] }
 0x317   : > { %vm4965_vm5 = vcmp.ge.f32.partialorder %v4929_v17, 0.0  ;;  %v5001_v16 = vmul.f32 0.2, %v4929_v17  ;;  %v3812_v44 = vadd.f32 %v3771_v57, %v3336_v23  ;;  %3301 = vst.msk [vmem:[#allocation2 + $0x110] sm:$0xff] %vm172_vm1, %v3265_v39 }
 0x318   : > { %v3883_v20 = vld [vmem:[#allocation2 + $0x100] sm:$0xff] }
 0x319   : > { %v5037_v56 = vsel %vm4965_vm5, %v4929_v17, %v5001_v16  ;;  %v4249_v58 = vadd.f32 %v4207_v31, %v3883_v20  ;;  %3848 = vst.msk [vmem:[#allocation2 + $0x108] sm:$0xff] %vm172_vm1, %v3812_v44 }
 0x31a   : > { %5073 = vst.msk [vmem:[%s7592_s15 + $0xe8] sm:$0xff] %vm172_vm1, %v5037_v56  ;;  %v4320_v60 = vld [vmem:[#allocation2 + $0xf8] sm:$0xff]  ;;  %v4783_v33 = vpop.f32.mrf.mxu0 }
 0x31b   : > { %4285 = vst.msk [vmem:[#allocation2 + $0x100] sm:$0xff] %vm172_vm1, %v4249_v58  ;;  %v4819_v59 = vadd.f32 %v4775_v5, %v4320_v60  ;;  %v3774_v61 = vpop.f32.mrf.mxu2 }
 0x31c   : > { %v4890_v26 = vld [vmem:[#allocation2 + $0xf0] sm:$0xff]  ;;  %v3228_v49 = vpop.f32.mrf.mxu1 }
 0x31d   : > { %v4930_v34 = vadd.f32 %v8017_v37, %v4890_v26  ;;  %4855 = vst.msk [vmem:[#allocation2 + $0xf8] sm:$0xff] %vm172_vm1, %v4819_v59  ;;  %v3266_v36 = vadd.f32 %v3228_v49, %v2789_v54 }
 0x31e   : > { %v3337_v43 = vld [vmem:[#allocation2 + $0x110] sm:$0xff] }
 0x31f   : > { %vm4966_vm6 = vcmp.ge.f32.partialorder %v4930_v34, 0.0  ;;  %v5002_v40 = vmul.f32 0.2, %v4930_v34  ;;  %v3813_v8 = vadd.f32 %v3774_v61, %v3337_v43  ;;  %3302 = vst.msk [vmem:[#allocation2 + $0x118] sm:$0xff] %vm172_vm1, %v3266_v36 }
 0x320   : > { %v3884_v53 = vld [vmem:[#allocation2 + $0x108] sm:$0xff] }
 0x321   : > { %v5038_v48 = vsel %vm4966_vm6, %v4930_v34, %v5002_v40  ;;  %v4250_v45 = vadd.f32 %v4209_v12, %v3884_v53  ;;  %3849 = vst.msk [vmem:[#allocation2 + $0x110] sm:$0xff] %vm172_vm1, %v3813_v8 }
 0x322   : > { %5074 = vst.msk [vmem:[%s7592_s15 + $0xf0] sm:$0xff] %vm172_vm1, %v5038_v48  ;;  %v4321_v41 = vld [vmem:[#allocation2 + $0x100] sm:$0xff]  ;;  %v4785_v62 = vpop.f32.mrf.mxu0 }
 0x323   : > { %4286 = vst.msk [vmem:[#allocation2 + $0x108] sm:$0xff] %vm172_vm1, %v4250_v45  ;;  %v4820_v18 = vadd.f32 %v4778_v10, %v4321_v41  ;;  %v3776_v19 = vpop.f32.mrf.mxu2 }
 0x324   : > { %v4891_v7 = vld [vmem:[#allocation2 + $0xf8] sm:$0xff] }
 0x325   : > { %v4931_v14 = vadd.f32 %v8017_v37, %v4891_v7  ;;  %4856 = vst.msk [vmem:[#allocation2 + $0x100] sm:$0xff] %vm172_vm1, %v4820_v18 }
 0x326   : > { %v3338_v50 = vld [vmem:[#allocation2 + $0x118] sm:$0xff] }
 0x327   : > { %vm4967_vm8 = vcmp.ge.f32.partialorder %v4931_v14, 0.0  ;;  %v5003_v32 = vmul.f32 0.2, %v4931_v14  ;;  %v3814_v29 = vadd.f32 %v3776_v19, %v3338_v50 }
 0x328   : > { %v3885_v24 = vld [vmem:[#allocation2 + $0x110] sm:$0xff] }
 0x329   : > { %v5039_v47 = vsel %vm4967_vm8, %v4931_v14, %v5003_v32  ;;  %v4251_v52 = vadd.f32 %v4212_v6, %v3885_v24  ;;  %3850 = vst.msk [vmem:[#allocation2 + $0x118] sm:$0xff] %vm172_vm1, %v3814_v29 }
 0x32a   : > { %5075 = vst.msk [vmem:[%s7592_s15 + $0xf8] sm:$0xff] %vm172_vm1, %v5039_v47  ;;  %v4322_v28 = vld [vmem:[#allocation2 + $0x108] sm:$0xff] }
 0x32b   : > { %4287 = vst.msk [vmem:[#allocation2 + $0x110] sm:$0xff] %vm172_vm1, %v4251_v52  ;;  %v4821_v9 = vadd.f32 %v4780_v4, %v4322_v28 }
 0x32c   : > { %v4892_v27 = vld [vmem:[#allocation2 + $0x100] sm:$0xff] }
 0x32d   : > { %v4932_v21 = vadd.f32 %v8017_v37, %v4892_v27  ;;  %4857 = vst.msk [vmem:[#allocation2 + $0x108] sm:$0xff] %vm172_vm1, %v4821_v9 }
 0x32f   : > { %vm4968_vm9 = vcmp.ge.f32.partialorder %v4932_v21, 0.0  ;;  %v5004_v2 = vmul.f32 0.2, %v4932_v21 }
 0x330   : > { %v3886_v0 = vld [vmem:[#allocation2 + $0x118] sm:$0xff] }
 0x331   : > { %v5040_v15 = vsel %vm4968_vm9, %v4932_v21, %v5004_v2  ;;  %v4252_v1 = vadd.f32 %v4214_v25, %v3886_v0 }
 0x332   : > { %5076 = vst.msk [vmem:[%s7592_s15 + $0x100] sm:$0xff] %vm172_vm1, %v5040_v15  ;;  %v4323_v63 = vld [vmem:[#allocation2 + $0x110] sm:$0xff] }
 0x333   : > { %4288 = vst.msk [vmem:[#allocation2 + $0x118] sm:$0xff] %vm172_vm1, %v4252_v1  ;;  %v4822_v3 = vadd.f32 %v4783_v33, %v4323_v63 }
 0x334   : > { %v4893_v55 = vld [vmem:[#allocation2 + $0x108] sm:$0xff] }
 0x335   : > { %v4933_v42 = vadd.f32 %v8017_v37, %v4893_v55  ;;  %4858 = vst.msk [vmem:[#allocation2 + $0x110] sm:$0xff] %vm172_vm1, %v4822_v3 }
 0x337   : > { %vm4969_vm10 = vcmp.ge.f32.partialorder %v4933_v42, 0.0  ;;  %v5005_v46 = vmul.f32 0.2, %v4933_v42 }
 0x339   : > { %v5041_v11 = vsel %vm4969_vm10, %v4933_v42, %v5005_v46 }
 0x33a   : > { %5077 = vst.msk [vmem:[%s7592_s15 + $0x108] sm:$0xff] %vm172_vm1, %v5041_v11  ;;  %v4324_v30 = vld [vmem:[#allocation2 + $0x118] sm:$0xff] }
 0x33b   : > { %v4823_v31 = vadd.f32 %v4785_v62, %v4324_v30 }
 0x33c   : > { %v4894_v5 = vld [vmem:[#allocation2 + $0x110] sm:$0xff] }
 0x33d   : > { %v4934_v51 = vadd.f32 %v8017_v37, %v4894_v5  ;;  %4859 = vst.msk [vmem:[#allocation2 + $0x118] sm:$0xff] %vm172_vm1, %v4823_v31 }
 0x33f   : > { %vm4970_vm11 = vcmp.ge.f32.partialorder %v4934_v51, 0.0  ;;  %v5006_v35 = vmul.f32 0.2, %v4934_v51 }
 0x341   : > { %v5042_v57 = vsel %vm4970_vm11, %v4934_v51, %v5006_v35 }
 0x342   : > { %5078 = vst.msk [vmem:[%s7592_s15 + $0x110] sm:$0xff] %vm172_vm1, %v5042_v57 }
 0x344   : > { %v4895_v22 = vld [vmem:[#allocation2 + $0x118] sm:$0xff] }
 0x345   : > { %v4935_v13 = vadd.f32 %v8017_v37, %v4895_v22 }
 0x347   : > { %vm4971_vm12 = vcmp.ge.f32.partialorder %v4935_v13, 0.0  ;;  %v5007_v38 = vmul.f32 0.2, %v4935_v13 }
 0x349   : > { %v5043_v17 = vsel %vm4971_vm12, %v4935_v13, %v5007_v38 }
 0x34a   : > { %5079 = vst.msk [vmem:[%s7592_s15 + $0x118] sm:$0xff] %vm172_vm1, %v5043_v17 }
 0x34b PF: > { %s13_s12 = sadd.s32 1, %s6199_s12  }
 0x34c   : > { %p10_p4 = scmp.ge.s32.totalorder %s13_s12, 4  }
 0x34e   :  { %12 = sbr.rel (!%p10_p4) target bundleno = 1 (0x1), region = 70 }

</bundles_post_ra>
